<compile_context>
chip_gen: v7x
topology: tpu7x:2x2x1
jax: 0.10.0
libtpu: 0.0.40
codegen_flags: <defaults>
</compile_context>

<pallas_src>
import functools

import jax
import jax.numpy as jnp
from jax import lax
from jax.experimental import pallas as pl
from jax.experimental.pallas import tpu as pltpu


# --------------------------------------------------------------------------
# Kernel 1: SGD step on the Frobenius-norm loss + Hermitianization (iter 0)
# --------------------------------------------------------------------------
def _init_step_kernel(rho_ref, tgt_ref, out_ref, *, lr):
    rho = rho_ref[...]
    diff = rho - tgt_ref[...]
    sumsq = jnp.sum(diff * diff)
    # PyTorch's norm backward uses subgradient 0 when the norm is 0 (first step).
    inv_norm = jnp.where(sumsq > 0.0, lax.rsqrt(sumsq), 0.0)   # EUP rsqrt
    upd = rho - lr * (diff * inv_norm)
    out_ref[...] = 0.5 * (upd + upd.T)        # (M + M^H)/2, real => transpose


# --------------------------------------------------------------------------
# Kernel 2 (fused): reconstruct V diag(max(w,0)) V^T, trace-normalize, then
#                   immediately apply the *next* SGD step + Hermitianization.
#                   Output feeds the next eigh without leaving HBM twice.
# --------------------------------------------------------------------------
def _fused_step_kernel(vecs_ref, vals_ref, tgt_ref, out_ref, *, lr, matmul_dtype):
    V = vecs_ref[...]                              # (N, N) eigenvectors (columns)
    w = jnp.maximum(vals_ref[...], 0.0)            # (1, N) clamped eigenvalues
    scaled = V * w                                 # V @ diag(w): scale columns
    # scaled @ V^T without an explicit transpose (contract last dims -> MXU).
    # matmul_dtype=jnp.bfloat16 is recommended on v6e/v7x (bf16-native MXU).
    proj = lax.dot_general(
        scaled.astype(matmul_dtype), V.astype(matmul_dtype),
        dimension_numbers=(((1,), (1,)), ((), ())),
        preferred_element_type=jnp.float32,
    )
    # trace(V diag(w) V^T) == sum(w) since V is orthonormal (no masked-iota trace).
    # Note: if all eigenvalues clamp to 0 this is Inf/NaN, same as PyTorch.
    inv_tr = pl.reciprocal(jnp.sum(w, axis=-1, keepdims=True))   # (1, 1)
    rho = proj * inv_tr                                          # broadcast mul
    # Next SGD step + Hermitianize, fused (rho stays in VMEM within the step).
    diff = rho - tgt_ref[...]
    sumsq = jnp.sum(diff * diff)
    inv_norm = jnp.where(sumsq > 0.0, lax.rsqrt(sumsq), 0.0)
    upd = rho - lr * (diff * inv_norm)
    out_ref[...] = 0.5 * (upd + upd.T)


# --------------------------------------------------------------------------
# Kernel 3: final projection only (reconstruct + trace-normalize)
# --------------------------------------------------------------------------
def _final_project_kernel(vecs_ref, vals_ref, out_ref, *, matmul_dtype):
    V = vecs_ref[...]
    w = jnp.maximum(vals_ref[...], 0.0)
    scaled = V * w
    proj = lax.dot_general(
        scaled.astype(matmul_dtype), V.astype(matmul_dtype),
        dimension_numbers=(((1,), (1,)), ((), ())),
        preferred_element_type=jnp.float32,
    )
    inv_tr = pl.reciprocal(jnp.sum(w, axis=-1, keepdims=True))
    out_ref[...] = proj * inv_tr


# --------------------------------------------------------------------------
# Pallas wrappers: grid-less, whole-array blocks resident in VMEM.
# --------------------------------------------------------------------------
def _vmem_spec():
    return pl.BlockSpec(memory_space=pltpu.MemorySpace.VMEM)


def _init_step(rho, target, lr):
    n = rho.shape[0]
    return pl.pallas_call(
        functools.partial(_init_step_kernel, lr=lr),
        out_shape=jax.ShapeDtypeStruct((n, n), jnp.float32),
        in_specs=[_vmem_spec(), _vmem_spec()],
        out_specs=_vmem_spec(),
    )(rho, target)


def _fused_step(eigvecs, eigvals_2d, target, lr, matmul_dtype):
    n = eigvecs.shape[0]
    return pl.pallas_call(
        functools.partial(_fused_step_kernel, lr=lr, matmul_dtype=matmul_dtype),
        out_shape=jax.ShapeDtypeStruct((n, n), jnp.float32),
        in_specs=[_vmem_spec(), _vmem_spec(), _vmem_spec()],
        out_specs=_vmem_spec(),
        input_output_aliases={0: 0},   # donate the eigvecs buffer (same shape/dtype)
    )(eigvecs, eigvals_2d, target)


def _final_project(eigvecs, eigvals_2d, matmul_dtype):
    n = eigvecs.shape[0]
    return pl.pallas_call(
        functools.partial(_final_project_kernel, matmul_dtype=matmul_dtype),
        out_shape=jax.ShapeDtypeStruct((n, n), jnp.float32),
        in_specs=[_vmem_spec(), _vmem_spec()],
        out_specs=_vmem_spec(),
        input_output_aliases={0: 0},
    )(eigvecs, eigvals_2d)


# --------------------------------------------------------------------------
# forward(): PGD iterations (module defaults lr=0.1, steps=10)
# --------------------------------------------------------------------------
@functools.partial(jax.jit, static_argnames=("lr", "steps", "matmul_dtype"))
def projected_gradient_descent(nn_density_matrix, lr=0.1, steps=10,
                               matmul_dtype=jnp.float32):
    # matmul_dtype=jnp.bfloat16 gives fewer MXU passes on v6e/v7x if the
    # end-to-end tolerance allows; f32 is the bitwise-faithful default (and the
    # right choice on v5e).
    target = nn_density_matrix.astype(jnp.float32)
    n = target.shape[0]

    # Iteration 0: SGD step on rho = target (zero subgradient) + symmetrize.
    sym = _init_step(target, target, lr)

    # Iterations 0..steps-2 (projection of i fused with grad-step of i+1).
    # TODO(synk): Hermitian eigendecomposition has no Pallas TPU primitive; it
    # stays in jnp.linalg.eigh and dominates wall time — everything around it
    # runs in-kernel.
    def body(sym_carry, _):
        w, V = jnp.linalg.eigh(sym_carry)
        sym_next = _fused_step(V, w.reshape(1, n), target, lr, matmul_dtype)
        return sym_next, None

    if steps > 1:
        sym, _ = lax.scan(body, sym, xs=None, length=steps - 1)

    # Final projection (reconstruct + trace-normalize only).
    w, V = jnp.linalg.eigh(sym)
    rho = _final_project(V, w.reshape(1, n), matmul_dtype)
    return rho


if __name__ == "__main__":
    key = jax.random.PRNGKey(0)
    N = 128  # density-matrix dimension (7 "qubits"), (8,128)-aligned
    nn_density_matrix = jax.random.normal(key, (N, N), dtype=jnp.float32)

    rho = projected_gradient_descent(nn_density_matrix, lr=0.1, steps=10)
    jax.block_until_ready(rho)

    # light sanity checks (trace ~ 1, symmetric, finite)
    assert bool(jnp.isfinite(rho).all())
    assert abs(float(jnp.trace(rho)) - 1.0) < 1e-3
    assert float(jnp.max(jnp.abs(rho - rho.T))) < 1e-4

    print("KERNEL_OK")
</pallas_src>

<mosaic_0001>
module attributes {stable_mosaic.version = 11 : i64} {
  func.func @_init_step_kernel(%arg0: memref<128x128xf32, #tpu.memory_space<vmem>>, %arg1: memref<128x128xf32, #tpu.memory_space<vmem>>, %arg2: memref<128x128xf32, #tpu.memory_space<vmem>>) attributes {dimension_semantics = [], scalar_prefetch = 0 : i64, scratch_operands = 0 : i64, tpu.core_type = #tpu.core_type<tc>} {
    %c0 = arith.constant 0 : index
    %c0_0 = arith.constant 0 : index
    %0 = vector.load %arg0[%c0, %c0_0] : memref<128x128xf32, #tpu.memory_space<vmem>>, vector<128x128xf32>
    %c0_1 = arith.constant 0 : index
    %c0_2 = arith.constant 0 : index
    %1 = vector.load %arg1[%c0_1, %c0_2] : memref<128x128xf32, #tpu.memory_space<vmem>>, vector<128x128xf32>
    %2 = arith.subf %0, %1 : vector<128x128xf32>
    %3 = arith.mulf %2, %2 : vector<128x128xf32>
    %4 = vector.shape_cast %3 : vector<128x128xf32> to vector<1x128x128xf32>
    %cst = arith.constant dense<0.000000e+00> : vector<1xf32>
    %5 = vector.multi_reduction <add>, %4, %cst [1, 2] : vector<1x128x128xf32> to vector<1xf32>
    %6 = vector.shape_cast %5 : vector<1xf32> to vector<1x1x1xf32>
    %7 = vector.extract %6[0, 0, 0] : f32 from vector<1x1x1xf32>
    %cst_3 = arith.constant 0.000000e+00 : f32
    %8 = arith.cmpf ogt, %7, %cst_3 : f32
    %9 = math.rsqrt %7 : f32
    %cst_4 = arith.constant 0.000000e+00 : f32
    %10 = arith.select %8, %9, %cst_4 : f32
    %11 = vector.broadcast %10 : f32 to vector<128x128xf32>
    %12 = arith.mulf %2, %11 : vector<128x128xf32>
    %cst_5 = arith.constant 1.000000e-01 : f32
    %13 = vector.broadcast %cst_5 : f32 to vector<128x128xf32>
    %14 = arith.mulf %13, %12 : vector<128x128xf32>
    %15 = arith.subf %0, %14 : vector<128x128xf32>
    %16 = tpu.transpose %15, [1, 0] : vector<128x128xf32> -> vector<128x128xf32>
    %17 = arith.addf %15, %16 : vector<128x128xf32>
    %cst_6 = arith.constant 5.000000e-01 : f32
    %18 = vector.broadcast %cst_6 : f32 to vector<128x128xf32>
    %19 = arith.mulf %18, %17 : vector<128x128xf32>
    %c0_7 = arith.constant 0 : index
    %c0_8 = arith.constant 0 : index
    %20 = vector.load %arg2[%c0_7, %c0_8] : memref<128x128xf32, #tpu.memory_space<vmem>>, vector<128x128xf32>
    tpu.vector_store %arg2[%c0_7, %c0_8], %19 {strides = array<i32>} : memref<128x128xf32, #tpu.memory_space<vmem>>, vector<128x128xf32>,
    return
  }
}

module attributes {stable_mosaic.version = 11 : i64} {
  func.func @_fused_step_kernel(%arg0: memref<128x128xf32, #tpu.memory_space<vmem>>, %arg1: memref<1x128xf32, #tpu.memory_space<vmem>>, %arg2: memref<128x128xf32, #tpu.memory_space<vmem>>, %arg3: memref<128x128xf32, #tpu.memory_space<vmem>>) attributes {dimension_semantics = [], scalar_prefetch = 0 : i64, scratch_operands = 0 : i64, tpu.core_type = #tpu.core_type<tc>} {
    %c0 = arith.constant 0 : index
    %c0_0 = arith.constant 0 : index
    %0 = vector.load %arg0[%c0, %c0_0] : memref<128x128xf32, #tpu.memory_space<vmem>>, vector<128x128xf32>
    %c0_1 = arith.constant 0 : index
    %c0_2 = arith.constant 0 : index
    %1 = vector.load %arg1[%c0_1, %c0_2] : memref<1x128xf32, #tpu.memory_space<vmem>>, vector<1x128xf32>
    %cst = arith.constant 0.000000e+00 : f32
    %2 = vector.broadcast %cst : f32 to vector<1x128xf32>
    %3 = arith.maximumf %1, %2 : vector<1x128xf32>
    %4 = vector.broadcast %3 : vector<1x128xf32> to vector<128x128xf32>
    %5 = arith.mulf %0, %4 : vector<128x128xf32>
    %cst_3 = arith.constant dense<0.000000e+00> : vector<128x128xf32>
    %6 = tpu.matmul %5, %0, %cst_3 {dimension_numbers = #tpu.dot_dimension_numbers<[1], [1], [0], [0], [0, 0, 1, 0], [], []>} : vector<128x128xf32>, vector<128x128xf32>, vector<128x128xf32> -> vector<128x128xf32>
    %cst_4 = arith.constant dense<0.000000e+00> : vector<1xf32>
    %7 = vector.multi_reduction <add>, %3, %cst_4 [1] : vector<1x128xf32> to vector<1xf32>
    %8 = vector.shape_cast %7 : vector<1xf32> to vector<1x1xf32>
    %9 = tpu.reciprocal %8 : vector<1x1xf32> -> vector<1x1xf32>
    %10 = vector.broadcast %9 : vector<1x1xf32> to vector<128x128xf32>
    %11 = arith.mulf %6, %10 : vector<128x128xf32>
    %c0_5 = arith.constant 0 : index
    %c0_6 = arith.constant 0 : index
    %12 = vector.load %arg2[%c0_5, %c0_6] : memref<128x128xf32, #tpu.memory_space<vmem>>, vector<128x128xf32>
    %13 = arith.subf %11, %12 : vector<128x128xf32>
    %14 = arith.mulf %13, %13 : vector<128x128xf32>
    %15 = vector.shape_cast %14 : vector<128x128xf32> to vector<1x128x128xf32>
    %cst_7 = arith.constant dense<0.000000e+00> : vector<1xf32>
    %16 = vector.multi_reduction <add>, %15, %cst_7 [1, 2] : vector<1x128x128xf32> to vector<1xf32>
    %17 = vector.shape_cast %16 : vector<1xf32> to vector<1x1x1xf32>
    %18 = vector.extract %17[0, 0, 0] : f32 from vector<1x1x1xf32>
    %cst_8 = arith.constant 0.000000e+00 : f32
    %19 = arith.cmpf ogt, %18, %cst_8 : f32
    %20 = math.rsqrt %18 : f32
    %cst_9 = arith.constant 0.000000e+00 : f32
    %21 = arith.select %19, %20, %cst_9 : f32
    %22 = vector.broadcast %21 : f32 to vector<128x128xf32>
    %23 = arith.mulf %13, %22 : vector<128x128xf32>
    %cst_10 = arith.constant 1.000000e-01 : f32
    %24 = vector.broadcast %cst_10 : f32 to vector<128x128xf32>
    %25 = arith.mulf %24, %23 : vector<128x128xf32>
    %26 = arith.subf %11, %25 : vector<128x128xf32>
    %27 = tpu.transpose %26, [1, 0] : vector<128x128xf32> -> vector<128x128xf32>
    %28 = arith.addf %26, %27 : vector<128x128xf32>
    %cst_11 = arith.constant 5.000000e-01 : f32
    %29 = vector.broadcast %cst_11 : f32 to vector<128x128xf32>
    %30 = arith.mulf %29, %28 : vector<128x128xf32>
    %c0_12 = arith.constant 0 : index
    %c0_13 = arith.constant 0 : index
    %31 = vector.load %arg3[%c0_12, %c0_13] : memref<128x128xf32, #tpu.memory_space<vmem>>, vector<128x128xf32>
    tpu.vector_store %arg3[%c0_12, %c0_13], %30 {strides = array<i32>} : memref<128x128xf32, #tpu.memory_space<vmem>>, vector<128x128xf32>,
    return
  }
}

module attributes {stable_mosaic.version = 11 : i64} {
  func.func @_final_project_kernel(%arg0: memref<128x128xf32, #tpu.memory_space<vmem>>, %arg1: memref<1x128xf32, #tpu.memory_space<vmem>>, %arg2: memref<128x128xf32, #tpu.memory_space<vmem>>) attributes {dimension_semantics = [], scalar_prefetch = 0 : i64, scratch_operands = 0 : i64, tpu.core_type = #tpu.core_type<tc>} {
    %c0 = arith.constant 0 : index
    %c0_0 = arith.constant 0 : index
    %0 = vector.load %arg0[%c0, %c0_0] : memref<128x128xf32, #tpu.memory_space<vmem>>, vector<128x128xf32>
    %c0_1 = arith.constant 0 : index
    %c0_2 = arith.constant 0 : index
    %1 = vector.load %arg1[%c0_1, %c0_2] : memref<1x128xf32, #tpu.memory_space<vmem>>, vector<1x128xf32>
    %cst = arith.constant 0.000000e+00 : f32
    %2 = vector.broadcast %cst : f32 to vector<1x128xf32>
    %3 = arith.maximumf %1, %2 : vector<1x128xf32>
    %4 = vector.broadcast %3 : vector<1x128xf32> to vector<128x128xf32>
    %5 = arith.mulf %0, %4 : vector<128x128xf32>
    %cst_3 = arith.constant dense<0.000000e+00> : vector<128x128xf32>
    %6 = tpu.matmul %5, %0, %cst_3 {dimension_numbers = #tpu.dot_dimension_numbers<[1], [1], [0], [0], [0, 0, 1, 0], [], []>} : vector<128x128xf32>, vector<128x128xf32>, vector<128x128xf32> -> vector<128x128xf32>
    %cst_4 = arith.constant dense<0.000000e+00> : vector<1xf32>
    %7 = vector.multi_reduction <add>, %3, %cst_4 [1] : vector<1x128xf32> to vector<1xf32>
    %8 = vector.shape_cast %7 : vector<1xf32> to vector<1x1xf32>
    %9 = tpu.reciprocal %8 : vector<1x1xf32> -> vector<1x1xf32>
    %10 = vector.broadcast %9 : vector<1x1xf32> to vector<128x128xf32>
    %11 = arith.mulf %6, %10 : vector<128x128xf32>
    %c0_5 = arith.constant 0 : index
    %c0_6 = arith.constant 0 : index
    %12 = vector.load %arg2[%c0_5, %c0_6] : memref<128x128xf32, #tpu.memory_space<vmem>>, vector<128x128xf32>
    tpu.vector_store %arg2[%c0_5, %c0_6], %11 {strides = array<i32>} : memref<128x128xf32, #tpu.memory_space<vmem>>, vector<128x128xf32>,
    return
  }
}

</mosaic_0001>

<bundles_post_ra>
// kernel: custom-call.6
= control target key start
LH: loop header
LB: loop body
LE: loop exit
PB: predicated region body
PF: predicated region fallthrough
CT: control target
= control target key end

     0   :  { %s8421_s0 = inlined_call_operand.vmem [shape: f32[64,64], index: 0, kind: input, shape index: {}]   ;;  %s8422_s1 = inlined_call_operand.vmem [shape: f32[64,64], index: 1, kind: input, shape index: {}]   ;;  %s8423_s2 = inlined_call_operand.vmem [shape: f32[64,64], index: 2, kind: input, shape index: {}]   ;;  %s8424_s3 = inlined_call_operand.vmem [shape: f32[64,64], index: 3, kind: input, shape index: {}]   ;;  %s8425_s4 = inlined_call_operand.vmem [shape: f32[64], index: 4, kind: output, shape index: {0}]   ;;  %s8426_s5 = inlined_call_operand.vmem [shape: f32[64], index: 5, kind: output, shape index: {1}]   ;;  %s8427_s6 = inlined_call_operand.vmem [shape: f32[64,64], index: 6, kind: output, shape index: {2}]   ;;  %s8428_s7 = inlined_call_operand.vmem [shape: f32[64,64], index: 7, kind: output, shape index: {3}]   ;;  %s8429_s8 = inlined_call_operand.vmem [shape: f32[64,64], index: 8, kind: output, shape index: {4}]   ;;  %s8430_s9 = inlined_call_operand.vmem [shape: f32[64,64], index: 9, kind: output, shape index: {5}]  }
   0x1   :  { %8440 = sst [smem:[#allocation30_spill]] %s8425_s4 }
   0x2   :  { %8441 = sst [smem:[#allocation31_spill]] %s8426_s5 }
   0x3   :  { %8442 = sst [smem:[#allocation32_spill]] %s8427_s6 }
   0x4   :  { %8443 = sst [smem:[#allocation33_spill]] %s8428_s7 }
   0x5   :  { %8444 = sst [smem:[#allocation34_spill]] %s8429_s8 }
   0x6   :  { %8445 = sst [smem:[#allocation35_spill]] %s8430_s9 }
   0x7   :  { %s24_s11 = scalar_lea.vmem %s8421_s0, 56 }
   0x8   :  { %p4249_p0 = scmp.gt.s32.totalorder %s8421_s0, %s24_s11 }
   0x9   :  { %s6176_s14 = smov (!%p4249_p0), [#allocation0]   ;;  %s6180_s17 = smov (!%p4249_p0), %s8421_s0  }
   0xa   :  { %4250 = sbr.rel (%p4249_p0) target bundleno = 27 (0x1b), region = 835 }
  0x11 LB: > { %v58_v0 = vld [vmem:[%s6182_s17] sm:$0xff]  ;;  %s60_s17 = scalar_lea.vmem %s6182_s17, 8   ;;  %s6182_s17 = sphi %s6180_s17, %s60_s17   ;;  %s6178_s14 = sphi %s6176_s14, %s61_s14  }
  0x12   : > { %59 = vst [vmem:[%s6178_s14] sm:$0xff] %v58_v0  ;;  %s61_s14 = scalar_lea.vmem %s6178_s14, 8   ;;  %p55_p1 = scmp.gt.s32.totalorder %s60_s17, %s24_s11 }
  0x14   :  { %57 = sbr.rel (!%p55_p1) target bundleno = 17 (0x11), region = 841 }
  0x1b PF:  { %s86_s20 = scalar_lea.vmem %s8422_s1, 56 }
  0x1c   :  { %p4269_p2 = scmp.gt.s32.totalorder %s8422_s1, %s86_s20 }
  0x1d   :  { %s6184_s0 = smov (!%p4269_p2), [#allocation1]   ;;  %s6188_s25 = smov (!%p4269_p2), %s8422_s1  }
  0x1e   :  { %4270 = sbr.rel (%p4269_p2) target bundleno = 47 (0x2f), region = 857 }
  0x25 LB: > { %v120_v1 = vld [vmem:[%s6190_s25] sm:$0xff]  ;;  %s122_s25 = scalar_lea.vmem %s6190_s25, 8   ;;  %s6190_s25 = sphi %s6188_s25, %s122_s25   ;;  %s6186_s0 = sphi %s6184_s0, %s123_s0  }
  0x26   : > { %121 = vst [vmem:[%s6186_s0] sm:$0xff] %v120_v1  ;;  %s123_s0 = scalar_lea.vmem %s6186_s0, 8   ;;  %p117_p3 = scmp.gt.s32.totalorder %s122_s25, %s86_s20 }
  0x28   :  { %119 = sbr.rel (!%p117_p3) target bundleno = 37 (0x25), region = 863 }
  0x2f PF:  { %s148_s28 = scalar_lea.vmem %s8423_s2, 56 }
  0x30   :  { %p4289_p4 = scmp.gt.s32.totalorder %s8423_s2, %s148_s28 }
  0x31   :  { %s6192_s1 = smov (!%p4289_p4), [#allocation2]   ;;  %s6196_s12 = smov (!%p4289_p4), %s8423_s2  }
  0x32   :  { %4290 = sbr.rel (%p4289_p4) target bundleno = 67 (0x43), region = 879 }
  0x39 LB: > { %v182_v2 = vld [vmem:[%s6198_s12] sm:$0xff]  ;;  %s184_s12 = scalar_lea.vmem %s6198_s12, 8   ;;  %s6198_s12 = sphi %s6196_s12, %s184_s12   ;;  %s6194_s1 = sphi %s6192_s1, %s185_s1  }
  0x3a   : > { %183 = vst [vmem:[%s6194_s1] sm:$0xff] %v182_v2  ;;  %s185_s1 = scalar_lea.vmem %s6194_s1, 8   ;;  %p179_p5 = scmp.gt.s32.totalorder %s184_s12, %s148_s28 }
  0x3c   :  { %181 = sbr.rel (!%p179_p5) target bundleno = 57 (0x39), region = 885 }
  0x43 PF:  { %s210_s15 = scalar_lea.vmem %s8424_s3, 56 }
  0x44   :  { %p4309_p6 = scmp.gt.s32.totalorder %s8424_s3, %s210_s15 }
  0x45   :  { %s6200_s2 = smov (!%p4309_p6), [#allocation3]   ;;  %s6204_s20 = smov (!%p4309_p6), %s8424_s3  }
  0x46   :  { %4310 = sbr.rel (%p4309_p6) target bundleno = 87 (0x57), region = 901 }
  0x4d LB: > { %v244_v3 = vld [vmem:[%s6206_s20] sm:$0xff]  ;;  %s246_s20 = scalar_lea.vmem %s6206_s20, 8   ;;  %s6206_s20 = sphi %s6204_s20, %s246_s20   ;;  %s6202_s2 = sphi %s6200_s2, %s247_s2  }
  0x4e   : > { %245 = vst [vmem:[%s6202_s2] sm:$0xff] %v244_v3  ;;  %s247_s2 = scalar_lea.vmem %s6202_s2, 8   ;;  %p241_p7 = scmp.gt.s32.totalorder %s246_s20, %s210_s15 }
  0x50   :  { %243 = sbr.rel (!%p241_p7) target bundleno = 77 (0x4d), region = 907 }
  0x57 PF:  { %s6337_s21 = smov [#allocation12]  ;;  %v260_v4 = vld [vmem:[#allocation0] sm:$0xff]  ;;  %v264_v5 = vld [vmem:[#allocation0 + $0x8] sm:$0xff]  ;;  %v268_v6 = vld [vmem:[#allocation0 + $0x10] sm:$0xff]  ;;  %s6339_s3 = smov [#allocation13]  ;;  %v444_v7 = vlaneseq  ;;  %v6248_v11 = vmov 0.0  }
  0x58   :  { %261 = vst [vmem:[%s6337_s21] sm:$0xff] %v260_v4  ;;  %4754 = vst [vmem:[%s6337_s21 + $0x8] sm:$0xff] %v264_v5  ;;  %v272_v8 = vld [vmem:[#allocation0 + $0x18] sm:$0xff]  ;;  %v276_v9 = vld [vmem:[#allocation0 + $0x20] sm:$0xff]  ;;  %s6354_s22 = smov [#allocation14]  ;;  %s6359_s0 = smov [#allocation15] }
  0x59   :  { %4755 = vst [vmem:[%s6337_s21 + $0x10] sm:$0xff] %v268_v6  ;;  %v280_v10 = vld [vmem:[#allocation0 + $0x28] sm:$0xff]  ;;  %383 = vst [vmem:[#allocation8] sm:$0xff] %v6248_v11  ;;  %v284_v12 = vld [vmem:[#allocation0 + $0x30] sm:$0xff]  ;;  %v6347_v15 = vand.u32 127, %v444_v7  ;;  %v6349_v16 = vshrl.u32 %v444_v7, 7 }
  0x5a   :  { %385 = vst [vmem:[#allocation8 + $0x8] sm:$0xff] %v6248_v11  ;;  %387 = vst [vmem:[#allocation8 + $0x10] sm:$0xff] %v6248_v11  ;;  %v288_v13 = vld [vmem:[#allocation0 + $0x38] sm:$0xff]  ;;  %v291_v14 = vld [vmem:[#allocation1] sm:$0xff]  ;;  %s6404_s23 = smov [#allocation8]  ;;  %s6424_s24 = smov [#allocation11] }
  0x5b   :  { %389 = vst [vmem:[#allocation8 + $0x18] sm:$0xff] %v6248_v11  ;;  %391 = vst [vmem:[#allocation8 + $0x20] sm:$0xff] %v6248_v11  ;;  %v295_v17 = vld [vmem:[#allocation1 + $0x8] sm:$0xff]  ;;  %v299_v18 = vld [vmem:[#allocation1 + $0x10] sm:$0xff]  ;;  %v6362_v15 = vmov %v6347_v15  ;;  %v6365_v16 = vmov %v6349_v16  ;;  %s4327_s25 = smov [#allocation12]  ;;  %s6535_s26 = smov [#allocation13] }
  0x5c   :  { %393 = vst [vmem:[#allocation8 + $0x28] sm:$0xff] %v6248_v11  ;;  %395 = vst [vmem:[#allocation8 + $0x30] sm:$0xff] %v6248_v11  ;;  %v303_v19 = vld [vmem:[#allocation1 + $0x18] sm:$0xff]  ;;  %v307_v20 = vld [vmem:[#allocation1 + $0x20] sm:$0xff]  ;;  %v6368_v15 = vmov %v6347_v15  ;;  %v6371_v16 = vmov %v6349_v16  ;;  %vm453_vm0 = vcmp.eq.s32.totalorder %v6365_v16, %v6362_v15  ;;  %v6379_v26 = vadd.s32 8, %v6365_v16  ;;  %s6587_s27 = smov [#allocation14] }
  0x5d   :  { %397 = vst [vmem:[#allocation8 + $0x38] sm:$0xff] %v6248_v11  ;;  %398 = vst [vmem:[#allocation9] sm:$0xff] %v6248_v11  ;;  %v311_v21 = vld [vmem:[#allocation1 + $0x28] sm:$0xff]  ;;  %v315_v22 = vld [vmem:[#allocation1 + $0x30] sm:$0xff]  ;;  %v6382_v27 = vadd.s32 16, %v6365_v16  ;;  %v6385_v28 = vadd.s32 24, %v6365_v16  ;;  %vm515_vm1 = vcmp.eq.s32.totalorder %v6371_v16, %v6368_v15 }
  0x5e   :  { %400 = vst [vmem:[#allocation9 + $0x8] sm:$0xff] %v6248_v11  ;;  %402 = vst [vmem:[#allocation9 + $0x10] sm:$0xff] %v6248_v11  ;;  %v319_v23 = vld [vmem:[#allocation1 + $0x38] sm:$0xff]  ;;  %v322_v24 = vld [vmem:[#allocation2] sm:$0xff]  ;;  %v6391_v32 = vadd.s32 32, %v6365_v16  ;;  %v6394_v33 = vadd.s32 40, %v6365_v16  ;;  %vm460_vm2 = vcmp.eq.s32.totalorder %v6379_v26, %v6362_v15 }
  0x5f   :  { %404 = vst [vmem:[#allocation9 + $0x18] sm:$0xff] %v6248_v11  ;;  %406 = vst [vmem:[#allocation9 + $0x20] sm:$0xff] %v6248_v11  ;;  %v326_v25 = vld [vmem:[#allocation2 + $0x8] sm:$0xff]  ;;  %v330_v29 = vld [vmem:[#allocation2 + $0x10] sm:$0xff]  ;;  %v6397_v34 = vadd.s32 48, %v6365_v16  ;;  %vm467_vm3 = vcmp.eq.s32.totalorder %v6382_v27, %v6362_v15  ;;  %vm474_vm4 = vcmp.eq.s32.totalorder %v6385_v28, %v6362_v15  ;;  %v6413_v38 = vadd.s32 56, %v6365_v16 }
  0x60   :  { %408 = vst [vmem:[#allocation9 + $0x28] sm:$0xff] %v6248_v11  ;;  %410 = vst [vmem:[#allocation9 + $0x30] sm:$0xff] %v6248_v11  ;;  %v334_v30 = vld [vmem:[#allocation2 + $0x18] sm:$0xff]  ;;  %v338_v31 = vld [vmem:[#allocation2 + $0x20] sm:$0xff]  ;;  %vm481_vm5 = vcmp.eq.s32.totalorder %v6391_v32, %v6362_v15  ;;  %vm488_vm6 = vcmp.eq.s32.totalorder %v6394_v33, %v6362_v15  ;;  %v521_v42 = vadd.s32 8, %v6371_v16  ;;  %v528_v46 = vadd.s32 16, %v6371_v16 }
  0x61   :  { %412 = vst [vmem:[#allocation9 + $0x38] sm:$0xff] %v6248_v11  ;;  %413 = vst [vmem:[#allocation10] sm:$0xff] %v6248_v11  ;;  %v342_v35 = vld [vmem:[#allocation2 + $0x28] sm:$0xff]  ;;  %v346_v36 = vld [vmem:[#allocation2 + $0x30] sm:$0xff]  ;;  %vm495_vm7 = vcmp.eq.s32.totalorder %v6397_v34, %v6362_v15  ;;  %vm502_vm8 = vcmp.eq.s32.totalorder %v6413_v38, %v6362_v15  ;;  %v535_v47 = vadd.s32 24, %v6371_v16  ;;  %v542_v48 = vadd.s32 32, %v6371_v16 }
  0x62   :  { %415 = vst [vmem:[#allocation10 + $0x8] sm:$0xff] %v6248_v11  ;;  %417 = vst [vmem:[#allocation10 + $0x10] sm:$0xff] %v6248_v11  ;;  %v350_v37 = vld [vmem:[#allocation2 + $0x38] sm:$0xff]  ;;  %v353_v39 = vld [vmem:[#allocation3] sm:$0xff]  ;;  %vm522_vm9 = vcmp.eq.s32.totalorder %v521_v42, %v6368_v15  ;;  %v549_v52 = vadd.s32 40, %v6371_v16  ;;  %v556_v53 = vadd.s32 48, %v6371_v16  ;;  %vm529_vm10 = vcmp.eq.s32.totalorder %v528_v46, %v6368_v15 }
  0x63   :  { %419 = vst [vmem:[#allocation10 + $0x18] sm:$0xff] %v6248_v11  ;;  %421 = vst [vmem:[#allocation10 + $0x20] sm:$0xff] %v6248_v11  ;;  %v357_v40 = vld [vmem:[#allocation3 + $0x8] sm:$0xff]  ;;  %v361_v41 = vld [vmem:[#allocation3 + $0x10] sm:$0xff]  ;;  %v563_v54 = vadd.s32 56, %v6371_v16  ;;  %vm536_vm11 = vcmp.eq.s32.totalorder %v535_v47, %v6368_v15  ;;  %vm543_vm12 = vcmp.eq.s32.totalorder %v542_v48, %v6368_v15  ;;  %v4326_v16 = vmov %v6349_v16  ;;  %s6632_s28 = smov [#allocation15] }
  0x64   :  { %423 = vst [vmem:[#allocation10 + $0x28] sm:$0xff] %v6248_v11  ;;  %425 = vst [vmem:[#allocation10 + $0x30] sm:$0xff] %v6248_v11  ;;  %v365_v43 = vld [vmem:[#allocation3 + $0x18] sm:$0xff]  ;;  %v369_v44 = vld [vmem:[#allocation3 + $0x20] sm:$0xff]  ;;  %vm550_vm13 = vcmp.eq.s32.totalorder %v549_v52, %v6368_v15  ;;  %vm557_vm14 = vcmp.eq.s32.totalorder %v556_v53, %v6368_v15 }
  0x65   :  { %427 = vst [vmem:[#allocation10 + $0x38] sm:$0xff] %v6248_v11  ;;  %428 = vst [vmem:[#allocation11] sm:$0xff] %v6248_v11  ;;  %v373_v45 = vld [vmem:[#allocation3 + $0x28] sm:$0xff]  ;;  %v377_v49 = vld [vmem:[#allocation3 + $0x30] sm:$0xff]  ;;  %vm564_vm15 = vcmp.eq.s32.totalorder %v563_v54, %v6368_v15 }
  0x66   :  { %430 = vst [vmem:[#allocation11 + $0x8] sm:$0xff] %v6248_v11  ;;  %432 = vst [vmem:[#allocation11 + $0x10] sm:$0xff] %v6248_v11  ;;  %v381_v50 = vld [vmem:[#allocation3 + $0x38] sm:$0xff]  ;;  %v450_v51 = vld [vmem:[%s6404_s23] sm:$0xff] }
  0x67   :  { %434 = vst [vmem:[#allocation11 + $0x18] sm:$0xff] %v6248_v11  ;;  %436 = vst [vmem:[#allocation11 + $0x20] sm:$0xff] %v6248_v11  ;;  %v454_v55 = vsel %vm453_vm0, 1.0, %v450_v51  ;;  %v4782_v56 = vld [vmem:[%s6404_s23 + $0x8] sm:$0xff]  ;;  %v4784_v57 = vld [vmem:[%s6404_s23 + $0x10] sm:$0xff]  ;;  %vm8433_vm0 = vcmp.lt.s32.totalorder %v6347_v15, 64  ;;  %v4403_v15 = vmov %v6347_v15 }
  0x68   :  { %438 = vst [vmem:[#allocation11 + $0x28] sm:$0xff] %v6248_v11  ;;  %440 = vst [vmem:[#allocation11 + $0x30] sm:$0xff] %v6248_v11  ;;  %v4786_v58 = vld [vmem:[%s6404_s23 + $0x18] sm:$0xff]  ;;  %v461_v59 = vsel %vm460_vm2, 1.0, %v4782_v56  ;;  %v468_v60 = vsel %vm467_vm3, 1.0, %v4784_v57  ;;  %v4788_v62 = vld [vmem:[%s6404_s23 + $0x20] sm:$0xff]  ;;  %v6559_v15 = vmov %v6347_v15 }
  0x69   :  { %442 = vst [vmem:[#allocation11 + $0x38] sm:$0xff] %v6248_v11  ;;  %4756 = vst [vmem:[%s6337_s21 + $0x18] sm:$0xff] %v272_v8  ;;  %v475_v61 = vsel %vm474_vm4, 1.0, %v4786_v58  ;;  %v4790_v63 = vld [vmem:[%s6404_s23 + $0x28] sm:$0xff]  ;;  %v4792_v0 = vld [vmem:[%s6404_s23 + $0x30] sm:$0xff]  ;;  %v482_v1 = vsel %vm481_vm5, 1.0, %v4788_v62 }
  0x6a   :  { %4757 = vst [vmem:[%s6337_s21 + $0x20] sm:$0xff] %v276_v9  ;;  %4758 = vst [vmem:[%s6337_s21 + $0x28] sm:$0xff] %v280_v10  ;;  %v489_v2 = vsel %vm488_vm6, 1.0, %v4790_v63  ;;  %v496_v3 = vsel %vm495_vm7, 1.0, %v4792_v0  ;;  %v4794_v4 = vld [vmem:[%s6404_s23 + $0x38] sm:$0xff] }
  0x6b   :  { %4759 = vst [vmem:[%s6337_s21 + $0x30] sm:$0xff] %v284_v12  ;;  %4760 = vst [vmem:[%s6337_s21 + $0x38] sm:$0xff] %v288_v13  ;;  %v503_v7 = vsel %vm502_vm8, 1.0, %v4794_v4 }
  0x6c   :  { %292 = vst [vmem:[%s6339_s3] sm:$0xff] %v291_v14  ;;  %4761 = vst [vmem:[%s6339_s3 + $0x8] sm:$0xff] %v295_v17 }
  0x6d   :  { %4762 = vst [vmem:[%s6339_s3 + $0x10] sm:$0xff] %v299_v18  ;;  %4763 = vst [vmem:[%s6339_s3 + $0x18] sm:$0xff] %v303_v19 }
  0x6e   :  { %4764 = vst [vmem:[%s6339_s3 + $0x20] sm:$0xff] %v307_v20  ;;  %4765 = vst [vmem:[%s6339_s3 + $0x28] sm:$0xff] %v311_v21 }
  0x6f   :  { %4766 = vst [vmem:[%s6339_s3 + $0x30] sm:$0xff] %v315_v22  ;;  %4767 = vst [vmem:[%s6339_s3 + $0x38] sm:$0xff] %v319_v23 }
  0x70   :  { %323 = vst [vmem:[%s6354_s22] sm:$0xff] %v322_v24  ;;  %4768 = vst [vmem:[%s6354_s22 + $0x8] sm:$0xff] %v326_v25  ;;  %v512_v5 = vld [vmem:[%s6424_s24] sm:$0xff]  ;;  %v4796_v6 = vld [vmem:[%s6424_s24 + $0x8] sm:$0xff] }
  0x71   :  { %4769 = vst [vmem:[%s6354_s22 + $0x10] sm:$0xff] %v330_v29  ;;  %4770 = vst [vmem:[%s6354_s22 + $0x18] sm:$0xff] %v334_v30  ;;  %v516_v8 = vsel %vm515_vm1, 1.0, %v512_v5  ;;  %v523_v9 = vsel %vm522_vm9, 1.0, %v4796_v6  ;;  %v4798_v10 = vld [vmem:[%s6424_s24 + $0x10] sm:$0xff]  ;;  %v4800_v11 = vld [vmem:[%s6424_s24 + $0x18] sm:$0xff]  ;;  %vm4336_vm1 = vcmp.eq.s32.totalorder %v4326_v16, %v6559_v15 }
  0x72   :  { %4771 = vst [vmem:[%s6354_s22 + $0x20] sm:$0xff] %v338_v31  ;;  %4772 = vst [vmem:[%s6354_s22 + $0x28] sm:$0xff] %v342_v35  ;;  %v4802_v12 = vld [vmem:[%s6424_s24 + $0x20] sm:$0xff]  ;;  %v530_v13 = vsel %vm529_vm10, 1.0, %v4798_v10  ;;  %v537_v14 = vsel %vm536_vm11, 1.0, %v4800_v11  ;;  %v4804_v18 = vld [vmem:[%s6424_s24 + $0x28] sm:$0xff] }
  0x73   :  { %4773 = vst [vmem:[%s6354_s22 + $0x30] sm:$0xff] %v346_v36  ;;  %4774 = vst [vmem:[%s6354_s22 + $0x38] sm:$0xff] %v350_v37  ;;  %v544_v17 = vsel %vm543_vm12, 1.0, %v4802_v12  ;;  %v4806_v19 = vld [vmem:[%s6424_s24 + $0x30] sm:$0xff]  ;;  %v4808_v20 = vld [vmem:[%s6424_s24 + $0x38] sm:$0xff]  ;;  %v551_v21 = vsel %vm550_vm13, 1.0, %v4804_v18 }
  0x74   :  { %354 = vst [vmem:[%s6359_s0] sm:$0xff] %v353_v39  ;;  %4775 = vst [vmem:[%s6359_s0 + $0x8] sm:$0xff] %v357_v40  ;;  %v558_v22 = vsel %vm557_vm14, 1.0, %v4806_v19  ;;  %v565_v23 = vsel %vm564_vm15, 1.0, %v4808_v20  ;;  %v4333_v24 = vld [vmem:[%s4327_s25] sm:$0xff]  ;;  %v4810_v25 = vld [vmem:[%s4327_s25 + $0x8] sm:$0xff]  ;;  %v4351_v11 = vadd.s32 16, %v4326_v16 }
  0x75   :  { %4776 = vst [vmem:[%s6359_s0 + $0x10] sm:$0xff] %v361_v41  ;;  %4777 = vst [vmem:[%s6359_s0 + $0x18] sm:$0xff] %v365_v43  ;;  %v4811_v26 = vld [vmem:[%s4327_s25 + $0x10] sm:$0xff]  ;;  %v4334_v27 = vsel %vm8433_vm0, %v4333_v24, 0.0  ;;  %v4340_v28 = vsel %vm8433_vm0, %v4810_v25, 0.0  ;;  %v4812_v30 = vld [vmem:[%s4327_s25 + $0x18] sm:$0xff] }
  0x76   :  { %4778 = vst [vmem:[%s6359_s0 + $0x20] sm:$0xff] %v369_v44  ;;  %4779 = vst [vmem:[%s6359_s0 + $0x28] sm:$0xff] %v373_v45  ;;  %v4349_v29 = vsel %vm8433_vm0, %v4811_v26, 0.0  ;;  %v4813_v31 = vld [vmem:[%s4327_s25 + $0x20] sm:$0xff]  ;;  %v4335_v32 = vmul.f32 %v4334_v27, %v4334_v27  ;;  %v4341_v33 = vmul.f32 %v4340_v28, %v4340_v28  ;;  %v4358_v35 = vsel %vm8433_vm0, %v4812_v30, 0.0  ;;  %v4814_v36 = vld [vmem:[%s4327_s25 + $0x28] sm:$0xff] }
  0x77   :  { %4780 = vst [vmem:[%s6359_s0 + $0x30] sm:$0xff] %v377_v49  ;;  %4781 = vst [vmem:[%s6359_s0 + $0x38] sm:$0xff] %v381_v50  ;;  %v4350_v34 = vmul.f32 %v4349_v29, %v4349_v29  ;;  %v4367_v37 = vsel %vm8433_vm0, %v4813_v31, 0.0  ;;  %v4359_v39 = vmul.f32 %v4358_v35, %v4358_v35  ;;  %v4815_v40 = vld [vmem:[%s4327_s25 + $0x30] sm:$0xff]  ;;  %v4376_v41 = vsel %vm8433_vm0, %v4814_v36, 0.0  ;;  %v4816_v44 = vld [vmem:[%s4327_s25 + $0x38] sm:$0xff] }
  0x78   :  { %455 = vst [vmem:[%s6404_s23] sm:$0xff] %v454_v55  ;;  %4783 = vst [vmem:[%s6404_s23 + $0x8] sm:$0xff] %v461_v59  ;;  %v4346_v38 = vadd.f32 %v4341_v33, %v4335_v32  ;;  %v4368_v43 = vmul.f32 %v4367_v37, %v4367_v37  ;;  %v4385_v45 = vsel %vm8433_vm0, %v4815_v40, 0.0  ;;  %v6539_v47 = vmul.f32 %v4376_v41, %v4376_v41  ;;  %v4413_v48 = vld [vmem:[%s6535_s26] sm:$0xff]  ;;  %v4817_v52 = vld [vmem:[%s6535_s26 + $0x8] sm:$0xff] }
  0x79   :  { %4785 = vst [vmem:[%s6404_s23 + $0x10] sm:$0xff] %v468_v60  ;;  %4787 = vst [vmem:[%s6404_s23 + $0x18] sm:$0xff] %v475_v61  ;;  %v4394_v49 = vsel %vm8433_vm0, %v4816_v44, 0.0  ;;  %v6544_v51 = vmul.f32 %v4385_v45, %v4385_v45  ;;  %v4414_v53 = vsel %vm8433_vm0, %v4413_v48, 0.0  ;;  %v4818_v56 = vld [vmem:[%s6535_s26 + $0x10] sm:$0xff]  ;;  %v4819_v57 = vld [vmem:[%s6535_s26 + $0x18] sm:$0xff]  ;;  %vm4352_vm3 = vcmp.eq.s32.totalorder %v4351_v11, %v6559_v15 }
  0x7a   :  { %4789 = vst [vmem:[%s6404_s23 + $0x20] sm:$0xff] %v482_v1  ;;  %4791 = vst [vmem:[%s6404_s23 + $0x28] sm:$0xff] %v489_v2  ;;  %v4355_v42 = vadd.f32 %v4350_v34, %v4346_v38  ;;  %v6550_v55 = vmul.f32 %v4394_v49, %v4394_v49  ;;  %v4420_v58 = vsel %vm8433_vm0, %v4817_v52, 0.0  ;;  %v4820_v59 = vld [vmem:[%s6535_s26 + $0x20] sm:$0xff]  ;;  %v6562_v61 = vmul.f32 %v4414_v53, %v4414_v53  ;;  %v4821_v0 = vld [vmem:[%s6535_s26 + $0x28] sm:$0xff] }
  0x7b   :  { %4793 = vst [vmem:[%s6404_s23 + $0x30] sm:$0xff] %v496_v3  ;;  %4795 = vst [vmem:[%s6404_s23 + $0x38] sm:$0xff] %v503_v7  ;;  %v4426_v62 = vsel %vm8433_vm0, %v4818_v56, 0.0  ;;  %v4432_v63 = vsel %vm8433_vm0, %v4819_v57, 0.0  ;;  %v4342_v1 = vadd.s32 8, %v4326_v16  ;;  %v6570_v3 = vmul.f32 %v4420_v58, %v4420_v58  ;;  %v4472_v30 = vld [vmem:[%s6587_s27] sm:$0xff] }
  0x7c   :  { %517 = vst [vmem:[%s6424_s24] sm:$0xff] %v516_v8  ;;  %4797 = vst [vmem:[%s6424_s24 + $0x8] sm:$0xff] %v523_v9  ;;  %v4364_v46 = vadd.f32 %v4359_v39, %v4355_v42  ;;  %v4438_v4 = vsel %vm8433_vm0, %v4820_v59, 0.0  ;;  %v6576_v6 = vmul.f32 %v4426_v62, %v4426_v62  ;;  %v6578_v7 = vmul.f32 %v4432_v63, %v4432_v63  ;;  %v4824_v37 = vld [vmem:[%s6587_s27 + $0x8] sm:$0xff]  ;;  %v4826_v49 = vld [vmem:[%s6587_s27 + $0x18] sm:$0xff] }
  0x7d   :  { %4799 = vst [vmem:[%s6424_s24 + $0x10] sm:$0xff] %v530_v13  ;;  %4801 = vst [vmem:[%s6424_s24 + $0x18] sm:$0xff] %v537_v14  ;;  %v4444_v8 = vsel %vm8433_vm0, %v4821_v0, 0.0  ;;  %v6582_v9 = vmul.f32 %v4438_v4, %v4438_v4  ;;  %v4337_v10 = vsel %vm4336_vm1, 0.0, %v4335_v32  ;;  %vm4343_vm2 = vcmp.eq.s32.totalorder %v4342_v1, %v6559_v15  ;;  %v4822_v13 = vld [vmem:[%s6535_s26 + $0x30] sm:$0xff]  ;;  %v4827_v56 = vld [vmem:[%s6587_s27 + $0x20] sm:$0xff] }
  0x7e   :  { %4803 = vst [vmem:[%s6424_s24 + $0x20] sm:$0xff] %v544_v17  ;;  %4805 = vst [vmem:[%s6424_s24 + $0x28] sm:$0xff] %v551_v21  ;;  %v4373_v50 = vadd.f32 %v4368_v43, %v4364_v46  ;;  %v4344_v14 = vsel %vm4343_vm2, 0.0, %v4341_v33  ;;  %v4360_v17 = vadd.s32 24, %v4326_v16  ;;  %v4369_v18 = vadd.s32 32, %v4326_v16  ;;  %v4830_v11 = vld [vmem:[%s6587_s27 + $0x38] sm:$0xff] }
  0x7f   :  { %4807 = vst [vmem:[%s6424_s24 + $0x30] sm:$0xff] %v558_v22  ;;  %4809 = vst [vmem:[%s6424_s24 + $0x38] sm:$0xff] %v565_v23  ;;  %v4345_v19 = vadd.f32 %v4344_v14, %v4337_v10  ;;  %v4378_v20 = vadd.s32 40, %v4326_v16  ;;  %v4387_v21 = vadd.s32 48, %v4326_v16  ;;  %v4823_v23 = vld [vmem:[%s6535_s26 + $0x38] sm:$0xff]  ;;  %v4353_v24 = vsel %vm4352_vm3, 0.0, %v4350_v34 }
  0x80   :  { %v4382_v54 = vadd.f32 %v6539_v47, %v4373_v50  ;;  %vm4361_vm4 = vcmp.eq.s32.totalorder %v4360_v17, %v6559_v15  ;;  %vm4370_vm5 = vcmp.eq.s32.totalorder %v4369_v18, %v6559_v15  ;;  %v4450_v25 = vsel %vm8433_vm0, %v4822_v13, 0.0  ;;  %v4531_v17 = vld [vmem:[%s6632_s28] sm:$0xff] }
  0x81   :  { %v4354_v26 = vadd.f32 %v4353_v24, %v4345_v19  ;;  %v4362_v27 = vsel %vm4361_vm4, 0.0, %v4359_v39  ;;  %vm4379_vm6 = vcmp.eq.s32.totalorder %v4378_v20, %v6559_v15  ;;  %v6598_v29 = vmul.f32 %v4444_v8, %v4444_v8 }
  0x82   :  { %v4391_v60 = vadd.f32 %v6544_v51, %v4382_v54  ;;  %v4371_v31 = vsel %vm4370_vm5, 0.0, %v4368_v43  ;;  %v4396_v32 = vadd.s32 56, %v4326_v16  ;;  %v4456_v33 = vsel %vm8433_vm0, %v4823_v23, 0.0  ;;  %v4825_v43 = vld [vmem:[%s6587_s27 + $0x10] sm:$0xff] }
  0x83   :  { %v4363_v34 = vadd.f32 %v4362_v27, %v4354_v26  ;;  %vm4388_vm7 = vcmp.eq.s32.totalorder %v4387_v21, %v6559_v15  ;;  %v4451_v36 = vmul.f32 %v4450_v25, %v4450_v25  ;;  %v4380_v38 = vsel %vm4379_vm6, 0.0, %v6539_v47  ;;  %v4831_v21 = vld [vmem:[%s6632_s28 + $0x8] sm:$0xff]  ;;  %v4832_v25 = vld [vmem:[%s6632_s28 + $0x10] sm:$0xff] }
  0x84   :  { %v4400_v2 = vadd.f32 %v6550_v55, %v4391_v60  ;;  %v4473_v39 = vsel %vm8433_vm0, %v4472_v30, 0.0  ;;  %vm4397_vm8 = vcmp.eq.s32.totalorder %v4396_v32, %v6559_v15  ;;  %v4457_v42 = vmul.f32 %v4456_v33, %v4456_v33  ;;  %v4828_v60 = vld [vmem:[%s6587_s27 + $0x28] sm:$0xff]  ;;  %v4833_v30 = vld [vmem:[%s6632_s28 + $0x18] sm:$0xff] }
  0x85   :  { %v4372_v40 = vadd.f32 %v4371_v31, %v4363_v34  ;;  %v4389_v44 = vsel %vm4388_vm7, 0.0, %v6544_v51  ;;  %v4479_v45 = vsel %vm8433_vm0, %v4824_v37, 0.0  ;;  %v4474_v47 = vmul.f32 %v4473_v39, %v4473_v39 }
  0x86   :  { %v4417_v5 = vadd.f32 %v6562_v61, %v4400_v2  ;;  %v4398_v50 = vsel %vm4397_vm8, 0.0, %v6550_v55  ;;  %v4485_v52 = vsel %vm8433_vm0, %v4825_v43, 0.0  ;;  %v4406_v16 = vmov %v6349_v16  ;;  %v4829_v2 = vld [vmem:[%s6587_s27 + $0x30] sm:$0xff] }
  0x87   :  { %v4381_v46 = vadd.f32 %v4380_v38, %v4372_v40  ;;  %v4462_v15 = vmov %v6347_v15  ;;  %v4480_v54 = vmul.f32 %v4479_v45, %v4479_v45  ;;  %v4465_v16 = vmov %v6349_v16  ;;  %v4835_v40 = vld [vmem:[%s6632_s28 + $0x28] sm:$0xff]  ;;  %v4836_v45 = vld [vmem:[%s6632_s28 + $0x30] sm:$0xff] }
  0x88   :  { %v4423_v12 = vadd.f32 %v6570_v3, %v4417_v5  ;;  %v4491_v57 = vsel %vm8433_vm0, %v4826_v49, 0.0  ;;  %v4486_v59 = vmul.f32 %v4485_v52, %v4485_v52  ;;  %v4497_v62 = vsel %vm8433_vm0, %v4827_v56, 0.0 }
  0x89   :  { %v4390_v53 = vadd.f32 %v4389_v44, %v4381_v46  ;;  %v4492_v1 = vmul.f32 %v4491_v57, %v4491_v57  ;;  %v4503_v4 = vsel %vm8433_vm0, %v4828_v60, 0.0  ;;  %v4498_v10 = vmul.f32 %v4497_v62, %v4497_v62 }
  0x8a   :  { %v4429_v22 = vadd.f32 %v6576_v6, %v4423_v12  ;;  %v4509_v12 = vsel %vm8433_vm0, %v4829_v2, 0.0  ;;  %v4504_v14 = vmul.f32 %v4503_v4, %v4503_v4  ;;  %v4515_v18 = vsel %vm8433_vm0, %v4830_v11, 0.0 }
  0x8b   :  { %v4399_v58 = vadd.f32 %v4398_v50, %v4390_v53  ;;  %v4540_v26 = vsel %vm8433_vm0, %v4831_v21, 0.0  ;;  %v4549_v31 = vsel %vm8433_vm0, %v4832_v25, 0.0  ;;  %v4837_v50 = vld [vmem:[%s6632_s28 + $0x38] sm:$0xff]  ;;  %v4524_v16 = vmov %v6349_v16 }
  0x8c   :  { %v4435_v28 = vadd.f32 %v6578_v7, %v4429_v22  ;;  %v4532_v22 = vsel %vm8433_vm0, %v4531_v17, 0.0  ;;  %v4541_v34 = vmul.f32 %v4540_v26, %v4540_v26  ;;  %v4550_v39 = vmul.f32 %v4549_v31, %v4549_v31 }
  0x8d   :  { %v4416_v63 = vadd.f32 %v6562_v61, %v4399_v58  ;;  %v4521_v15 = vmov %v6347_v15  ;;  %v4560_v4 = vadd.s32 24, %v4524_v16 }
  0x8e   :  { %v4441_v35 = vadd.f32 %v6582_v9, %v4435_v28  ;;  %vm4534_vm9 = vcmp.eq.s32.totalorder %v4524_v16, %v4521_v15 }
  0x8f   :  { %v4422_v5 = vadd.f32 %v6570_v3, %v4416_v63  ;;  %v4510_v3 = vmul.f32 %v4509_v12, %v4509_v12  ;;  %vm4561_vm12 = vcmp.eq.s32.totalorder %v4560_v4, %v4521_v15 }
  0x90   :  { %v4447_v41 = vadd.f32 %v6598_v29, %v4441_v35  ;;  %v4558_v35 = vsel %vm8433_vm0, %v4833_v30, 0.0 }
  0x91   :  { %v4428_v61 = vadd.f32 %v6576_v6, %v4422_v5  ;;  %v4516_v6 = vmul.f32 %v4515_v18, %v4515_v18  ;;  %v4559_v44 = vmul.f32 %v4558_v35, %v4558_v35 }
  0x92   :  { %v4453_v48 = vadd.f32 %v4451_v36, %v4447_v41 }
  0x93   :  { %v4434_v19 = vadd.f32 %v6578_v7, %v4428_v61  ;;  %v4533_v7 = vmul.f32 %v4532_v22, %v4532_v22  ;;  %v4562_v18 = vsel %vm4561_vm12, 0.0, %v4559_v44 }
  0x94   :  { %v4459_v51 = vadd.f32 %v4457_v42, %v4453_v48 }
  0x95   :  { %v4440_v23 = vadd.f32 %v6582_v9, %v4434_v19  ;;  %v4834_v9 = vld [vmem:[%s6632_s28 + $0x20] sm:$0xff] }
  0x96   :  { %v4476_v55 = vadd.f32 %v4474_v47, %v4459_v51 }
  0x97   :  { %v4446_v27 = vadd.f32 %v6598_v29, %v4440_v23  ;;  %v4567_v29 = vsel %vm8433_vm0, %v4834_v9, 0.0 }
  0x98   :  { %v4482_v0 = vadd.f32 %v4480_v54, %v4476_v55  ;;  %v4568_v49 = vmul.f32 %v4567_v29, %v4567_v29  ;;  %v4542_v55 = vadd.s32 8, %v4524_v16 }
  0x99   :  { %v4452_v32 = vadd.f32 %v4451_v36, %v4446_v27  ;;  %v4576_v36 = vsel %vm8433_vm0, %v4835_v40, 0.0 }
  0x9a   :  { %v4488_v8 = vadd.f32 %v4486_v59, %v4482_v0  ;;  %v4577_v51 = vmul.f32 %v4576_v36, %v4576_v36  ;;  %v4551_v0 = vadd.s32 16, %v4524_v16  ;;  %vm4543_vm10 = vcmp.eq.s32.totalorder %v4542_v55, %v4521_v15 }
  0x9b   :  { %v4458_v37 = vadd.f32 %v4457_v42, %v4452_v32  ;;  %v4585_v42 = vsel %vm8433_vm0, %v4836_v45, 0.0  ;;  %v4544_v12 = vsel %vm4543_vm10, 0.0, %v4541_v34 }
  0x9c   :  { %v4494_v13 = vadd.f32 %v4492_v1, %v4488_v8  ;;  %v4586_v58 = vmul.f32 %v4585_v42, %v4585_v42  ;;  %v4535_v8 = vsel %vm4534_vm9, 0.0, %v4533_v7  ;;  %vm4552_vm11 = vcmp.eq.s32.totalorder %v4551_v0, %v4521_v15 }
  0x9d   :  { %v4475_v41 = vadd.f32 %v4474_v47, %v4458_v37  ;;  %v4594_v47 = vsel %vm8433_vm0, %v4837_v50, 0.0 }
  0x9e   :  { %v4500_v20 = vadd.f32 %v4498_v10, %v4494_v13  ;;  %v4595_v62 = vmul.f32 %v4594_v47, %v4594_v47  ;;  %v4553_v13 = vsel %vm4552_vm11, 0.0, %v4550_v39 }
  0x9f   :  { %v4481_v46 = vadd.f32 %v4480_v54, %v4475_v41 }
  0xa0   :  { %v4506_v24 = vadd.f32 %v4504_v14, %v4500_v20  ;;  %v4596_v20 = vadd.s32 56, %v4524_v16 }
  0xa1   :  { %v4487_v52 = vadd.f32 %v4486_v59, %v4481_v46 }
  0xa2   :  { %v4512_v28 = vadd.f32 %v4510_v3, %v4506_v24  ;;  %vm4597_vm1 = vcmp.eq.s32.totalorder %v4596_v20, %v4521_v15 }
  0xa3   :  { %v4493_v56 = vadd.f32 %v4492_v1, %v4487_v52  ;;  %v4569_v1 = vadd.s32 32, %v4524_v16  ;;  %v4598_v25 = vsel %vm4597_vm1, 0.0, %v4595_v62 }
  0xa4   :  { %v4518_v33 = vadd.f32 %v4516_v6, %v4512_v28 }
  0xa5   :  { %v4499_v54 = vadd.f32 %v4498_v10, %v4493_v56  ;;  %v4578_v10 = vadd.s32 40, %v4524_v16  ;;  %vm4570_vm13 = vcmp.eq.s32.totalorder %v4569_v1, %v4521_v15 }
  0xa6   :  { %v4537_v38 = vadd.f32 %v4533_v7, %v4518_v33 }
  0xa7   :  { %v4505_v63 = vadd.f32 %v4504_v14, %v4499_v54  ;;  %v4587_v14 = vadd.s32 48, %v4524_v16  ;;  %vm4579_vm14 = vcmp.eq.s32.totalorder %v4578_v10, %v4521_v15 }
  0xa8   :  { %v4546_v43 = vadd.f32 %v4541_v34, %v4537_v38  ;;  %v4580_v22 = vsel %vm4579_vm14, 0.0, %v4577_v51 }
  0xa9   :  { %v4511_v2 = vadd.f32 %v4510_v3, %v4505_v63  ;;  %v4571_v3 = vsel %vm4570_vm13, 0.0, %v4568_v49  ;;  %vm4588_vm15 = vcmp.eq.s32.totalorder %v4587_v14, %v4521_v15 }
  0xaa   :  { %v4555_v48 = vadd.f32 %v4550_v39, %v4546_v43  ;;  %v4589_v24 = vsel %vm4588_vm15, 0.0, %v4586_v58 }
  0xab   :  { %v4517_v11 = vadd.f32 %v4516_v6, %v4511_v2 }
  0xac   :  { %v4564_v53 = vadd.f32 %v4559_v44, %v4555_v48 }
  0xad   :  { %v4536_v61 = vadd.f32 %v4535_v8, %v4517_v11 }
  0xae   :  { %v4573_v57 = vadd.f32 %v4568_v49, %v4564_v53 }
  0xaf   :  { %v4545_v17 = vadd.f32 %v4544_v12, %v4536_v61 }
  0xb0   :  { %v4582_v60 = vadd.f32 %v4577_v51, %v4573_v57 }
  0xb1   :  { %v4554_v19 = vadd.f32 %v4553_v13, %v4545_v17 }
  0xb2   :  { %v4591_v59 = vadd.f32 %v4586_v58, %v4582_v60 }
  0xb3   :  { %v4563_v21 = vadd.f32 %v4562_v18, %v4554_v19 }
  0xb4   :  { %v4600_v5 = vadd.f32 %v4595_v62, %v4591_v59 }
  0xb5   :  { %v4572_v23 = vadd.f32 %v4571_v3, %v4563_v21 }
  0xb6   :  { %4601 = vadd.xlane.f32.xlu0 %v4600_v5 }
  0xb7   :  { %v4581_v6 = vadd.f32 %v4580_v22, %v4572_v23 }
  0xb9   :  { %v4590_v26 = vadd.f32 %v4589_v24, %v4581_v6 }
  0xbb   :  { %v4599_v27 = vadd.f32 %v4598_v25, %v4590_v26 }
  0xbd   :  { %4609 = vadd.xlane.f32.xlu0 %v4599_v27 }
 0x143   :  { %v4602_v28 = vpop.xlane.xlu0 %4601 }
 0x144   :  { %v4603_v7 = vrot.slane %v4602_v28, 4 }
 0x146   :  { %v4604_v30 = vadd.f32 %v4603_v7, %v4602_v28 }
 0x148   :  { %v4605_v31 = vrot.slane %v4604_v30, 2 }
 0x14a   :  { %v4610_v32 = vpop.xlane.xlu0 %4609  ;;  %v4606_v9 = vadd.f32 %v4605_v31, %v4604_v30 }
 0x14b   :  { %v4611_v33 = vrot.slane %v4610_v32, 4 }
 0x14c   :  { %v4607_v38 = vrot.slane %v4606_v9, 1 }
 0x14d   :  { %v4612_v34 = vadd.f32 %v4611_v33, %v4610_v32 }
 0x14e   :  { %v4608_v29 = vadd.f32 %v4607_v38, %v4606_v9 }
 0x14f   :  { %v4613_v35 = vrot.slane %v4612_v34, 2 }
 0x151   :  { %v4614_v37 = vadd.f32 %v4613_v35, %v4612_v34 }
 0x153   :  { %v4615_v39 = vrot.slane %v4614_v37, 1 }
 0x155   :  { %v4616_v40 = vadd.f32 %v4615_v39, %v4614_v37 }
 0x157   :  { %5457 = vpush %v4616_v40 }
 0x158   :  { %5459 = vpush %v4608_v29 }
 0x188   :  { %s5458_s29 = spop %5457 }
 0x189   :  { %s5460_s30 = spop %5459 }
 0x18a   :  { %s4619_s1 = smul.f32 1e-10, %s5460_s30 }
 0x18c   :  { %p4620_p8 = scmp.le.f32.partialorder %s5458_s29, %s4619_s1 }
 0x18d   :  { %s6670_s10 = smov (!%p4620_p8), 0  }
 0x18e   :  { %4623 = sbr.rel (%p4620_p8) target bundleno = 1464 (0x5b8), region = 923 }
 0x195 LB: > { %8446 = sst [smem:[#allocation25_spill]] %s6210_s10  ;;  %s6675_s11 = smov 0   ;;  %s6210_s10 = sphi %s6670_s10, %s8545_s10  }
 0x196 LB: >> { %8447 = sst [smem:[#allocation26_spill]] %s6214_s11  ;;  %s6214_s11 = sphi %s6675_s11, %s894_s11  }
 0x197   : >> { %s6680_s12 = smov [#allocation12]  ;;  %v899_v15 = vmov %v6347_v15  ;;  %v902_v16 = vmov %v6349_v16  ;;  %s6693_s13 = smov [#allocation13] }
 0x198   : >> { %v6685_v15 = vmov %v6347_v15  ;;  %v964_v16 = vmov %v6349_v16  ;;  %v903_v41 = vld [vmem:[%s6680_s12] sm:$0xff]  ;;  %vm906_vm2 = vcmp.eq.s32.totalorder %v902_v16, %v899_v15  ;;  %v4838_v43 = vld [vmem:[%s6680_s12 + $0x8] sm:$0xff]  ;;  %v911_v44 = vadd.s32 8, %v902_v16  ;;  %v4839_v48 = vld [vmem:[%s6680_s12 + $0x10] sm:$0xff]  ;;  %s6707_s14 = smov [#allocation15]  ;;  %s896_s15 = smov [#allocation16] }
 0x199   : >> { %v917_v45 = vadd.s32 16, %v902_v16  ;;  %v923_v36 = vadd.s32 24, %v902_v16  ;;  %v907_v46 = vsel %vm906_vm2, %v903_v41, 0.0  ;;  %v929_v49 = vadd.s32 32, %v902_v16  ;;  %v4840_v42 = vld [vmem:[%s6680_s12 + $0x18] sm:$0xff]  ;;  %v4841_v51 = vld [vmem:[%s6680_s12 + $0x20] sm:$0xff] }
 0x19a   : >> { %v935_v50 = vadd.s32 40, %v902_v16  ;;  %vm968_vm3 = vcmp.eq.s32.totalorder %v964_v16, %v6685_v15  ;;  %vm912_vm4 = vcmp.eq.s32.totalorder %v911_v44, %v899_v15  ;;  %v941_v52 = vadd.s32 48, %v902_v16  ;;  %v965_v56 = vld [vmem:[%s6693_s13] sm:$0xff]  ;;  %v4842_v58 = vld [vmem:[%s6680_s12 + $0x28] sm:$0xff]  ;;  %v4843_v63 = vld [vmem:[%s6680_s12 + $0x30] sm:$0xff]  ;;  %s958_s16 = smov [#allocation17] }
 0x19b   : >> { %vm918_vm5 = vcmp.eq.s32.totalorder %v917_v45, %v899_v15  ;;  %vm924_vm6 = vcmp.eq.s32.totalorder %v923_v36, %v899_v15  ;;  %v913_v53 = vsel %vm912_vm4, %v4838_v43, %v907_v46  ;;  %vm930_vm7 = vcmp.eq.s32.totalorder %v929_v49, %v899_v15  ;;  %v4845_v55 = vld [vmem:[%s6693_s13 + $0x8] sm:$0xff]  ;;  %v4846_v0 = vld [vmem:[%s6693_s13 + $0x10] sm:$0xff]  ;;  %v4844_v5 = vld [vmem:[%s6680_s12 + $0x38] sm:$0xff]  ;;  %s1085_s17 = smov [#allocation17]  ;;  %s1020_s2 = smov [#allocation18] }
 0x19c   : >> { %vm936_vm8 = vcmp.eq.s32.totalorder %v935_v50, %v899_v15  ;;  %v947_v47 = vadd.s32 56, %v902_v16  ;;  %v919_v57 = vsel %vm918_vm5, %v4839_v48, %v913_v53  ;;  %vm942_vm9 = vcmp.eq.s32.totalorder %v941_v52, %v899_v15  ;;  %v4847_v8 = vld [vmem:[%s6693_s13 + $0x18] sm:$0xff]  ;;  %v4848_v10 = vld [vmem:[%s6693_s13 + $0x20] sm:$0xff]  ;;  %v4849_v14 = vld [vmem:[%s6693_s13 + $0x28] sm:$0xff]  ;;  %s1083_s18 = smov [#allocation16]  ;;  %s1087_s19 = smov [#allocation18] }
 0x19d   : >> { %v969_v54 = vsel %vm968_vm3, %v965_v56, 0.0  ;;  %v973_v60 = vadd.s32 8, %v964_v16  ;;  %v925_v62 = vsel %vm924_vm6, %v4840_v42, %v919_v57  ;;  %v979_v59 = vadd.s32 16, %v964_v16  ;;  %v4850_v20 = vld [vmem:[%s6693_s13 + $0x30] sm:$0xff]  ;;  %v1027_v22 = vld [vmem:[%s6707_s14] sm:$0xff]  ;;  %v4851_v6 = vld [vmem:[%s6693_s13 + $0x38] sm:$0xff] }
 0x19e   : >> { %vm948_vm10 = vcmp.eq.s32.totalorder %v947_v47, %v899_v15  ;;  %v985_v2 = vadd.s32 24, %v964_v16  ;;  %v931_v4 = vsel %vm930_vm7, %v4841_v51, %v925_v62  ;;  %v991_v11 = vadd.s32 32, %v964_v16  ;;  %v4852_v7 = vld [vmem:[%s6707_s14 + $0x8] sm:$0xff]  ;;  %v4853_v32 = vld [vmem:[%s6707_s14 + $0x10] sm:$0xff]  ;;  %v4854_v38 = vld [vmem:[%s6707_s14 + $0x18] sm:$0xff]  ;;  %s1122_s20 = smov [#allocation19] }
 0x19f   : >> { %vm974_vm11 = vcmp.eq.s32.totalorder %v973_v60, %v6685_v15  ;;  %v997_v1 = vadd.s32 40, %v964_v16  ;;  %v937_v12 = vsel %vm936_vm8, %v4842_v58, %v931_v4  ;;  %vm980_vm12 = vcmp.eq.s32.totalorder %v979_v59, %v6685_v15  ;;  %v4855_v29 = vld [vmem:[%s6707_s14 + $0x20] sm:$0xff]  ;;  %v4856_v45 = vld [vmem:[%s6707_s14 + $0x28] sm:$0xff]  ;;  %v4857_v46 = vld [vmem:[%s6707_s14 + $0x30] sm:$0xff]  ;;  %s1124_s21 = smov [#allocation20]  ;;  %s1081_s3 = smov [#allocation21] }
 0x1a0   : >> { %v975_v61 = vsel %vm974_vm11, %v4845_v55, %v969_v54  ;;  %vm986_vm13 = vcmp.eq.s32.totalorder %v985_v2, %v6685_v15  ;;  %v943_v13 = vsel %vm942_vm9, %v4843_v63, %v937_v12  ;;  %vm992_vm14 = vcmp.eq.s32.totalorder %v991_v11, %v6685_v15  ;;  %v4858_v53 = vld [vmem:[%s6707_s14 + $0x38] sm:$0xff]  ;;  %s1082_s22 = smov [#allocation22]  ;;  %s1126_s3 = smov %s1081_s3 }
 0x1a1   : >> { %v981_v17 = vsel %vm980_vm12, %v4846_v0, %v975_v61  ;;  %vm998_vm15 = vcmp.eq.s32.totalorder %v997_v1, %v6685_v15  ;;  %v949_v18 = vsel %vm948_vm10, %v4844_v5, %v943_v13  ;;  %v1003_v3 = vadd.s32 48, %v964_v16  ;;  %s1128_s22 = smov %s1082_s22  ;;  %s1145_s0 = smov [#allocation21] }
 0x1a2   : >> { %v987_v19 = vsel %vm986_vm13, %v4847_v8, %v981_v17  ;;  %v1009_v21 = vadd.s32 56, %v964_v16  ;;  %v950_v23 = vrot.slane %v949_v18, 4  ;;  %v1023_v15 = vmov %v6347_v15  ;;  %s1130_s23 = smov [#allocation21]  ;;  %s1161_s24 = smov [#allocation21] }
 0x1a3   : >> { %v993_v24 = vsel %vm992_vm14, %v4848_v10, %v987_v19  ;;  %v1026_v16 = vmov %v6349_v16  ;;  %vm1004_vm1 = vcmp.eq.s32.totalorder %v1003_v3, %v6685_v15  ;;  %s1272_s25 = smov [#allocation22]  ;;  %s1177_s26 = smov [#allocation21] }
 0x1a4   : >> { %v999_v25 = vsel %vm998_vm15, %v4849_v14, %v993_v24  ;;  %vm1010_vm2 = vcmp.eq.s32.totalorder %v1009_v21, %v6685_v15  ;;  %vm1030_vm3 = vcmp.eq.s32.totalorder %v1026_v16, %v1023_v15  ;;  %v951_v26 = vadd.f32 %v950_v23, %v949_v18  ;;  %s1288_s27 = smov [#allocation22]  ;;  %s1193_s28 = smov [#allocation21] }
 0x1a5   : >> { %v1005_v27 = vsel %vm1004_vm1, %v4850_v20, %v999_v25  ;;  %v1031_v28 = vsel %vm1030_vm3, %v1027_v22, 0.0  ;;  %v1035_v30 = vadd.s32 8, %v1026_v16  ;;  %v1041_v33 = vadd.s32 16, %v1026_v16  ;;  %s1304_s29 = smov [#allocation22]  ;;  %s1209_s30 = smov [#allocation21] }
 0x1a6   : >> { %v1011_v31 = vsel %vm1010_vm2, %v4851_v6, %v1005_v27  ;;  %v1047_v34 = vadd.s32 24, %v1026_v16  ;;  %v1053_v9 = vadd.s32 32, %v1026_v16  ;;  %v952_v35 = vrot.slane %v951_v26, 2  ;;  %s1320_s1 = smov [#allocation22]  ;;  %s1336_s12 = smov [#allocation22] }
 0x1a7   : >> { %v1012_v37 = vrot.slane %v1011_v31, 4  ;;  %vm1036_vm4 = vcmp.eq.s32.totalorder %v1035_v30, %v1023_v15  ;;  %v1059_v39 = vadd.s32 40, %v1026_v16  ;;  %vm1042_vm5 = vcmp.eq.s32.totalorder %v1041_v33, %v1023_v15  ;;  %s1257_s13 = smov [#allocation22]  ;;  %s1352_s14 = smov [#allocation22] }
 0x1a8   : >> { %v1037_v40 = vsel %vm1036_vm4, %v4852_v7, %v1031_v28  ;;  %vm1048_vm6 = vcmp.eq.s32.totalorder %v1047_v34, %v1023_v15  ;;  %vm1054_vm7 = vcmp.eq.s32.totalorder %v1053_v9, %v1023_v15  ;;  %v953_v41 = vadd.f32 %v952_v35, %v951_v26  ;;  %s7771_s9 = smov [#allocation14]  ;;  %s7777_s8 = smov [#allocation12] }
 0x1a9   : >> { %v1013_v43 = vadd.f32 %v1012_v37, %v1011_v31  ;;  %v1043_v44 = vsel %vm1042_vm5, %v4853_v32, %v1037_v40  ;;  %vm1060_vm8 = vcmp.eq.s32.totalorder %v1059_v39, %v1023_v15  ;;  %v1065_v48 = vadd.s32 48, %v1026_v16  ;;  %s7781_s7 = smov [#allocation13]  ;;  %s7789_s6 = smov [#allocation15] }
 0x1aa   : >> { %v1049_v36 = vsel %vm1048_vm6, %v4854_v38, %v1043_v44  ;;  %v1071_v49 = vadd.s32 56, %v1026_v16  ;;  %v954_v50 = vrot.slane %v953_v41, 1  ;;  %v1152_v16 = vmov %v6349_v16  ;;  %8457 = sst [smem:[#allocation27_spill]] %s7781_s7  ;;  %s7795_s5 = smov [#allocation14] }
 0x1ab   : >> { %v1014_v42 = vrot.slane %v1013_v43, 2  ;;  %v1055_v52 = vsel %vm1054_vm7, %v4855_v29, %v1049_v36  ;;  %vm1066_vm9 = vcmp.eq.s32.totalorder %v1065_v48, %v1023_v15  ;;  %v1168_v16 = vmov %v6349_v16  ;;  %8458 = sst [smem:[#allocation28_spill]] %s7795_s5  ;;  %s7801_s4 = smov [#allocation12] }
 0x1ac   : >> { %v1061_v51 = vsel %vm1060_vm8, %v4856_v45, %v1055_v52  ;;  %vm1072_vm10 = vcmp.eq.s32.totalorder %v1071_v49, %v1023_v15  ;;  %v955_v47 = vadd.f32 %v954_v50, %v953_v41  ;;  %v1279_v16 = vmov %v6349_v16  ;;  %s7805_s10 = smov [#allocation13]  ;;  %s7813_s11 = smov [#allocation15] }
 0x1ad   : >> { %v1015_v56 = vadd.f32 %v1014_v42, %v1013_v43  ;;  %v1067_v57 = vsel %vm1066_vm9, %v4857_v46, %v1061_v51  ;;  %v1153_v35 = vadd.s32 8, %v1152_v16  ;;  %v1149_v15 = vmov %v6347_v15  ;;  %8459 = sst [smem:[#allocation29_spill]] %s7805_s10 }
 0x1ae   : >> { %v1073_v58 = vsel %vm1072_vm10, %v4858_v53, %v1067_v57  ;;  %956 = vst [vmem:[%s896_s15] sm:$0x1] %v955_v47  ;;  %v1134_v15 = vmov %v6347_v15  ;;  %v1137_v16 = vmov %v6349_v16  ;;  %v1169_v37 = vadd.s32 16, %v1168_v16  ;;  %s1225_s15 = smov [#allocation21] }
 0x1af   : >> { %v1016_v54 = vrot.slane %v1015_v56, 1  ;;  %v1074_v55 = vrot.slane %v1073_v58, 4  ;;  %v1165_v15 = vmov %v6347_v15  ;;  %v1280_v38 = vadd.s32 8, %v1279_v16 }
 0x1b0   : >> { %v1276_v15 = vmov %v6347_v15  ;;  %v1184_v16 = vmov %v6349_v16  ;;  %vm1154_vm15 = vcmp.eq.s32.totalorder %v1153_v35, %v1149_v15  ;;  %vm1139_vm1 = vcmp.eq.s32.totalorder %v1137_v16, %v1134_v15 }
 0x1b1   : >> { %v1017_v60 = vadd.f32 %v1016_v54, %v1015_v56  ;;  %v1075_v62 = vadd.f32 %v1074_v55, %v1073_v58  ;;  %v1295_v16 = vmov %v6349_v16  ;;  %vm1170_vm2 = vcmp.eq.s32.totalorder %v1169_v37, %v1165_v15 }
 0x1b2   : >> { %v1181_v15 = vmov %v6347_v15  ;;  %vm1281_vm3 = vcmp.eq.s32.totalorder %v1280_v38, %v1276_v15  ;;  %v1185_v29 = vadd.s32 24, %v1184_v16  ;;  %v1296_v41 = vadd.s32 16, %v1295_v16 }
 0x1b3   : >> { %1018 = vst [vmem:[%s958_s16] sm:$0x1] %v1017_v60  ;;  %v1076_v63 = vrot.slane %v1075_v62, 2  ;;  %v1292_v15 = vmov %v6347_v15  ;;  %v1200_v16 = vmov %v6349_v16  ;;  %s1368_s16 = smov [#allocation22] }
 0x1b4   : >> { %v1311_v16 = vmov %v6349_v16  ;;  %vm1186_vm4 = vcmp.eq.s32.totalorder %v1185_v29, %v1181_v15  ;;  %vm1297_vm5 = vcmp.eq.s32.totalorder %v1296_v41, %v1292_v15  ;;  %v1201_v42 = vadd.s32 32, %v1200_v16 }
 0x1b5   : >> { %v1077_v0 = vadd.f32 %v1076_v63, %v1075_v62  ;;  %v1084_v8 = vld [vmem:[%s1083_s18] sm:$0xff]  ;;  %v1312_v52 = vadd.s32 24, %v1311_v16  ;;  %v1197_v15 = vmov %v6347_v15  ;;  %v1216_v16 = vmov %v6349_v16  ;;  %s1158_s18 = smov [#allocation23] }
 0x1b6   : >> { %v1107_v21 = vand.u32 2147483647, %v1084_v8  ;;  %v1308_v15 = vmov %v6347_v15  ;;  %v1327_v16 = vmov %v6349_v16  ;;  %vm1202_vm6 = vcmp.eq.s32.totalorder %v1201_v42, %v1197_v15 }
 0x1b7   : >> { %v1078_v59 = vrot.slane %v1077_v0, 1  ;;  %vm1313_vm7 = vcmp.eq.s32.totalorder %v1312_v52, %v1308_v15  ;;  %v1217_v57 = vadd.s32 40, %v1216_v16  ;;  %v1328_v58 = vadd.s32 32, %v1327_v16 }
 0x1b8   : >> { %v1213_v15 = vmov %v6347_v15  ;;  %v1343_v16 = vmov %v6349_v16 }
 0x1b9   : >> { %v1079_v2 = vadd.f32 %v1078_v59, %v1077_v0  ;;  %v1324_v15 = vmov %v6347_v15  ;;  %vm1218_vm8 = vcmp.eq.s32.totalorder %v1217_v57, %v1213_v15  ;;  %v1344_v63 = vadd.s32 40, %v1343_v16 }
 0x1ba   : >> { %v1086_v4 = vld [vmem:[%s1085_s17] sm:$0xff]  ;;  %vm1329_vm9 = vcmp.eq.s32.totalorder %v1328_v58, %v1324_v15  ;;  %v1340_v15 = vmov %v6347_v15  ;;  %v1264_v16 = vmov %v6349_v16  ;;  %s1241_s17 = smov [#allocation21] }
 0x1bb   : >> { %1080 = vst [vmem:[%s1020_s2] sm:$0x1] %v1079_v2  ;;  %v1090_v5 = vmul.f32 2.0, %v1086_v4  ;;  %v1108_v25 = vand.u32 2147483647, %v1086_v4  ;;  %v1261_v15 = vmov %v6347_v15  ;;  %v1359_v16 = vmov %v6349_v16  ;;  %s1143_s2 = smov [#allocation23] }
 0x1bc   : >> { %v1232_v16 = vmov %v6349_v16  ;;  %vm1345_vm10 = vcmp.eq.s32.totalorder %v1344_v63, %v1340_v15 }
 0x1bd   : >> { %5936 = vrcp.f32 %v1090_v5  ;;  %v1360_v5 = vadd.s32 48, %v1359_v16 }
 0x1c2   : >> { %v1088_v11 = vld [vmem:[%s1087_s19] sm:$0xff]  ;;  %s1174_s19 = smov [#allocation23] }
 0x1c3   : >> { %v1089_v1 = vsub.f32 %v1088_v11, %v1084_v8  ;;  %v1109_v22 = vand.u32 2147483647, %v1088_v11 }
 0x1c5   : >> { %v1110_v6 = vmin.f32 %v1107_v21, %v1109_v22 }
 0x1c7   : >> { %v5937_v12 = vpop.eup %5936  ;;  %v1111_v26 = vmul.f32 1.1920929e-08, %v1110_v6 }
 0x1c8   : >> { %v1092_v61 = vmul.f32 %v5937_v12, %v1089_v1 }
 0x1c9   : >> { %vm1112_vm14 = vcmp.le.f32.partialorder %v1108_v25, %v1111_v26 }
 0x1ca   : >> { %v1094_v10 = vmul.f32 %v1092_v61, %v1092_v61  ;;  %vm1093_vm13 = vcmp.ge.f32.partialorder %v1092_v61, 0.0 }
 0x1cc   : >> { %v1095_v13 = vadd.f32 1.0, %v1094_v10 }
 0x1ce   : >> { %5938 = vrsqrt.f32 %v1095_v13  ;;  %vm1098_vm11 = vcmp.eq.f32.partialorder %v1095_v13, inf  ;;  %v1101_v14 = vand.u32 2147483648, %v1095_v13  ;;  %vm1100_vm12 = vcmp.eq.f32.partialorder %v1095_v13, 0.0 }
 0x1d8   : >> { %v5939_v17 = vpop.eup %5938 }
 0x1d9   : >> { %v1097_v18 = vmul.f32 %v5939_v17, %v1095_v13 }
 0x1db   : >> { %v1099_v19 = vsel %vm1098_vm11, %v1095_v13, %v1097_v18  ;;  %vm1266_vm11 = vcmp.eq.s32.totalorder %v1264_v16, %v1261_v15  ;;  %v1356_v15 = vmov %v6347_v15 }
 0x1dc   : >> { %v1102_v20 = vsel %vm1100_vm12, %v1101_v14, %v1099_v19  ;;  %v1229_v15 = vmov %v6347_v15  ;;  %vm1361_vm12 = vcmp.eq.s32.totalorder %v1360_v5, %v1356_v15 }
 0x1dd   : >> { %v1103_v3 = vxor.u32 2147483648, %v1102_v20 }
 0x1df   : >> { %v1104_v23 = vsel %vm1093_vm13, %v1102_v20, %v1103_v3 }
 0x1e0   : >> { %v1105_v24 = vadd.f32 %v1104_v23, %v1092_v61 }
 0x1e2   : >> { %5940 = vrcp.f32 %v1105_v24 }
 0x1ec   : >> { %v5941_v27 = vpop.eup %5940 }
 0x1ed   : >> { %v1113_v28 = vsel %vm1112_vm14, 0.0, %v5941_v27 }
 0x1ee   : >> { %v1114_v7 = vmul.f32 %v1113_v28, %v1113_v28  ;;  %v1118_v30 = vmul.f32 %v1113_v28, %v1086_v4 }
 0x1f0   : >> { %v1115_v31 = vadd.f32 1.0, %v1114_v7  ;;  %v1119_v32 = vsub.f32 %v1084_v8, %v1118_v30  ;;  %v1121_v33 = vadd.f32 %v1118_v30, %v1088_v11  ;;  %v1233_v8 = vadd.s32 48, %v1232_v16 }
 0x1f1   : >> { %v1375_v16 = vmov %v6349_v16 }
 0x1f2   : >> { %5942 = vrsqrt.f32 %v1115_v31  ;;  %1123 = vst [vmem:[%s1122_s20] sm:$0xff] %v1119_v32  ;;  %1125 = vst [vmem:[%s1124_s21] sm:$0xff] %v1121_v33  ;;  %v1248_v16 = vmov %v6349_v16  ;;  %vm1234_vm13 = vcmp.eq.s32.totalorder %v1233_v8, %v1229_v15  ;;  %v1376_v10 = vadd.s32 56, %v1375_v16  ;;  %s1190_s20 = smov [#allocation23]  ;;  %s1206_s21 = smov [#allocation23] }
 0x1f3   : >> { %v1249_v13 = vadd.s32 56, %v1248_v16  ;;  %v1372_v15 = vmov %v6347_v15 }
 0x1f4   : >> { %v1245_v15 = vmov %v6347_v15  ;;  %vm1377_vm14 = vcmp.eq.s32.totalorder %v1376_v10, %v1372_v15 }
 0x1fc   : >> { %v5943_v34 = vpop.eup %5942 }
 0x1fd   : >> { %1127 = vst [vmem:[%s1126_s3] sm:$0xff] %v5943_v34  ;;  %v1117_v9 = vmul.f32 %v5943_v34, %v1113_v28  ;;  %s1222_s3 = smov [#allocation23] }
 0x1ff   : >> { %1129 = vst [vmem:[%s1128_s22] sm:$0xff] %v1117_v9  ;;  %s1270_s22 = smov [#allocation24] }
 0x204   : >> { %v1146_v39 = vld [vmem:[%s1145_s0] ss:$0 sm:$0xff]  ;;  %s1285_s0 = smov [#allocation24] }
 0x205   : >> { %v1131_v40 = vld [vmem:[%s1130_s23] ss:$0 sm:$0xff]  ;;  %v1155_v43 = vsel %vm1154_vm15, %v1146_v39, 0.0  ;;  %vm1250_vm15 = vcmp.eq.s32.totalorder %v1249_v13, %v1245_v15  ;;  %s1301_s23 = smov [#allocation24]  ;;  %v7295_v15 = vmov %v6347_v15 }
 0x206   : >> { %v1140_v44 = vsel %vm1139_vm1, %v1131_v40, 0.0  ;;  %v1162_v45 = vld [vmem:[%s1161_s24] ss:$0 sm:$0xff]  ;;  %1156 = vadd.xlane.f32.xlu1 %v1155_v43  ;;  %s1317_s24 = smov [#allocation24]  ;;  %vm8432_vm1 = vcmp.eq.s32.totalorder %v6349_v16, 0  ;;  %v7298_v15 = vmov %v6347_v15 }
 0x207   : >> { %1141 = vadd.xlane.f32.xlu0 %v1140_v44  ;;  %v1273_v36 = vld [vmem:[%s1272_s25] ss:$0 sm:$0xff]  ;;  %v1171_v46 = vsel %vm1170_vm2, %v1162_v45, 0.0  ;;  %s1333_s25 = smov [#allocation24]  ;;  %vm8431_vm2 = vcmp.eq.s32.totalorder %v6349_v16, 7  ;;  %v7288_v16 = vmov %v6349_v16 }
 0x208   : >> { %v1282_v48 = vsel %vm1281_vm3, %v1273_v36, 0.0  ;;  %v1178_v49 = vld [vmem:[%s1177_s26] ss:$0 sm:$0xff]  ;;  %s1238_s26 = smov [#allocation23]  ;;  %vm1886_vm3 = vcmp.eq.s32.totalorder %v7288_v16, %v7295_v15 }
 0x209   : >> { %v1289_v50 = vld [vmem:[%s1288_s27] ss:$0 sm:$0xff]  ;;  %v1187_v53 = vsel %vm1186_vm4, %v1178_v49, 0.0  ;;  %s1349_s27 = smov [#allocation24] }
 0x20a   : >> { %1283 = vadd.xlane.f32.xlu1 %v1282_v48  ;;  %v1298_v51 = vsel %vm1297_vm5, %v1289_v50, 0.0  ;;  %v1194_v47 = vld [vmem:[%s1193_s28] ss:$0 sm:$0xff]  ;;  %s1365_s28 = smov [#allocation24] }
 0x20b   : >> { %1172 = vadd.xlane.f32.xlu0 %v1171_v46  ;;  %v1305_v56 = vld [vmem:[%s1304_s29] ss:$0 sm:$0xff]  ;;  %v1203_v54 = vsel %vm1202_vm6, %v1194_v47, 0.0  ;;  %s1381_s29 = smov [#allocation24] }
 0x20c   : >> { %v1314_v55 = vsel %vm1313_vm7, %v1305_v56, 0.0  ;;  %v1210_v60 = vld [vmem:[%s1209_s30] ss:$0 sm:$0xff]  ;;  %s1254_s30 = smov [#allocation23] }
 0x20d   : >> { %v1321_v62 = vld [vmem:[%s1320_s1] ss:$0 sm:$0xff]  ;;  %v1219_v0 = vsel %vm1218_vm8, %v1210_v60, 0.0  ;;  %s1386_s1 = smov [#allocation24] }
 0x20e   : >> { %1299 = vadd.xlane.f32.xlu1 %v1298_v51  ;;  %v1330_v59 = vsel %vm1329_vm9, %v1321_v62, 0.0  ;;  %v1337_v2 = vld [vmem:[%s1336_s12] ss:$0 sm:$0xff]  ;;  %s6765_s12 = smov [#allocation12] }
 0x20f   : >> { %1188 = vadd.xlane.f32.xlu0 %v1187_v53  ;;  %v1258_v4 = vld [vmem:[%s1257_s13] ss:$0 sm:$0xff]  ;;  %v1346_v11 = vsel %vm1345_vm10, %v1337_v2, 0.0  ;;  %s6767_s13 = smov [#allocation13] }
 0x210   : >> { %v1267_v1 = vsel %vm1266_vm11, %v1258_v4, 0.0  ;;  %v1353_v12 = vld [vmem:[%s1352_s14] ss:$0 sm:$0xff]  ;;  %s6769_s14 = smov [#allocation14] }
 0x211   : >> { %v1226_v61 = vld [vmem:[%s1225_s15] ss:$0 sm:$0xff]  ;;  %v1362_v17 = vsel %vm1361_vm12, %v1353_v12, 0.0  ;;  %s6771_s15 = smov [#allocation15] }
 0x212   : >> { %1315 = vadd.xlane.f32.xlu1 %v1314_v55  ;;  %v1235_v14 = vsel %vm1234_vm13, %v1226_v61, 0.0  ;;  %v1369_v18 = vld [vmem:[%s1368_s16] ss:$0 sm:$0xff]  ;;  %s3010_s16 = smov [#allocation24] }
 0x213   : >> { %1204 = vadd.xlane.f32.xlu0 %v1203_v54  ;;  %v1242_v19 = vld [vmem:[%s1241_s17] ss:$0 sm:$0xff]  ;;  %v1378_v20 = vsel %vm1377_vm14, %v1369_v18, 0.0  ;;  %s6775_s17 = smov [#allocation8] }
 0x214   : >> { %v1251_v3 = vsel %vm1250_vm15, %v1242_v19, 0.0  ;;  %v1392_v35 = vld [vmem:[%s6765_s12] sm:$0xff] }
 0x215   : >> { %v1393_v37 = vld [vmem:[%s6767_s13] sm:$0xff] }
 0x216   : >> { %1331 = vadd.xlane.f32.xlu1 %v1330_v59  ;;  %v1394_v38 = vld [vmem:[%s6769_s14] sm:$0xff] }
 0x217   : >> { %1220 = vadd.xlane.f32.xlu0 %v1219_v0  ;;  %v1395_v39 = vld [vmem:[%s6771_s15] sm:$0xff] }
 0x218   : >> { %v3016_v29 = vld [vmem:[%s6775_s17] sm:$0xff] }
 0x21a   : >> { %1347 = vadd.xlane.f32.xlu1 %v1346_v11 }
 0x21b   : >> { %1268 = vadd.xlane.f32.xlu0 %v1267_v1 }
 0x21e   : >> { %1363 = vadd.xlane.f32.xlu1 %v1362_v17 }
 0x21f   : >> { %1236 = vadd.xlane.f32.xlu0 %v1235_v14 }
 0x222   : >> { %1379 = vadd.xlane.f32.xlu1 %v1378_v20 }
 0x223   : >> { %1252 = vadd.xlane.f32.xlu0 %v1251_v3 }
 0x293   : >> { %v1157_v21 = vpop.xlane.xlu1 %1156 }
 0x294   : >> { %v1142_v22 = vpop.xlane.xlu0 %1141 }
 0x295   : >> { %1144 = vst [vmem:[%s1143_s2] sm:$0xff] %v1142_v22  ;;  %s6777_s2 = smov [#allocation9] }
 0x296   : >> { %4859 = vst [vmem:[%s1158_s18 + $0x8] sm:$0xff] %v1157_v21  ;;  %s6781_s18 = smov [#allocation10]  ;;  %v3017_v41 = vld [vmem:[%s6777_s2] sm:$0xff] }
 0x297   : >> { %v1284_v24 = vpop.xlane.xlu1 %1283  ;;  %v3018_v43 = vld [vmem:[%s6781_s18] sm:$0xff] }
 0x298   : >> { %v1173_v23 = vpop.xlane.xlu0 %1172 }
 0x299   : >> { %4860 = vst [vmem:[%s1174_s19 + $0x10] sm:$0xff] %v1173_v23  ;;  %s6783_s19 = smov [#allocation11] }
 0x29a   : >> { %v3019_v44 = vld [vmem:[%s6783_s19] sm:$0xff] }
 0x29b   : >> { %v1300_v25 = vpop.xlane.xlu1 %1299 }
 0x29c   : >> { %v1189_v6 = vpop.xlane.xlu0 %1188 }
 0x29d   : >> { %4861 = vst [vmem:[%s1190_s20 + $0x18] sm:$0xff] %v1189_v6  ;;  %s1384_s20 = smov [#allocation23] }
 0x29f   : >> { %v1316_v27 = vpop.xlane.xlu1 %1315 }
 0x2a0   : >> { %v1205_v26 = vpop.xlane.xlu0 %1204 }
 0x2a1   : >> { %4862 = vst [vmem:[%s1206_s21 + $0x20] sm:$0xff] %v1205_v26  ;;  %s3008_s21 = smov [#allocation23] }
 0x2a3   : >> { %v1332_v7 = vpop.xlane.xlu1 %1331 }
 0x2a4   : >> { %v1221_v28 = vpop.xlane.xlu0 %1220 }
 0x2a5   : >> { %4863 = vst [vmem:[%s1222_s3 + $0x28] sm:$0xff] %v1221_v28  ;;  %s1415_s3 = smov [#allocation24] }
 0x2a7   : >> { %v1348_v30 = vpop.xlane.xlu1 %1347 }
 0x2a8   : >> { %v1269_v31 = vpop.xlane.xlu0 %1268 }
 0x2a9   : >> { %1271 = vst [vmem:[%s1270_s22] sm:$0xff] %v1269_v31  ;;  %s6793_s22 = smov [#allocation12] }
 0x2aa   : >> { %4866 = vst [vmem:[%s1285_s0 + $0x8] sm:$0xff] %v1284_v24  ;;  %s1412_s0 = smov [#allocation23] }
 0x2ab   : >> { %4867 = vst [vmem:[%s1301_s23 + $0x10] sm:$0xff] %v1300_v25  ;;  %v1364_v32 = vpop.xlane.xlu1 %1363  ;;  %s6799_s23 = smov [#allocation13] }
 0x2ac   : >> { %4868 = vst [vmem:[%s1317_s24 + $0x18] sm:$0xff] %v1316_v27  ;;  %v1237_v33 = vpop.xlane.xlu0 %1236  ;;  %s6801_s24 = smov [#allocation14] }
 0x2ad   : >> { %4869 = vst [vmem:[%s1333_s25 + $0x20] sm:$0xff] %v1332_v7  ;;  %4864 = vst [vmem:[%s1238_s26 + $0x30] sm:$0xff] %v1237_v33  ;;  %s6803_s25 = smov [#allocation15]  ;;  %s3036_s26 = smov [#allocation23] }
 0x2ae   : >> { %4870 = vst [vmem:[%s1349_s27 + $0x28] sm:$0xff] %v1348_v30  ;;  %s6805_s27 = smov [#allocation8] }
 0x2af   : >> { %4871 = vst [vmem:[%s1365_s28 + $0x30] sm:$0xff] %v1364_v32  ;;  %v1380_v34 = vpop.xlane.xlu1 %1379  ;;  %s6807_s28 = smov [#allocation9] }
 0x2b0   : >> { %v1253_v9 = vpop.xlane.xlu0 %1252  ;;  %4872 = vst [vmem:[%s1381_s29 + $0x38] sm:$0xff] %v1380_v34  ;;  %s6809_s29 = smov [#allocation10] }
 0x2b1   : >> { %4865 = vst [vmem:[%s1254_s30 + $0x38] sm:$0xff] %v1253_v9  ;;  %s3039_s30 = smov [#allocation24] }
 0x2b7   : >> { %v1387_v40 = vld [vmem:[%s1386_s1] sm:$0xff]  ;;  %v4874_v12 = vld [vmem:[%s1415_s3 + $0x8] sm:$0xff]  ;;  %s6814_s1 = smov [#allocation11]  ;;  %s6847_s3 = smov [#allocation11] }
 0x2b8   : >> { %v1397_v45 = vmul.f32 %v1394_v38, %v1387_v40  ;;  %v1400_v36 = vmul.f32 %v1395_v39, %v1387_v40  ;;  %v1402_v46 = vmul.f32 %v1392_v35, %v1387_v40  ;;  %v1405_v48 = vmul.f32 %v1393_v37, %v1387_v40  ;;  %v3011_v49 = vld [vmem:[%s3010_s16] sm:$0xff]  ;;  %v4873_v61 = vld [vmem:[%s1412_s0 + $0x8] sm:$0xff]  ;;  %s6831_s16 = smov [#allocation14]  ;;  %s6857_s0 = smov [#allocation12] }
 0x2b9   : >> { %v1385_v50 = vld [vmem:[%s1384_s20] sm:$0xff]  ;;  %v3021_v47 = vmul.f32 %v3018_v43, %v3011_v49  ;;  %v3024_v56 = vmul.f32 %v3019_v44, %v3011_v49  ;;  %v3026_v57 = vmul.f32 %v3016_v29, %v3011_v49  ;;  %v3029_v58 = vmul.f32 %v3017_v41, %v3011_v49  ;;  %v5231_v6 = vld [vmem:[%s3036_s26 + $0x8] sm:$0xff]  ;;  %s6840_s20 = smov [#allocation9]  ;;  %s6866_s26 = smov [#allocation15] }
 0x2ba   : >> { %v1396_v42 = vmul.f32 %v1392_v35, %v1385_v50  ;;  %v1399_v52 = vmul.f32 %v1393_v37, %v1385_v50  ;;  %v1403_v53 = vmul.f32 %v1394_v38, %v1385_v50  ;;  %v1406_v51 = vmul.f32 %v1395_v39, %v1385_v50  ;;  %v3009_v63 = vld [vmem:[%s3008_s21] sm:$0xff]  ;;  %v5232_v7 = vld [vmem:[%s3039_s30 + $0x8] sm:$0xff]  ;;  %s6845_s21 = smov [#allocation10]  ;;  %s6874_s30 = smov [#allocation9] }
 0x2bb   : >> { %v3020_v0 = vmul.f32 %v3016_v29, %v3009_v63  ;;  %v3023_v59 = vmul.f32 %v3017_v41, %v3009_v63  ;;  %v3027_v2 = vmul.f32 %v3018_v43, %v3009_v63  ;;  %v3030_v4 = vmul.f32 %v3019_v44, %v3009_v63 }
 0x2bc   : >> { %v1398_v54 = vsub.f32 %v1396_v42, %v1397_v45  ;;  %v1401_v55 = vsub.f32 %v1399_v52, %v1400_v36  ;;  %v1404_v60 = vadd.f32 %v1403_v53, %v1402_v46  ;;  %v1407_v62 = vadd.f32 %v1406_v51, %v1405_v48 }
 0x2bd   : >> { %v3022_v5 = vsub.f32 %v3020_v0, %v3021_v47  ;;  %v3025_v8 = vsub.f32 %v3023_v59, %v3024_v56  ;;  %v3028_v11 = vadd.f32 %v3027_v2, %v3026_v57  ;;  %v3031_v1 = vadd.f32 %v3030_v4, %v3029_v58 }
 0x2be   : >> { %1408 = vst [vmem:[%s6765_s12] sm:$0xff] %v1398_v54  ;;  %1409 = vst [vmem:[%s6767_s13] sm:$0xff] %v1401_v55  ;;  %s1449_s12 = smov [#allocation24]  ;;  %s6825_s13 = smov [#allocation12] }
 0x2bf   : >> { %1410 = vst [vmem:[%s6769_s14] sm:$0xff] %v1404_v60  ;;  %1411 = vst [vmem:[%s6771_s15] sm:$0xff] %v1407_v62  ;;  %s6827_s14 = smov [#allocation13]  ;;  %s1446_s15 = smov [#allocation23]  ;;  %v4884_v36 = vld [vmem:[%s1449_s12 + $0x10] sm:$0xff] }
 0x2c0   : >> { %3032 = vst [vmem:[%s6775_s17] sm:$0xff] %v3022_v5  ;;  %3033 = vst [vmem:[%s6777_s2] sm:$0xff] %v3025_v8  ;;  %s6833_s17 = smov [#allocation15]  ;;  %s3073_s2 = smov [#allocation24]  ;;  %v4883_v46 = vld [vmem:[%s1446_s15 + $0x10] sm:$0xff] }
 0x2c1   : >> { %3034 = vst [vmem:[%s6781_s18] sm:$0xff] %v3028_v11  ;;  %3035 = vst [vmem:[%s6783_s19] sm:$0xff] %v3031_v1  ;;  %s3070_s18 = smov [#allocation23]  ;;  %s6838_s19 = smov [#allocation8]  ;;  %v5242_v58 = vld [vmem:[%s3073_s2 + $0x10] sm:$0xff] }
 0x2c2   : >> { %v5241_v0 = vld [vmem:[%s3070_s18 + $0x10] sm:$0xff]  ;;  %s6879_s12 = smov [#allocation11]  ;;  %s6891_s15 = smov [#allocation13] }
 0x2c3   : >> { %s6896_s2 = smov [#allocation15]  ;;  %s3141_s18 = smov [#allocation24] }
 0x2c5   : >> { %v4875_v10 = vld [vmem:[%s6793_s22 + $0x8] sm:$0xff] }
 0x2c6   : >> { %v4876_v13 = vld [vmem:[%s6799_s23 + $0x8] sm:$0xff]  ;;  %v1430_v18 = vmul.f32 %v4875_v10, %v4873_v61  ;;  %v1436_v3 = vmul.f32 %v4875_v10, %v4874_v12 }
 0x2c7   : >> { %v4877_v17 = vld [vmem:[%s6801_s24 + $0x8] sm:$0xff]  ;;  %v1433_v20 = vmul.f32 %v4876_v13, %v4873_v61  ;;  %v1439_v23 = vmul.f32 %v4876_v13, %v4874_v12 }
 0x2c8   : >> { %v4878_v14 = vld [vmem:[%s6803_s25 + $0x8] sm:$0xff]  ;;  %v1431_v19 = vmul.f32 %v4877_v17, %v4874_v12  ;;  %v1437_v22 = vmul.f32 %v4877_v17, %v4873_v61 }
 0x2c9   : >> { %v1434_v21 = vmul.f32 %v4878_v14, %v4874_v12  ;;  %v1440_v24 = vmul.f32 %v4878_v14, %v4873_v61  ;;  %v5233_v26 = vld [vmem:[%s6805_s27 + $0x8] sm:$0xff] }
 0x2ca   : >> { %v1432_v25 = vsub.f32 %v1430_v18, %v1431_v19  ;;  %v5234_v27 = vld [vmem:[%s6807_s28 + $0x8] sm:$0xff]  ;;  %v1438_v31 = vadd.f32 %v1437_v22, %v1436_v3  ;;  %v3054_v34 = vmul.f32 %v5233_v26, %v5231_v6  ;;  %v3060_v38 = vmul.f32 %v5233_v26, %v5232_v7 }
 0x2cb   : >> { %v5235_v28 = vld [vmem:[%s6809_s29 + $0x8] sm:$0xff]  ;;  %v1435_v30 = vsub.f32 %v1433_v20, %v1434_v21  ;;  %v1441_v32 = vadd.f32 %v1440_v24, %v1439_v23  ;;  %v3057_v35 = vmul.f32 %v5234_v27, %v5231_v6  ;;  %v3063_v40 = vmul.f32 %v5234_v27, %v5232_v7 }
 0x2cc   : >> { %v5236_v33 = vld [vmem:[%s6814_s1 + $0x8] sm:$0xff]  ;;  %4879 = vst [vmem:[%s6793_s22 + $0x8] sm:$0xff] %v1432_v25  ;;  %v3055_v9 = vmul.f32 %v5235_v28, %v5232_v7  ;;  %4881 = vst [vmem:[%s6801_s24 + $0x8] sm:$0xff] %v1438_v31  ;;  %v3061_v39 = vmul.f32 %v5235_v28, %v5231_v6  ;;  %s1483_s22 = smov [#allocation24]  ;;  %s6859_s24 = smov [#allocation13] }
 0x2cd   : >> { %v3058_v37 = vmul.f32 %v5236_v33, %v5232_v7  ;;  %4880 = vst [vmem:[%s6799_s23 + $0x8] sm:$0xff] %v1435_v30  ;;  %4882 = vst [vmem:[%s6803_s25 + $0x8] sm:$0xff] %v1441_v32  ;;  %v3064_v29 = vmul.f32 %v5236_v33, %v5231_v6  ;;  %s1480_s23 = smov [#allocation23]  ;;  %s6861_s25 = smov [#allocation14]  ;;  %v4894_v21 = vld [vmem:[%s1483_s22 + $0x18] sm:$0xff] }
 0x2ce   : >> { %v3056_v41 = vsub.f32 %v3054_v34, %v3055_v9  ;;  %v3062_v44 = vadd.f32 %v3061_v39, %v3060_v38  ;;  %v4893_v22 = vld [vmem:[%s1480_s23 + $0x18] sm:$0xff]  ;;  %s6911_s22 = smov [#allocation11]  ;;  %s6921_s23 = smov [#allocation12] }
 0x2cf   : >> { %v3059_v43 = vsub.f32 %v3057_v35, %v3058_v37  ;;  %v3065_v45 = vadd.f32 %v3064_v29, %v3063_v40 }
 0x2d0   : >> { %5237 = vst [vmem:[%s6805_s27 + $0x8] sm:$0xff] %v3056_v41  ;;  %5239 = vst [vmem:[%s6809_s29 + $0x8] sm:$0xff] %v3062_v44  ;;  %s3107_s27 = smov [#allocation24]  ;;  %s6869_s29 = smov [#allocation8] }
 0x2d1   : >> { %5238 = vst [vmem:[%s6807_s28 + $0x8] sm:$0xff] %v3059_v43  ;;  %5240 = vst [vmem:[%s6814_s1 + $0x8] sm:$0xff] %v3065_v45  ;;  %s3104_s28 = smov [#allocation23]  ;;  %s6876_s1 = smov [#allocation10]  ;;  %v5252_v34 = vld [vmem:[%s3107_s27 + $0x18] sm:$0xff] }
 0x2d2   : >> { %v5251_v35 = vld [vmem:[%s3104_s28 + $0x18] sm:$0xff]  ;;  %s6930_s27 = smov [#allocation15]  ;;  %s3175_s28 = smov [#allocation24] }
 0x2d3   : >> { %v4885_v48 = vld [vmem:[%s6825_s13 + $0x10] sm:$0xff] }
 0x2d4   : >> { %v4886_v49 = vld [vmem:[%s6827_s14 + $0x10] sm:$0xff]  ;;  %v1464_v52 = vmul.f32 %v4885_v48, %v4883_v46  ;;  %v1470_v53 = vmul.f32 %v4885_v48, %v4884_v36 }
 0x2d5   : >> { %v4887_v50 = vld [vmem:[%s6831_s16 + $0x10] sm:$0xff]  ;;  %v1467_v47 = vmul.f32 %v4886_v49, %v4883_v46  ;;  %v1473_v54 = vmul.f32 %v4886_v49, %v4884_v36 }
 0x2d6   : >> { %v4888_v42 = vld [vmem:[%s6833_s17 + $0x10] sm:$0xff]  ;;  %v1465_v51 = vmul.f32 %v4887_v50, %v4884_v36  ;;  %v1471_v57 = vmul.f32 %v4887_v50, %v4883_v46 }
 0x2d7   : >> { %v1468_v56 = vmul.f32 %v4888_v42, %v4884_v36  ;;  %v1474_v55 = vmul.f32 %v4888_v42, %v4883_v46  ;;  %v5243_v59 = vld [vmem:[%s6838_s19 + $0x10] sm:$0xff] }
 0x2d8   : >> { %v1466_v60 = vsub.f32 %v1464_v52, %v1465_v51  ;;  %v1472_v63 = vadd.f32 %v1471_v57, %v1470_v53  ;;  %v5244_v2 = vld [vmem:[%s6840_s20 + $0x10] sm:$0xff]  ;;  %v3088_v11 = vmul.f32 %v5243_v59, %v5241_v0  ;;  %v3094_v12 = vmul.f32 %v5243_v59, %v5242_v58 }
 0x2d9   : >> { %v1469_v62 = vsub.f32 %v1467_v47, %v1468_v56  ;;  %v1475_v4 = vadd.f32 %v1474_v55, %v1473_v54  ;;  %v5245_v5 = vld [vmem:[%s6845_s21 + $0x10] sm:$0xff]  ;;  %v3091_v1 = vmul.f32 %v5244_v2, %v5241_v0  ;;  %v3097_v17 = vmul.f32 %v5244_v2, %v5242_v58 }
 0x2da   : >> { %v5246_v8 = vld [vmem:[%s6847_s3 + $0x10] sm:$0xff]  ;;  %4889 = vst [vmem:[%s6825_s13 + $0x10] sm:$0xff] %v1466_v60  ;;  %4891 = vst [vmem:[%s6831_s16 + $0x10] sm:$0xff] %v1472_v63  ;;  %v3089_v61 = vmul.f32 %v5245_v5, %v5242_v58  ;;  %v3095_v13 = vmul.f32 %v5245_v5, %v5241_v0  ;;  %s1517_s13 = smov [#allocation24]  ;;  %s1514_s16 = smov [#allocation23] }
 0x2db   : >> { %4890 = vst [vmem:[%s6827_s14 + $0x10] sm:$0xff] %v1469_v62  ;;  %v3092_v10 = vmul.f32 %v5246_v8, %v5242_v58  ;;  %4892 = vst [vmem:[%s6833_s17 + $0x10] sm:$0xff] %v1475_v4  ;;  %v3098_v14 = vmul.f32 %v5246_v8, %v5241_v0  ;;  %s6889_s14 = smov [#allocation12]  ;;  %s6894_s17 = smov [#allocation14]  ;;  %v4904_v56 = vld [vmem:[%s1517_s13 + $0x20] sm:$0xff] }
 0x2dc   : >> { %v3090_v18 = vsub.f32 %v3088_v11, %v3089_v61  ;;  %v3096_v20 = vadd.f32 %v3095_v13, %v3094_v12  ;;  %v4903_v57 = vld [vmem:[%s1514_s16 + $0x20] sm:$0xff]  ;;  %s6943_s13 = smov [#allocation11]  ;;  %s6955_s16 = smov [#allocation13] }
 0x2dd   : >> { %v3093_v19 = vsub.f32 %v3091_v1, %v3092_v10  ;;  %v3099_v3 = vadd.f32 %v3098_v14, %v3097_v17  ;;  %v5262_v11 = vld [vmem:[%s3141_s18 + $0x20] sm:$0xff]  ;;  %s6960_s18 = smov [#allocation15] }
 0x2de   : >> { %5247 = vst [vmem:[%s6838_s19 + $0x10] sm:$0xff] %v3090_v18  ;;  %5249 = vst [vmem:[%s6845_s21 + $0x10] sm:$0xff] %v3096_v20  ;;  %s3138_s19 = smov [#allocation23]  ;;  %s6904_s21 = smov [#allocation9] }
 0x2df   : >> { %5248 = vst [vmem:[%s6840_s20 + $0x10] sm:$0xff] %v3093_v19  ;;  %5250 = vst [vmem:[%s6847_s3 + $0x10] sm:$0xff] %v3099_v3  ;;  %s6902_s20 = smov [#allocation8]  ;;  %s6909_s3 = smov [#allocation10]  ;;  %v5261_v10 = vld [vmem:[%s3138_s19 + $0x20] sm:$0xff] }
 0x2e0   : >> { %s3209_s19 = smov [#allocation24] }
 0x2e1   : >> { %v4895_v23 = vld [vmem:[%s6857_s0 + $0x18] sm:$0xff] }
 0x2e2   : >> { %v4896_v24 = vld [vmem:[%s6859_s24 + $0x18] sm:$0xff]  ;;  %v1498_v26 = vmul.f32 %v4895_v23, %v4893_v22  ;;  %v1504_v7 = vmul.f32 %v4895_v23, %v4894_v21 }
 0x2e3   : >> { %v4897_v6 = vld [vmem:[%s6861_s25 + $0x18] sm:$0xff]  ;;  %v1501_v28 = vmul.f32 %v4896_v24, %v4893_v22  ;;  %v1507_v32 = vmul.f32 %v4896_v24, %v4894_v21 }
 0x2e4   : >> { %v4898_v25 = vld [vmem:[%s6866_s26 + $0x18] sm:$0xff]  ;;  %v1499_v27 = vmul.f32 %v4897_v6, %v4894_v21  ;;  %v1505_v31 = vmul.f32 %v4897_v6, %v4893_v22 }
 0x2e5   : >> { %v1502_v30 = vmul.f32 %v4898_v25, %v4894_v21  ;;  %v1508_v33 = vmul.f32 %v4898_v25, %v4893_v22  ;;  %v5253_v40 = vld [vmem:[%s6869_s29 + $0x18] sm:$0xff] }
 0x2e6   : >> { %v1500_v9 = vsub.f32 %v1498_v26, %v1499_v27  ;;  %v1506_v38 = vadd.f32 %v1505_v31, %v1504_v7  ;;  %v5254_v29 = vld [vmem:[%s6874_s30 + $0x18] sm:$0xff]  ;;  %v3122_v44 = vmul.f32 %v5253_v40, %v5251_v35  ;;  %v3128_v46 = vmul.f32 %v5253_v40, %v5252_v34 }
 0x2e7   : >> { %v1503_v37 = vsub.f32 %v1501_v28, %v1502_v30  ;;  %v1509_v39 = vadd.f32 %v1508_v33, %v1507_v32  ;;  %v5255_v41 = vld [vmem:[%s6876_s1 + $0x18] sm:$0xff]  ;;  %v3125_v36 = vmul.f32 %v5254_v29, %v5251_v35  ;;  %v3131_v50 = vmul.f32 %v5254_v29, %v5252_v34 }
 0x2e8   : >> { %4899 = vst [vmem:[%s6857_s0 + $0x18] sm:$0xff] %v1500_v9  ;;  %v5256_v43 = vld [vmem:[%s6879_s12 + $0x18] sm:$0xff]  ;;  %v3123_v45 = vmul.f32 %v5255_v41, %v5252_v34  ;;  %4901 = vst [vmem:[%s6861_s25 + $0x18] sm:$0xff] %v1506_v38  ;;  %v3129_v49 = vmul.f32 %v5255_v41, %v5251_v35  ;;  %s1551_s0 = smov [#allocation24]  ;;  %s6923_s25 = smov [#allocation13] }
 0x2e9   : >> { %4900 = vst [vmem:[%s6859_s24 + $0x18] sm:$0xff] %v1503_v37  ;;  %4902 = vst [vmem:[%s6866_s26 + $0x18] sm:$0xff] %v1509_v39  ;;  %v3126_v48 = vmul.f32 %v5256_v43, %v5252_v34  ;;  %v3132_v42 = vmul.f32 %v5256_v43, %v5251_v35  ;;  %s1548_s24 = smov [#allocation23]  ;;  %s6925_s26 = smov [#allocation14]  ;;  %v4914_v30 = vld [vmem:[%s1551_s0 + $0x28] sm:$0xff] }
 0x2ea   : >> { %v3124_v52 = vsub.f32 %v3122_v44, %v3123_v45  ;;  %v3130_v51 = vadd.f32 %v3129_v49, %v3128_v46  ;;  %v4913_v31 = vld [vmem:[%s1548_s24 + $0x28] sm:$0xff]  ;;  %s6975_s0 = smov [#allocation11]  ;;  %s6985_s24 = smov [#allocation12] }
 0x2eb   : >> { %v3127_v53 = vsub.f32 %v3125_v36, %v3126_v48  ;;  %v3133_v47 = vadd.f32 %v3132_v42, %v3131_v50  ;;  %v5272_v44 = vld [vmem:[%s3175_s28 + $0x28] sm:$0xff]  ;;  %s6994_s28 = smov [#allocation15] }
 0x2ec   : >> { %5257 = vst [vmem:[%s6869_s29 + $0x18] sm:$0xff] %v3124_v52  ;;  %5259 = vst [vmem:[%s6876_s1 + $0x18] sm:$0xff] %v3130_v51  ;;  %s3172_s29 = smov [#allocation23]  ;;  %s6938_s1 = smov [#allocation9] }
 0x2ed   : >> { %5258 = vst [vmem:[%s6874_s30 + $0x18] sm:$0xff] %v3127_v53  ;;  %5260 = vst [vmem:[%s6879_s12 + $0x18] sm:$0xff] %v3133_v47  ;;  %s6933_s30 = smov [#allocation8]  ;;  %s6940_s12 = smov [#allocation10]  ;;  %v5271_v36 = vld [vmem:[%s3172_s29 + $0x28] sm:$0xff] }
 0x2ee   : >> { %s3243_s29 = smov [#allocation24] }
 0x2ef   : >> { %v4905_v58 = vld [vmem:[%s6889_s14 + $0x20] sm:$0xff] }
 0x2f0   : >> { %v4906_v54 = vld [vmem:[%s6891_s15 + $0x20] sm:$0xff]  ;;  %v1532_v62 = vmul.f32 %v4905_v58, %v4903_v57  ;;  %v1538_v63 = vmul.f32 %v4905_v58, %v4904_v56 }
 0x2f1   : >> { %v4907_v55 = vld [vmem:[%s6894_s17 + $0x20] sm:$0xff]  ;;  %v1535_v59 = vmul.f32 %v4906_v54, %v4903_v57  ;;  %v1541_v5 = vmul.f32 %v4906_v54, %v4904_v56 }
 0x2f2   : >> { %v4908_v60 = vld [vmem:[%s6896_s2 + $0x20] sm:$0xff]  ;;  %v1533_v0 = vmul.f32 %v4907_v55, %v4904_v56  ;;  %v1539_v4 = vmul.f32 %v4907_v55, %v4903_v57 }
 0x2f3   : >> { %v1536_v2 = vmul.f32 %v4908_v60, %v4904_v56  ;;  %v1542_v8 = vmul.f32 %v4908_v60, %v4903_v57  ;;  %v5263_v13 = vld [vmem:[%s6902_s20 + $0x20] sm:$0xff] }
 0x2f4   : >> { %v1534_v1 = vsub.f32 %v1532_v62, %v1533_v0  ;;  %v1540_v61 = vadd.f32 %v1539_v4, %v1538_v63  ;;  %v5264_v14 = vld [vmem:[%s6904_s21 + $0x20] sm:$0xff]  ;;  %v3156_v20 = vmul.f32 %v5263_v13, %v5261_v10  ;;  %v3162_v3 = vmul.f32 %v5263_v13, %v5262_v11 }
 0x2f5   : >> { %v1537_v12 = vsub.f32 %v1535_v59, %v1536_v2  ;;  %v1543_v17 = vadd.f32 %v1542_v8, %v1541_v5  ;;  %v5265_v18 = vld [vmem:[%s6909_s3 + $0x20] sm:$0xff]  ;;  %v3159_v22 = vmul.f32 %v5264_v14, %v5261_v10  ;;  %v3165_v6 = vmul.f32 %v5264_v14, %v5262_v11 }
 0x2f6   : >> { %v5266_v19 = vld [vmem:[%s6911_s22 + $0x20] sm:$0xff]  ;;  %4909 = vst [vmem:[%s6889_s14 + $0x20] sm:$0xff] %v1534_v1  ;;  %4911 = vst [vmem:[%s6894_s17 + $0x20] sm:$0xff] %v1540_v61  ;;  %v3157_v21 = vmul.f32 %v5265_v18, %v5262_v11  ;;  %v3163_v24 = vmul.f32 %v5265_v18, %v5261_v10  ;;  %s1585_s14 = smov [#allocation24]  ;;  %s1582_s17 = smov [#allocation23] }
 0x2f7   : >> { %4910 = vst [vmem:[%s6891_s15 + $0x20] sm:$0xff] %v1537_v12  ;;  %v3160_v23 = vmul.f32 %v5266_v19, %v5262_v11  ;;  %4912 = vst [vmem:[%s6896_s2 + $0x20] sm:$0xff] %v1543_v17  ;;  %v3166_v25 = vmul.f32 %v5266_v19, %v5261_v10  ;;  %s6953_s15 = smov [#allocation12]  ;;  %s6958_s2 = smov [#allocation14]  ;;  %v4924_v2 = vld [vmem:[%s1585_s14 + $0x30] sm:$0xff] }
 0x2f8   : >> { %v3158_v26 = vsub.f32 %v3156_v20, %v3157_v21  ;;  %v3164_v28 = vadd.f32 %v3163_v24, %v3162_v3  ;;  %v4923_v4 = vld [vmem:[%s1582_s17 + $0x30] sm:$0xff]  ;;  %s7007_s14 = smov [#allocation11]  ;;  %s7018_s17 = smov [#allocation12] }
 0x2f9   : >> { %v3161_v27 = vsub.f32 %v3159_v22, %v3160_v23  ;;  %v3167_v7 = vadd.f32 %v3166_v25, %v3165_v6  ;;  %v5282_v20 = vld [vmem:[%s3209_s19 + $0x30] sm:$0xff]  ;;  %s7031_s19 = smov [#allocation15] }
 0x2fa   : >> { %5267 = vst [vmem:[%s6902_s20 + $0x20] sm:$0xff] %v3158_v26  ;;  %5269 = vst [vmem:[%s6909_s3 + $0x20] sm:$0xff] %v3164_v28  ;;  %s3206_s20 = smov [#allocation23]  ;;  %s6968_s3 = smov [#allocation9] }
 0x2fb   : >> { %5268 = vst [vmem:[%s6904_s21 + $0x20] sm:$0xff] %v3161_v27  ;;  %5270 = vst [vmem:[%s6911_s22 + $0x20] sm:$0xff] %v3167_v7  ;;  %s6966_s21 = smov [#allocation8]  ;;  %s6973_s22 = smov [#allocation10]  ;;  %v5281_v23 = vld [vmem:[%s3206_s20 + $0x30] sm:$0xff] }
 0x2fc   : >> { %s7033_s20 = smov [#allocation8] }
 0x2fd   : >> { %v4915_v32 = vld [vmem:[%s6921_s23 + $0x28] sm:$0xff] }
 0x2fe   : >> { %v4916_v33 = vld [vmem:[%s6923_s25 + $0x28] sm:$0xff]  ;;  %v1566_v35 = vmul.f32 %v4915_v32, %v4913_v31  ;;  %v1572_v39 = vmul.f32 %v4915_v32, %v4914_v30 }
 0x2ff   : >> { %v4917_v34 = vld [vmem:[%s6925_s26 + $0x28] sm:$0xff]  ;;  %v1569_v38 = vmul.f32 %v4916_v33, %v4913_v31  ;;  %v1575_v41 = vmul.f32 %v4916_v33, %v4914_v30 }
 0x300   : >> { %v4918_v9 = vld [vmem:[%s6930_s27 + $0x28] sm:$0xff]  ;;  %v1567_v37 = vmul.f32 %v4917_v34, %v4914_v30  ;;  %v1573_v29 = vmul.f32 %v4917_v34, %v4913_v31 }
 0x301   : >> { %v1570_v40 = vmul.f32 %v4918_v9, %v4914_v30  ;;  %v1576_v43 = vmul.f32 %v4918_v9, %v4913_v31  ;;  %v5273_v50 = vld [vmem:[%s6933_s30 + $0x28] sm:$0xff] }
 0x302   : >> { %v1568_v45 = vsub.f32 %v1566_v35, %v1567_v37  ;;  %v1574_v48 = vadd.f32 %v1573_v29, %v1572_v39  ;;  %v5274_v42 = vld [vmem:[%s6938_s1 + $0x28] sm:$0xff]  ;;  %v3190_v51 = vmul.f32 %v5273_v50, %v5271_v36  ;;  %v3196_v57 = vmul.f32 %v5273_v50, %v5272_v44 }
 0x303   : >> { %v1571_v46 = vsub.f32 %v1569_v38, %v1570_v40  ;;  %v1577_v49 = vadd.f32 %v1576_v43, %v1575_v41  ;;  %v5275_v52 = vld [vmem:[%s6940_s12 + $0x28] sm:$0xff]  ;;  %v3193_v56 = vmul.f32 %v5274_v42, %v5271_v36  ;;  %v3199_v55 = vmul.f32 %v5274_v42, %v5272_v44 }
 0x304   : >> { %4919 = vst [vmem:[%s6921_s23 + $0x28] sm:$0xff] %v1568_v45  ;;  %v5276_v53 = vld [vmem:[%s6943_s13 + $0x28] sm:$0xff]  ;;  %v3191_v47 = vmul.f32 %v5275_v52, %v5272_v44  ;;  %4921 = vst [vmem:[%s6925_s26 + $0x28] sm:$0xff] %v1574_v48  ;;  %v3197_v54 = vmul.f32 %v5275_v52, %v5271_v36  ;;  %s1619_s23 = smov [#allocation24]  ;;  %s6987_s26 = smov [#allocation13] }
 0x305   : >> { %4920 = vst [vmem:[%s6923_s25 + $0x28] sm:$0xff] %v1571_v46  ;;  %4922 = vst [vmem:[%s6930_s27 + $0x28] sm:$0xff] %v1577_v49  ;;  %v3194_v58 = vmul.f32 %v5276_v53, %v5272_v44  ;;  %v3200_v60 = vmul.f32 %v5276_v53, %v5271_v36  ;;  %s1616_s25 = smov [#allocation23]  ;;  %s6989_s27 = smov [#allocation14]  ;;  %v4934_v40 = vld [vmem:[%s1619_s23 + $0x38] sm:$0xff] }
 0x306   : >> { %v3192_v62 = vsub.f32 %v3190_v51, %v3191_v47  ;;  %v3198_v0 = vadd.f32 %v3197_v54, %v3196_v57  ;;  %v4933_v29 = vld [vmem:[%s1616_s25 + $0x38] sm:$0xff]  ;;  %s7052_s23 = smov [#allocation13]  ;;  %s7061_s25 = smov [#allocation15] }
 0x307   : >> { %v3195_v63 = vsub.f32 %v3193_v56, %v3194_v58  ;;  %v3201_v59 = vadd.f32 %v3200_v60, %v3199_v55  ;;  %v5292_v51 = vld [vmem:[%s3243_s29 + $0x38] sm:$0xff]  ;;  %s1712_s29 = smov [#allocation15] }
 0x308   : >> { %5277 = vst [vmem:[%s6933_s30 + $0x28] sm:$0xff] %v3192_v62  ;;  %5279 = vst [vmem:[%s6940_s12 + $0x28] sm:$0xff] %v3198_v0  ;;  %s3240_s30 = smov [#allocation23]  ;;  %s7002_s12 = smov [#allocation9] }
 0x309   : >> { %5278 = vst [vmem:[%s6938_s1 + $0x28] sm:$0xff] %v3195_v63  ;;  %5280 = vst [vmem:[%s6943_s13 + $0x28] sm:$0xff] %v3201_v59  ;;  %s6997_s1 = smov [#allocation8]  ;;  %s7004_s13 = smov [#allocation10]  ;;  %v5291_v56 = vld [vmem:[%s3240_s30 + $0x38] sm:$0xff] }
 0x30a   : >> { %s1734_s30 = smov [#allocation12] }
 0x30b   : >> { %v4925_v5 = vld [vmem:[%s6953_s15 + $0x30] sm:$0xff] }
 0x30c   : >> { %v4926_v8 = vld [vmem:[%s6955_s16 + $0x30] sm:$0xff]  ;;  %v1600_v12 = vmul.f32 %v4925_v5, %v4923_v4  ;;  %v1606_v61 = vmul.f32 %v4925_v5, %v4924_v2 }
 0x30d   : >> { %v4927_v11 = vld [vmem:[%s6958_s2 + $0x30] sm:$0xff]  ;;  %v1603_v13 = vmul.f32 %v4926_v8, %v4923_v4  ;;  %v1609_v18 = vmul.f32 %v4926_v8, %v4924_v2 }
 0x30e   : >> { %v4928_v1 = vld [vmem:[%s6960_s18 + $0x30] sm:$0xff]  ;;  %v1601_v10 = vmul.f32 %v4927_v11, %v4924_v2  ;;  %v1607_v14 = vmul.f32 %v4927_v11, %v4923_v4 }
 0x30f   : >> { %v1604_v17 = vmul.f32 %v4928_v1, %v4924_v2  ;;  %v1610_v19 = vmul.f32 %v4928_v1, %v4923_v4  ;;  %v5283_v24 = vld [vmem:[%s6966_s21 + $0x30] sm:$0xff] }
 0x310   : >> { %v1602_v3 = vsub.f32 %v1600_v12, %v1601_v10  ;;  %v1608_v22 = vadd.f32 %v1607_v14, %v1606_v61  ;;  %v5284_v25 = vld [vmem:[%s6968_s3 + $0x30] sm:$0xff]  ;;  %v3224_v28 = vmul.f32 %v5283_v24, %v5281_v23  ;;  %v3230_v7 = vmul.f32 %v5283_v24, %v5282_v20 }
 0x311   : >> { %v1605_v21 = vsub.f32 %v1603_v13, %v1604_v17  ;;  %v1611_v6 = vadd.f32 %v1610_v19, %v1609_v18  ;;  %v5285_v26 = vld [vmem:[%s6973_s22 + $0x30] sm:$0xff]  ;;  %v3227_v31 = vmul.f32 %v5284_v25, %v5281_v23  ;;  %v3233_v34 = vmul.f32 %v5284_v25, %v5282_v20 }
 0x312   : >> { %v5286_v27 = vld [vmem:[%s6975_s0 + $0x30] sm:$0xff]  ;;  %4929 = vst [vmem:[%s6953_s15 + $0x30] sm:$0xff] %v1602_v3  ;;  %4931 = vst [vmem:[%s6958_s2 + $0x30] sm:$0xff] %v1608_v22  ;;  %v3225_v30 = vmul.f32 %v5285_v26, %v5282_v20  ;;  %v3231_v33 = vmul.f32 %v5285_v26, %v5281_v23  ;;  %s1650_s15 = smov [#allocation21]  ;;  %s7020_s2 = smov [#allocation13] }
 0x313   : >> { %4930 = vst [vmem:[%s6955_s16 + $0x30] sm:$0xff] %v1605_v21  ;;  %v3228_v32 = vmul.f32 %v5286_v27, %v5282_v20  ;;  %4932 = vst [vmem:[%s6960_s18 + $0x30] sm:$0xff] %v1611_v6  ;;  %v3234_v9 = vmul.f32 %v5286_v27, %v5281_v23  ;;  %s1652_s16 = smov [#allocation22]  ;;  %v7022_v17 = vld [vmem:[%s1650_s15] ss:$0 sm:$0xff]  ;;  %s7029_s18 = smov [#allocation14] }
 0x314   : >> { %v3226_v35 = vsub.f32 %v3224_v28, %v3225_v30  ;;  %v3232_v38 = vadd.f32 %v3231_v33, %v3230_v7  ;;  %v7024_v14 = vld [vmem:[%s1652_s16] ss:$0 sm:$0xff]  ;;  %s1764_s15 = smov [#allocation13]  ;;  %s1766_s16 = smov [#allocation14] }
 0x315   : >> { %v3229_v37 = vsub.f32 %v3227_v31, %v3228_v32  ;;  %v3235_v39 = vadd.f32 %v3234_v9, %v3233_v34 }
 0x316   : >> { %5287 = vst [vmem:[%s6966_s21 + $0x30] sm:$0xff] %v3226_v35  ;;  %5289 = vst [vmem:[%s6973_s22 + $0x30] sm:$0xff] %v3232_v38  ;;  %s7035_s21 = smov [#allocation10]  ;;  %s7041_s22 = smov [#allocation11] }
 0x317   : >> { %5288 = vst [vmem:[%s6968_s3 + $0x30] sm:$0xff] %v3229_v37  ;;  %5290 = vst [vmem:[%s6975_s0 + $0x30] sm:$0xff] %v3235_v39  ;;  %s7039_s3 = smov [#allocation9]  ;;  %s7050_s0 = smov [#allocation12] }
 0x319   : >> { %v4935_v41 = vld [vmem:[%s6985_s24 + $0x38] sm:$0xff] }
 0x31a   : >> { %v4936_v43 = vld [vmem:[%s6987_s26 + $0x38] sm:$0xff]  ;;  %v1634_v36 = vmul.f32 %v4935_v41, %v4933_v29  ;;  %v1640_v49 = vmul.f32 %v4935_v41, %v4934_v40 }
 0x31b   : >> { %v4937_v44 = vld [vmem:[%s6989_s27 + $0x38] sm:$0xff]  ;;  %v1637_v48 = vmul.f32 %v4936_v43, %v4933_v29  ;;  %v1643_v52 = vmul.f32 %v4936_v43, %v4934_v40 }
 0x31c   : >> { %v4938_v45 = vld [vmem:[%s6994_s28 + $0x38] sm:$0xff]  ;;  %v1635_v46 = vmul.f32 %v4937_v44, %v4934_v40  ;;  %v1641_v42 = vmul.f32 %v4937_v44, %v4933_v29 }
 0x31d   : >> { %v1638_v50 = vmul.f32 %v4938_v45, %v4934_v40  ;;  %v1644_v53 = vmul.f32 %v4938_v45, %v4933_v29  ;;  %v5293_v55 = vld [vmem:[%s6997_s1 + $0x38] sm:$0xff] }
 0x31e   : >> { %v1636_v47 = vsub.f32 %v1634_v36, %v1635_v46  ;;  %v1642_v58 = vadd.f32 %v1641_v42, %v1640_v49  ;;  %v5294_v60 = vld [vmem:[%s7002_s12 + $0x38] sm:$0xff]  ;;  %v3258_v0 = vmul.f32 %v5293_v55, %v5291_v56  ;;  %v3264_v4 = vmul.f32 %v5293_v55, %v5292_v51 }
 0x31f   : >> { %v1639_v57 = vsub.f32 %v1637_v48, %v1638_v50  ;;  %v1645_v54 = vadd.f32 %v1644_v53, %v1643_v52  ;;  %v5295_v62 = vld [vmem:[%s7004_s13 + $0x38] sm:$0xff]  ;;  %v3261_v2 = vmul.f32 %v5294_v60, %v5291_v56  ;;  %v3267_v11 = vmul.f32 %v5294_v60, %v5292_v51 }
 0x320   : >> { %v5296_v63 = vld [vmem:[%s7007_s14 + $0x38] sm:$0xff]  ;;  %v3259_v59 = vmul.f32 %v5295_v62, %v5292_v51  ;;  %4939 = vst [vmem:[%s6985_s24 + $0x38] sm:$0xff] %v1636_v47  ;;  %v3265_v8 = vmul.f32 %v5295_v62, %v5291_v56  ;;  %4941 = vst [vmem:[%s6989_s27 + $0x38] sm:$0xff] %v1642_v58  ;;  %s7059_s24 = smov [#allocation14]  ;;  %s1708_s27 = smov [#allocation13] }
 0x321   : >> { %v3262_v5 = vmul.f32 %v5296_v63, %v5292_v51  ;;  %v3268_v1 = vmul.f32 %v5296_v63, %v5291_v56  ;;  %4940 = vst [vmem:[%s6987_s26 + $0x38] sm:$0xff] %v1639_v57  ;;  %4942 = vst [vmem:[%s6994_s28 + $0x38] sm:$0xff] %v1645_v54  ;;  %s1706_s26 = smov [#allocation12]  ;;  %s1710_s28 = smov [#allocation14] }
 0x322   : >> { %v3260_v12 = vsub.f32 %v3258_v0, %v3259_v59  ;;  %v3266_v10 = vadd.f32 %v3265_v8, %v3264_v4 }
 0x323   : >> { %v3263_v61 = vsub.f32 %v3261_v2, %v3262_v5  ;;  %v3269_v13 = vadd.f32 %v3268_v1, %v3267_v11 }
 0x324   : >> { %5297 = vst [vmem:[%s6997_s1 + $0x38] sm:$0xff] %v3260_v12  ;;  %5299 = vst [vmem:[%s7004_s13 + $0x38] sm:$0xff] %v3266_v10  ;;  %s1736_s1 = smov [#allocation13]  ;;  %s1740_s13 = smov [#allocation15] }
 0x325   : >> { %5298 = vst [vmem:[%s7002_s12 + $0x38] sm:$0xff] %v3263_v61  ;;  %5300 = vst [vmem:[%s7007_s14 + $0x38] sm:$0xff] %v3269_v13  ;;  %s1738_s12 = smov [#allocation14]  ;;  %s1762_s14 = smov [#allocation12] }
 0x327   : >> { %v1658_v18 = vld [vmem:[%s7018_s17] sm:$0xff] }
 0x328   : >> { %v1659_v19 = vld [vmem:[%s7020_s2] sm:$0xff]  ;;  %v1662_v20 = vmul.f32 %v1658_v18, %v7022_v17  ;;  %v1665_v3 = vmul.f32 %v1658_v18, %v7024_v14 }
 0x329   : >> { %v1660_v21 = vld [vmem:[%s7029_s18] sm:$0xff]  ;;  %v1663_v23 = vmul.f32 %v1659_v19, %v7024_v14  ;;  %v1666_v24 = vmul.f32 %v1659_v19, %v7022_v17 }
 0x32a   : >> { %v1661_v22 = vld [vmem:[%s7031_s19] sm:$0xff]  ;;  %v1668_v6 = vmul.f32 %v1660_v21, %v7022_v17  ;;  %v1671_v26 = vmul.f32 %v1660_v21, %v7024_v14 }
 0x32b   : >> { %v1669_v25 = vmul.f32 %v1661_v22, %v7024_v14  ;;  %v1672_v27 = vmul.f32 %v1661_v22, %v7022_v17  ;;  %v3276_v28 = vld [vmem:[%s7033_s20] ss:$0 sm:$0xff]  ;;  %v5302_v30 = vld [vmem:[%s7033_s20 + $0x7] ss:$0 sm:$0xff]  ;;  %v1664_v31 = vsub.f32 %v1662_v20, %v1663_v23  ;;  %v1667_v32 = vadd.f32 %v1666_v24, %v1665_v3  ;;  %v5303_v9 = vld [vmem:[%s7033_s20 + $0x7] sm:$0xfe] }
 0x32c   : >> { %v5301_v7 = vld [vmem:[%s7033_s20 - $0x1] sm:$0xfe]  ;;  %v5304_v35 = vld [vmem:[%s7033_s20 + $0xf] ss:$0 sm:$0xff]  ;;  %v5306_v37 = vld [vmem:[%s7033_s20 + $0xf] sm:$0xfe]  ;;  %v3294_v39 = vsel %vm8432_vm1, %v5302_v30, %v5303_v9 }
 0x32d   : >> { %v1670_v33 = vsub.f32 %v1668_v6, %v1669_v25  ;;  %v3283_v34 = vsel %vm8432_vm1, %v3276_v28, %v5301_v7  ;;  %v1673_v38 = vadd.f32 %v1672_v27, %v1671_v26  ;;  %v3305_v40 = vsel %vm8432_vm1, %v5304_v35, %v5306_v37  ;;  %v5307_v29 = vld [vmem:[%s7033_s20 + $0x17] ss:$0 sm:$0xff]  ;;  %v5309_v41 = vld [vmem:[%s7033_s20 + $0x17] sm:$0xfe]  ;;  %v5310_v43 = vld [vmem:[%s7033_s20 + $0x1f] ss:$0 sm:$0xff]  ;;  %1674 = vst [vmem:[%s7018_s17] sm:$0xff] %v1664_v31 }
 0x32e   : >> { %3286 = vst [vmem:[%s7033_s20] sm:$0xff] %v3283_v34  ;;  %1675 = vst [vmem:[%s7020_s2] sm:$0xff] %v1667_v32  ;;  %v3316_v44 = vsel %vm8432_vm1, %v5307_v29, %v5309_v41  ;;  %v5312_v45 = vld [vmem:[%s7033_s20 + $0x1f] sm:$0xfe]  ;;  %v5313_v36 = vld [vmem:[%s7033_s20 + $0x27] ss:$0 sm:$0xff]  ;;  %s1768_s17 = smov [#allocation15]  ;;  %s1790_s2 = smov [#allocation12] }
 0x32f   : >> { %1676 = vst [vmem:[%s7029_s18] sm:$0xff] %v1670_v33  ;;  %5305 = vst [vmem:[%s7033_s20 + $0x8] sm:$0xff] %v3294_v39  ;;  %v5315_v46 = vld [vmem:[%s7033_s20 + $0x27] sm:$0xfe]  ;;  %v3327_v48 = vsel %vm8432_vm1, %v5310_v43, %v5312_v45  ;;  %v5316_v50 = vld [vmem:[%s7033_s20 + $0x2f] ss:$0 sm:$0xff]  ;;  %s1792_s18 = smov [#allocation13] }
 0x330   : >> { %5308 = vst [vmem:[%s7033_s20 + $0x10] sm:$0xff] %v3305_v40  ;;  %1677 = vst [vmem:[%s7031_s19] sm:$0xff] %v1673_v38  ;;  %v3338_v49 = vsel %vm8432_vm1, %v5313_v36, %v5315_v46  ;;  %v5318_v42 = vld [vmem:[%s7033_s20 + $0x2f] sm:$0xfe]  ;;  %v5319_v52 = vld [vmem:[%s7033_s20 + $0x37] ss:$0 sm:$0xff]  ;;  %s1794_s19 = smov [#allocation14] }
 0x331   : >> { %5311 = vst [vmem:[%s7033_s20 + $0x18] sm:$0xff] %v3316_v44  ;;  %5314 = vst [vmem:[%s7033_s20 + $0x20] sm:$0xff] %v3327_v48  ;;  %v3349_v53 = vsel %vm8432_vm1, %v5316_v50, %v5318_v42  ;;  %v5321_v51 = vld [vmem:[%s7033_s20 + $0x37] sm:$0xfe]  ;;  %v5322_v47 = vld [vmem:[%s7033_s20 + $0x3f] ss:$0 sm:$0xff] }
 0x332   : >> { %5317 = vst [vmem:[%s7033_s20 + $0x28] sm:$0xff] %v3338_v49  ;;  %v3364_v56 = vld [vmem:[%s7035_s21] ss:$0 sm:$0xff]  ;;  %5320 = vst [vmem:[%s7033_s20 + $0x30] sm:$0xff] %v3349_v53  ;;  %v3360_v57 = vsel %vm8432_vm1, %v5319_v52, %v5321_v51  ;;  %v5325_v58 = vld [vmem:[%s7035_s21 + $0x39] sm:$0x7f] }
 0x333   : >> { %5324 = vst [vmem:[%s7033_s20 + $0x1] sm:$0x1] %v3364_v56  ;;  %v5326_v54 = vld [vmem:[%s7035_s21 + $0x38] ss:$0 sm:$0xff]  ;;  %v5328_v55 = vld [vmem:[%s7035_s21 + $0x31] sm:$0x7f]  ;;  %v3373_v60 = vsel %vm8431_vm2, %v5322_v47, %v5325_v58 }
 0x334   : >> { %5323 = vst [vmem:[%s7033_s20 + $0x38] sm:$0xff] %v3360_v57  ;;  %v3382_v62 = vsel %vm8431_vm2, %v5326_v54, %v5328_v55  ;;  %v5329_v63 = vld [vmem:[%s7035_s21 + $0x30] ss:$0 sm:$0xff]  ;;  %v5331_v0 = vld [vmem:[%s7035_s21 + $0x29] sm:$0x7f]  ;;  %5327 = vst [vmem:[%s7035_s21 + $0x38] sm:$0xff] %v3373_v60 }
 0x335   : >> { %v5332_v59 = vld [vmem:[%s7035_s21 + $0x28] ss:$0 sm:$0xff]  ;;  %5330 = vst [vmem:[%s7035_s21 + $0x30] sm:$0xff] %v3382_v62  ;;  %v3391_v2 = vsel %vm8431_vm2, %v5329_v63, %v5331_v0  ;;  %v5334_v4 = vld [vmem:[%s7035_s21 + $0x21] sm:$0x7f]  ;;  %s1796_s20 = smov [#allocation15] }
 0x336   : >> { %v5335_v5 = vld [vmem:[%s7035_s21 + $0x20] ss:$0 sm:$0xff]  ;;  %v5337_v8 = vld [vmem:[%s7035_s21 + $0x19] sm:$0x7f]  ;;  %5333 = vst [vmem:[%s7035_s21 + $0x28] sm:$0xff] %v3391_v2  ;;  %v3400_v11 = vsel %vm8431_vm2, %v5332_v59, %v5334_v4 }
 0x337   : >> { %v3409_v1 = vsel %vm8431_vm2, %v5335_v5, %v5337_v8  ;;  %v5338_v12 = vld [vmem:[%s7035_s21 + $0x18] ss:$0 sm:$0xff]  ;;  %v5340_v61 = vld [vmem:[%s7035_s21 + $0x11] sm:$0x7f]  ;;  %v5341_v10 = vld [vmem:[%s7035_s21 + $0x10] ss:$0 sm:$0xff] }
 0x338   : >> { %5336 = vst [vmem:[%s7035_s21 + $0x20] sm:$0xff] %v3400_v11  ;;  %5339 = vst [vmem:[%s7035_s21 + $0x18] sm:$0xff] %v3409_v1  ;;  %v3418_v13 = vsel %vm8431_vm2, %v5338_v12, %v5340_v61  ;;  %v5343_v18 = vld [vmem:[%s7035_s21 + $0x9] sm:$0x7f]  ;;  %v5344_v19 = vld [vmem:[%s7035_s21 + $0x8] ss:$0 sm:$0xff] }
 0x339   : >> { %v5346_v20 = vld [vmem:[%s7035_s21 + $0x1] sm:$0x7f]  ;;  %5342 = vst [vmem:[%s7035_s21 + $0x10] sm:$0xff] %v3418_v13  ;;  %v3427_v3 = vsel %vm8431_vm2, %v5341_v10, %v5343_v18  ;;  %v3440_v22 = vld [vmem:[%s7039_s3] ss:$0 sm:$0xff]  ;;  %v4943_v11 = vld [vmem:[%s7050_s0 + $0x8] sm:$0xff] }
 0x33a   : >> { %v3435_v21 = vsel %vm8431_vm2, %v5344_v19, %v5346_v20  ;;  %v5347_v23 = vld [vmem:[%s7039_s3 - $0x1] sm:$0xfe]  ;;  %v5348_v24 = vld [vmem:[%s7039_s3 + $0x7] ss:$0 sm:$0xff]  ;;  %5345 = vst [vmem:[%s7035_s21 + $0x8] sm:$0xff] %v3427_v3  ;;  %v4944_v1 = vld [vmem:[%s7052_s23 + $0x8] sm:$0xff]  ;;  %v1690_v61 = vmul.f32 %v4943_v11, %v7022_v17  ;;  %v1693_v13 = vmul.f32 %v4943_v11, %v7024_v14 }
 0x33b   : >> { %3437 = vst [vmem:[%s7035_s21] sm:$0xff] %v3435_v21  ;;  %v3447_v6 = vsel %vm8432_vm1, %v3440_v22, %v5347_v23  ;;  %v5349_v25 = vld [vmem:[%s7039_s3 + $0x7] sm:$0xfe]  ;;  %v5350_v26 = vld [vmem:[%s7039_s3 + $0xf] ss:$0 sm:$0xff]  ;;  %v5352_v27 = vld [vmem:[%s7039_s3 + $0xf] sm:$0xfe]  ;;  %v1691_v10 = vmul.f32 %v4944_v1, %v7024_v14  ;;  %v1694_v18 = vmul.f32 %v4944_v1, %v7022_v17 }
 0x33c   : >> { %3450 = vst [vmem:[%s7039_s3] sm:$0xff] %v3447_v6  ;;  %v3458_v28 = vsel %vm8432_vm1, %v5348_v24, %v5349_v25  ;;  %v3469_v7 = vsel %vm8432_vm1, %v5350_v26, %v5352_v27  ;;  %v5353_v30 = vld [vmem:[%s7039_s3 + $0x17] ss:$0 sm:$0xff]  ;;  %v5355_v31 = vld [vmem:[%s7039_s3 + $0x17] sm:$0xfe]  ;;  %v5356_v32 = vld [vmem:[%s7039_s3 + $0x1f] ss:$0 sm:$0xff] }
 0x33d   : >> { %5351 = vst [vmem:[%s7039_s3 + $0x8] sm:$0xff] %v3458_v28  ;;  %5354 = vst [vmem:[%s7039_s3 + $0x10] sm:$0xff] %v3469_v7  ;;  %v3480_v33 = vsel %vm8432_vm1, %v5353_v30, %v5355_v31  ;;  %v5358_v34 = vld [vmem:[%s7039_s3 + $0x1f] sm:$0xfe]  ;;  %v5359_v9 = vld [vmem:[%s7039_s3 + $0x27] ss:$0 sm:$0xff]  ;;  %v1692_v23 = vsub.f32 %v1690_v61, %v1691_v10  ;;  %v1695_v24 = vadd.f32 %v1694_v18, %v1693_v13 }
 0x33e   : >> { %v5361_v35 = vld [vmem:[%s7039_s3 + $0x27] sm:$0xfe]  ;;  %5357 = vst [vmem:[%s7039_s3 + $0x18] sm:$0xff] %v3480_v33  ;;  %v3491_v37 = vsel %vm8432_vm1, %v5356_v32, %v5358_v34  ;;  %v5362_v39 = vld [vmem:[%s7039_s3 + $0x2f] ss:$0 sm:$0xff]  ;;  %s1818_s21 = smov [#allocation12] }
 0x33f   : >> { %v3502_v38 = vsel %vm8432_vm1, %v5359_v9, %v5361_v35  ;;  %v5364_v40 = vld [vmem:[%s7039_s3 + $0x2f] sm:$0xfe]  ;;  %v5365_v29 = vld [vmem:[%s7039_s3 + $0x37] ss:$0 sm:$0xff]  ;;  %5360 = vst [vmem:[%s7039_s3 + $0x20] sm:$0xff] %v3491_v37  ;;  %v4945_v12 = vld [vmem:[%s7059_s24 + $0x8] sm:$0xff] }
 0x340   : >> { %5363 = vst [vmem:[%s7039_s3 + $0x28] sm:$0xff] %v3502_v38  ;;  %v3513_v41 = vsel %vm8432_vm1, %v5362_v39, %v5364_v40  ;;  %v5367_v43 = vld [vmem:[%s7039_s3 + $0x37] sm:$0xfe]  ;;  %v5368_v44 = vld [vmem:[%s7039_s3 + $0x3f] ss:$0 sm:$0xff]  ;;  %v4946_v19 = vld [vmem:[%s7061_s25 + $0x8] sm:$0xff]  ;;  %v1696_v20 = vmul.f32 %v4945_v12, %v7022_v17  ;;  %v1699_v21 = vmul.f32 %v4945_v12, %v7024_v14 }
 0x341   : >> { %v3528_v45 = vld [vmem:[%s7041_s22] ss:$0 sm:$0xff]  ;;  %5366 = vst [vmem:[%s7039_s3 + $0x30] sm:$0xff] %v3513_v41  ;;  %v3524_v36 = vsel %vm8432_vm1, %v5365_v29, %v5367_v43  ;;  %v5371_v46 = vld [vmem:[%s7041_s22 + $0x39] sm:$0x7f]  ;;  %v1697_v3 = vmul.f32 %v4946_v19, %v7024_v14  ;;  %v1700_v22 = vmul.f32 %v4946_v19, %v7022_v17  ;;  %4947 = vst [vmem:[%s7050_s0 + $0x8] sm:$0xff] %v1692_v23 }
 0x342   : >> { %5370 = vst [vmem:[%s7039_s3 + $0x1] sm:$0x1] %v3528_v45  ;;  %v5372_v48 = vld [vmem:[%s7041_s22 + $0x38] ss:$0 sm:$0xff]  ;;  %v5374_v49 = vld [vmem:[%s7041_s22 + $0x31] sm:$0x7f]  ;;  %v3537_v50 = vsel %vm8431_vm2, %v5368_v44, %v5371_v46 }
 0x343   : >> { %5369 = vst [vmem:[%s7039_s3 + $0x38] sm:$0xff] %v3524_v36  ;;  %v3546_v42 = vsel %vm8431_vm2, %v5372_v48, %v5374_v49  ;;  %v5375_v52 = vld [vmem:[%s7041_s22 + $0x30] ss:$0 sm:$0xff]  ;;  %v5377_v53 = vld [vmem:[%s7041_s22 + $0x29] sm:$0x7f]  ;;  %5373 = vst [vmem:[%s7041_s22 + $0x38] sm:$0xff] %v3537_v50  ;;  %v1698_v6 = vsub.f32 %v1696_v20, %v1697_v3  ;;  %v1701_v25 = vadd.f32 %v1700_v22, %v1699_v21 }
 0x344   : >> { %v5378_v51 = vld [vmem:[%s7041_s22 + $0x28] ss:$0 sm:$0xff]  ;;  %5376 = vst [vmem:[%s7041_s22 + $0x30] sm:$0xff] %v3546_v42  ;;  %v3555_v47 = vsel %vm8431_vm2, %v5375_v52, %v5377_v53  ;;  %v5380_v56 = vld [vmem:[%s7041_s22 + $0x21] sm:$0x7f]  ;;  %4948 = vst [vmem:[%s7052_s23 + $0x8] sm:$0xff] %v1695_v24 }
 0x345   : >> { %v5381_v57 = vld [vmem:[%s7041_s22 + $0x20] ss:$0 sm:$0xff]  ;;  %v5383_v58 = vld [vmem:[%s7041_s22 + $0x19] sm:$0x7f]  ;;  %5379 = vst [vmem:[%s7041_s22 + $0x28] sm:$0xff] %v3555_v47  ;;  %v3564_v54 = vsel %vm8431_vm2, %v5378_v51, %v5380_v56  ;;  %4949 = vst [vmem:[%s7059_s24 + $0x8] sm:$0xff] %v1698_v6 }
 0x346   : >> { %v3573_v55 = vsel %vm8431_vm2, %v5381_v57, %v5383_v58  ;;  %v5384_v60 = vld [vmem:[%s7041_s22 + $0x18] ss:$0 sm:$0xff]  ;;  %v5386_v62 = vld [vmem:[%s7041_s22 + $0x11] sm:$0x7f]  ;;  %v5387_v63 = vld [vmem:[%s7041_s22 + $0x10] ss:$0 sm:$0xff] }
 0x347   : >> { %5382 = vst [vmem:[%s7041_s22 + $0x20] sm:$0xff] %v3564_v54  ;;  %5385 = vst [vmem:[%s7041_s22 + $0x18] sm:$0xff] %v3573_v55  ;;  %v3582_v0 = vsel %vm8431_vm2, %v5384_v60, %v5386_v62  ;;  %v5389_v59 = vld [vmem:[%s7041_s22 + $0x9] sm:$0x7f]  ;;  %v5390_v2 = vld [vmem:[%s7041_s22 + $0x8] ss:$0 sm:$0xff] }
 0x348   : >> { %v5392_v4 = vld [vmem:[%s7041_s22 + $0x1] sm:$0x7f]  ;;  %5388 = vst [vmem:[%s7041_s22 + $0x10] sm:$0xff] %v3582_v0  ;;  %v3591_v5 = vsel %vm8431_vm2, %v5387_v63, %v5389_v59  ;;  %4950 = vst [vmem:[%s7061_s25 + $0x8] sm:$0xff] %v1701_v25  ;;  %v4951_v26 = vld [vmem:[%s1706_s26 + $0x10] sm:$0xff]  ;;  %s1820_s3 = smov [#allocation13] }
 0x349   : >> { %v3599_v8 = vsel %vm8431_vm2, %v5390_v2, %v5392_v4  ;;  %5391 = vst [vmem:[%s7041_s22 + $0x8] sm:$0xff] %v3591_v5  ;;  %v1718_v28 = vmul.f32 %v4951_v26, %v7022_v17  ;;  %v1721_v30 = vmul.f32 %v4951_v26, %v7024_v14  ;;  %s1824_s0 = smov [#allocation15]  ;;  %s7290_s23 = smov [#allocation12] }
 0x34a   : >> { %3601 = vst [vmem:[%s7041_s22] sm:$0xff] %v3599_v8  ;;  %s1822_s22 = smov [#allocation14]  ;;  %s7292_s24 = smov [#allocation13] }
 0x34b   : >> { %v4952_v27 = vld [vmem:[%s1708_s27 + $0x10] sm:$0xff]  ;;  %s7300_s25 = smov [#allocation14] }
 0x34c   : >> { %v1719_v7 = vmul.f32 %v4952_v27, %v7024_v14  ;;  %v1722_v31 = vmul.f32 %v4952_v27, %v7022_v17  ;;  %v4953_v32 = vld [vmem:[%s1710_s28 + $0x10] sm:$0xff] }
 0x34d   : >> { %v1724_v34 = vmul.f32 %v4953_v32, %v7022_v17  ;;  %v1727_v35 = vmul.f32 %v4953_v32, %v7024_v14 }
 0x34e   : >> { %v1720_v38 = vsub.f32 %v1718_v28, %v1719_v7  ;;  %v1723_v39 = vadd.f32 %v1722_v31, %v1721_v30 }
 0x34f   : >> { %v4954_v33 = vld [vmem:[%s1712_s29 + $0x10] sm:$0xff] }
 0x350   : >> { %v1725_v9 = vmul.f32 %v4954_v33, %v7024_v14  ;;  %v1728_v37 = vmul.f32 %v4954_v33, %v7022_v17  ;;  %4955 = vst [vmem:[%s1706_s26 + $0x10] sm:$0xff] %v1720_v38  ;;  %4956 = vst [vmem:[%s1708_s27 + $0x10] sm:$0xff] %v1723_v39  ;;  %s7302_s26 = smov [#allocation15]  ;;  %s1875_s27 = smov [#allocation19] }
 0x352   : >> { %v1726_v40 = vsub.f32 %v1724_v34, %v1725_v9  ;;  %v1729_v29 = vadd.f32 %v1728_v37, %v1727_v35 }
 0x354   : >> { %4957 = vst [vmem:[%s1710_s28 + $0x10] sm:$0xff] %v1726_v40  ;;  %4958 = vst [vmem:[%s1712_s29 + $0x10] sm:$0xff] %v1729_v29  ;;  %s7406_s28 = smov [#allocation13]  ;;  %s7427_s29 = smov [#allocation12] }
 0x357   : >> { %v4959_v41 = vld [vmem:[%s1734_s30 + $0x18] sm:$0xff] }
 0x358   : >> { %v4960_v43 = vld [vmem:[%s1736_s1 + $0x18] sm:$0xff]  ;;  %v1746_v44 = vmul.f32 %v4959_v41, %v7022_v17  ;;  %v1749_v36 = vmul.f32 %v4959_v41, %v7024_v14 }
 0x359   : >> { %v1747_v45 = vmul.f32 %v4960_v43, %v7024_v14  ;;  %v1750_v46 = vmul.f32 %v4960_v43, %v7022_v17 }
 0x35b   : >> { %v4961_v48 = vld [vmem:[%s1738_s12 + $0x18] sm:$0xff]  ;;  %v1748_v51 = vsub.f32 %v1746_v44, %v1747_v45  ;;  %v1751_v47 = vadd.f32 %v1750_v46, %v1749_v36  ;;  %v7305_v36 = vadd.s32 8, %v7288_v16  ;;  %v7308_v46 = vadd.s32 16, %v7288_v16 }
 0x35c   : >> { %v4962_v49 = vld [vmem:[%s1740_s13 + $0x18] sm:$0xff]  ;;  %v1752_v50 = vmul.f32 %v4961_v48, %v7022_v17  ;;  %v1755_v52 = vmul.f32 %v4961_v48, %v7024_v14  ;;  %v7311_v48 = vadd.s32 24, %v7288_v16 }
 0x35d   : >> { %v1753_v42 = vmul.f32 %v4962_v49, %v7024_v14  ;;  %v1756_v53 = vmul.f32 %v4962_v49, %v7022_v17  ;;  %4963 = vst [vmem:[%s1734_s30 + $0x18] sm:$0xff] %v1748_v51  ;;  %4964 = vst [vmem:[%s1736_s1 + $0x18] sm:$0xff] %v1751_v47  ;;  %v7314_v49 = vadd.s32 32, %v7288_v16  ;;  %vm1894_vm4 = vcmp.eq.s32.totalorder %v7305_v36, %v7295_v15  ;;  %s7431_s30 = smov [#allocation20]  ;;  %s7447_s1 = smov [#allocation14] }
 0x35e   : >> { %vm1902_vm5 = vcmp.eq.s32.totalorder %v7308_v46, %v7295_v15  ;;  %vm1910_vm6 = vcmp.eq.s32.totalorder %v7311_v48, %v7295_v15 }
 0x35f   : >> { %v1754_v56 = vsub.f32 %v1752_v50, %v1753_v42  ;;  %v1757_v57 = vadd.f32 %v1756_v53, %v1755_v52  ;;  %v7317_v50 = vadd.s32 40, %v7288_v16  ;;  %v7320_v42 = vadd.s32 48, %v7288_v16 }
 0x360   : >> { %v7323_v16 = vmov %v6349_v16  ;;  %vm1918_vm7 = vcmp.eq.s32.totalorder %v7314_v49, %v7295_v15  ;;  %v7377_v15 = vmov %v6347_v15 }
 0x361   : >> { %4965 = vst [vmem:[%s1738_s12 + $0x18] sm:$0xff] %v1754_v56  ;;  %4966 = vst [vmem:[%s1740_s13 + $0x18] sm:$0xff] %v1757_v57  ;;  %v7328_v16 = vmov %v6349_v16  ;;  %v7398_v15 = vmov %v6347_v15  ;;  %s7524_s12 = smov [#allocation15]  ;;  %s7548_s13 = smov [#allocation13] }
 0x362   : >> { %vm1955_vm11 = vcmp.eq.s32.totalorder %v7328_v16, %v7377_v15 }
 0x364   : >> { %v4967_v58 = vld [vmem:[%s1762_s14 + $0x20] sm:$0xff] }
 0x365   : >> { %v4968_v54 = vld [vmem:[%s1764_s15 + $0x20] sm:$0xff]  ;;  %v1774_v55 = vmul.f32 %v4967_v58, %v7022_v17  ;;  %v1777_v62 = vmul.f32 %v4967_v58, %v7024_v14 }
 0x366   : >> { %v1775_v60 = vmul.f32 %v4968_v54, %v7024_v14  ;;  %v1778_v63 = vmul.f32 %v4968_v54, %v7022_v17 }
 0x368   : >> { %v4969_v0 = vld [vmem:[%s1766_s16 + $0x20] sm:$0xff]  ;;  %v1776_v11 = vsub.f32 %v1774_v55, %v1775_v60  ;;  %v1779_v1 = vadd.f32 %v1778_v63, %v1777_v62 }
 0x369   : >> { %v4970_v59 = vld [vmem:[%s1768_s17 + $0x20] sm:$0xff]  ;;  %v1780_v2 = vmul.f32 %v4969_v0, %v7022_v17  ;;  %v1783_v5 = vmul.f32 %v4969_v0, %v7024_v14  ;;  %v7341_v0 = vadd.s32 56, %v7288_v16 }
 0x36a   : >> { %v1781_v4 = vmul.f32 %v4970_v59, %v7024_v14  ;;  %v1784_v8 = vmul.f32 %v4970_v59, %v7022_v17  ;;  %4971 = vst [vmem:[%s1762_s14 + $0x20] sm:$0xff] %v1776_v11  ;;  %4972 = vst [vmem:[%s1764_s15 + $0x20] sm:$0xff] %v1779_v1  ;;  %v7344_v59 = vadd.s32 8, %v7323_v16  ;;  %v7361_v11 = vadd.s32 32, %v7323_v16  ;;  %s7636_s14 = smov [#allocation12]  ;;  %s6249_s15 = smov 1  }
 0x36b   : >> { %v1961_v1 = vadd.s32 8, %v7328_v16 }
 0x36c   : >> { %v1782_v12 = vsub.f32 %v1780_v2, %v1781_v4  ;;  %v1785_v61 = vadd.f32 %v1784_v8, %v1783_v5  ;;  %v7349_v5 = vadd.s32 16, %v7323_v16  ;;  %v7352_v8 = vadd.s32 24, %v7323_v16 }
 0x36d   : >> { %vm1962_vm12 = vcmp.eq.s32.totalorder %v1961_v1, %v7377_v15 }
 0x36e   : >> { %4973 = vst [vmem:[%s1766_s16 + $0x20] sm:$0xff] %v1782_v12  ;;  %4974 = vst [vmem:[%s1768_s17 + $0x20] sm:$0xff] %v1785_v61  ;;  %v1968_v12 = vadd.s32 16, %v7328_v16  ;;  %v7368_v16 = vmov %v6349_v16  ;;  %v1975_v61 = vadd.s32 24, %v7328_v16  ;;  %s7650_s16 = smov [#allocation12]  ;;  %s7664_s17 = smov [#allocation13] }
 0x36f   : >> { %vm2017_vm8 = vcmp.eq.s32.totalorder %v7368_v16, %v7398_v15 }
 0x370   : >> { %vm1969_vm13 = vcmp.eq.s32.totalorder %v1968_v12, %v7377_v15  ;;  %vm1976_vm1 = vcmp.eq.s32.totalorder %v1975_v61, %v7377_v15 }
 0x371   : >> { %v4975_v10 = vld [vmem:[%s1790_s2 + $0x28] sm:$0xff] }
 0x372   : >> { %v4976_v13 = vld [vmem:[%s1792_s18 + $0x28] sm:$0xff]  ;;  %v1802_v18 = vmul.f32 %v4975_v10, %v7022_v17  ;;  %v1805_v20 = vmul.f32 %v4975_v10, %v7024_v14  ;;  %v1982_v10 = vadd.s32 32, %v7328_v16 }
 0x373   : >> { %v1803_v19 = vmul.f32 %v4976_v13, %v7024_v14  ;;  %v1806_v3 = vmul.f32 %v4976_v13, %v7022_v17  ;;  %v1989_v13 = vadd.s32 40, %v7328_v16 }
 0x374   : >> { %vm1983_vm0 = vcmp.eq.s32.totalorder %v1982_v10, %v7377_v15 }
 0x375   : >> { %v4977_v21 = vld [vmem:[%s1794_s19 + $0x28] sm:$0xff]  ;;  %v1804_v26 = vsub.f32 %v1802_v18, %v1803_v19  ;;  %v1807_v27 = vadd.f32 %v1806_v3, %v1805_v20  ;;  %v7387_v18 = vadd.s32 40, %v7323_v16  ;;  %v7390_v19 = vadd.s32 48, %v7323_v16 }
 0x376   : >> { %v4978_v22 = vld [vmem:[%s1796_s20 + $0x28] sm:$0xff]  ;;  %v1808_v23 = vmul.f32 %v4977_v21, %v7022_v17  ;;  %v1811_v6 = vmul.f32 %v4977_v21, %v7024_v14  ;;  %v1996_v20 = vadd.s32 48, %v7328_v16  ;;  %v2003_v3 = vadd.s32 56, %v7328_v16 }
 0x377   : >> { %v1809_v24 = vmul.f32 %v4978_v22, %v7024_v14  ;;  %v1812_v25 = vmul.f32 %v4978_v22, %v7022_v17  ;;  %4979 = vst [vmem:[%s1790_s2 + $0x28] sm:$0xff] %v1804_v26  ;;  %4980 = vst [vmem:[%s1792_s18 + $0x28] sm:$0xff] %v1807_v27  ;;  %v7395_v21 = vadd.s32 56, %v7323_v16  ;;  %v7401_v22 = vadd.s32 8, %v7368_v16  ;;  %s8435_s2 = smov 127   ;;  %s7668_s18 = smov [#allocation13] }
 0x378   : >> { %vm1990_vm10 = vcmp.eq.s32.totalorder %v1989_v13, %v7377_v15  ;;  %vm1997_vm14 = vcmp.eq.s32.totalorder %v1996_v20, %v7377_v15  ;;  %vm2004_vm9 = vcmp.eq.s32.totalorder %v2003_v3, %v7377_v15  ;;  %v7442_v26 = vadd.s32 40, %v7368_v16 }
 0x379   : >> { %v1810_v28 = vsub.f32 %v1808_v23, %v1809_v24  ;;  %v1813_v7 = vadd.f32 %v1812_v25, %v1811_v6  ;;  %v7404_v23 = vadd.s32 16, %v7368_v16  ;;  %v7413_v24 = vadd.s32 24, %v7368_v16  ;;  %v7429_v25 = vld [vmem:[%s1875_s27] ss:$0 sm:$0xff]  ;;  %s7733_s27 = smov [#allocation13] }
 0x37a   : >> { %v7425_v6 = vadd.s32 32, %v7368_v16  ;;  %vm2024_vm2 = vcmp.eq.s32.totalorder %v7401_v22, %v7398_v15 }
 0x37b   : >> { %4981 = vst [vmem:[%s1794_s19 + $0x28] sm:$0xff] %v1810_v28  ;;  %4982 = vst [vmem:[%s1796_s20 + $0x28] sm:$0xff] %v1813_v7  ;;  %vm2038_vm15 = vcmp.eq.s32.totalorder %v7413_v24, %v7398_v15  ;;  %s7674_s19 = smov [#allocation14]  ;;  %s7680_s20 = smov [#allocation12] }
 0x37e   : >> { %v4983_v30 = vld [vmem:[%s1818_s21 + $0x30] sm:$0xff] }
 0x37f   : >> { %v4984_v31 = vld [vmem:[%s1820_s3 + $0x30] sm:$0xff]  ;;  %v1830_v32 = vmul.f32 %v4983_v30, %v7022_v17  ;;  %v1833_v34 = vmul.f32 %v4983_v30, %v7024_v14  ;;  %v7454_v30 = vadd.s32 48, %v7368_v16 }
 0x380   : >> { %v1831_v33 = vmul.f32 %v4984_v31, %v7024_v14  ;;  %v1834_v9 = vmul.f32 %v4984_v31, %v7022_v17  ;;  %v7457_v31 = vadd.s32 56, %v7368_v16 }
 0x382   : >> { %v4985_v35 = vld [vmem:[%s1822_s22 + $0x30] sm:$0xff]  ;;  %v1832_v41 = vsub.f32 %v1830_v32, %v1831_v33  ;;  %v1835_v43 = vadd.f32 %v1834_v9, %v1833_v34 }
 0x383   : >> { %v4986_v37 = vld [vmem:[%s1824_s0 + $0x30] sm:$0xff]  ;;  %v1836_v38 = vmul.f32 %v4985_v35, %v7022_v17  ;;  %v1839_v40 = vmul.f32 %v4985_v35, %v7024_v14 }
 0x384   : >> { %v1837_v39 = vmul.f32 %v4986_v37, %v7024_v14  ;;  %v1840_v29 = vmul.f32 %v4986_v37, %v7022_v17  ;;  %4987 = vst [vmem:[%s1818_s21 + $0x30] sm:$0xff] %v1832_v41  ;;  %4988 = vst [vmem:[%s1820_s3 + $0x30] sm:$0xff] %v1835_v43  ;;  %s7684_s21 = smov [#allocation14]  ;;  %s7694_s3 = smov [#allocation13] }
 0x386   : >> { %v1838_v44 = vsub.f32 %v1836_v38, %v1837_v39  ;;  %v1841_v45 = vadd.f32 %v1840_v29, %v1839_v40 }
 0x388   : >> { %4989 = vst [vmem:[%s1822_s22 + $0x30] sm:$0xff] %v1838_v44  ;;  %4990 = vst [vmem:[%s1824_s0 + $0x30] sm:$0xff] %v1841_v45  ;;  %s7698_s22 = smov [#allocation15]  ;;  %s7704_s0 = smov [#allocation14] }
 0x38b   : >> { %v4991_v52 = vld [vmem:[%s7290_s23 + $0x38] sm:$0xff] }
 0x38c   : >> { %v4992_v53 = vld [vmem:[%s7292_s24 + $0x38] sm:$0xff]  ;;  %v1861_v47 = vmul.f32 %v4991_v52, %v7024_v14  ;;  %v1858_v57 = vmul.f32 %v4991_v52, %v7022_v17 }
 0x38d   : >> { %v1859_v51 = vmul.f32 %v4992_v53, %v7024_v14  ;;  %v1862_v56 = vmul.f32 %v4992_v53, %v7022_v17 }
 0x38f   : >> { %v4993_v58 = vld [vmem:[%s7300_s25 + $0x38] sm:$0xff]  ;;  %v1863_v2 = vadd.f32 %v1862_v56, %v1861_v47  ;;  %v1860_v4 = vsub.f32 %v1858_v57, %v1859_v51  ;;  %v7502_v56 = vld [vmem:[%s7431_s30] ss:$0 sm:$0xff]  ;;  %s7753_s30 = smov [#allocation12] }
 0x390   : >> { %v4994_v54 = vld [vmem:[%s7302_s26 + $0x38] sm:$0xff]  ;;  %v1864_v55 = vmul.f32 %v4993_v58, %v7022_v17  ;;  %v1867_v62 = vmul.f32 %v4993_v58, %v7024_v14 }
 0x391   : >> { %v1865_v60 = vmul.f32 %v4994_v54, %v7024_v14  ;;  %v1868_v63 = vmul.f32 %v4994_v54, %v7022_v17  ;;  %4996 = vst [vmem:[%s7292_s24 + $0x38] sm:$0xff] %v1863_v2  ;;  %4995 = vst [vmem:[%s7290_s23 + $0x38] sm:$0xff] %v1860_v4  ;;  %s7710_s23 = smov [#allocation12]  ;;  %s7714_s24 = smov [#allocation15] }
 0x393   : >> { %v1866_v14 = vsub.f32 %v1864_v55, %v1865_v60  ;;  %v1869_v17 = vadd.f32 %v1868_v63, %v1867_v62 }
 0x395   : >> { %4997 = vst [vmem:[%s7300_s25 + $0x38] sm:$0xff] %v1866_v14  ;;  %4998 = vst [vmem:[%s7302_s26 + $0x38] sm:$0xff] %v1869_v17  ;;  %s7723_s25 = smov [#allocation14]  ;;  %s7729_s26 = smov [#allocation12] }
 0x398   : >> { %v1952_v27 = vld [vmem:[%s7406_s28] sm:$0xff]  ;;  %v5013_v28 = vld [vmem:[%s7406_s28 + $0x8] sm:$0xff]  ;;  %v5015_v7 = vld [vmem:[%s7406_s28 + $0x10] sm:$0xff] }
 0x399   : >> { %v1956_v32 = vsel %vm1955_vm11, 0.0, %v1952_v27  ;;  %v1963_v33 = vsel %vm1962_vm12, 0.0, %v5013_v28  ;;  %v1970_v34 = vsel %vm1969_vm13, 0.0, %v5015_v7  ;;  %v5017_v9 = vld [vmem:[%s7406_s28 + $0x18] sm:$0xff]  ;;  %v5019_v35 = vld [vmem:[%s7406_s28 + $0x20] sm:$0xff]  ;;  %v5021_v37 = vld [vmem:[%s7406_s28 + $0x28] sm:$0xff]  ;;  %vm2045_vm11 = vcmp.eq.s32.totalorder %v7425_v6, %v7398_v15 }
 0x39a   : >> { %1957 = vst [vmem:[%s7406_s28] sm:$0xff] %v1956_v32  ;;  %5014 = vst [vmem:[%s7406_s28 + $0x8] sm:$0xff] %v1963_v33  ;;  %v1977_v38 = vsel %vm1976_vm1, 0.0, %v5017_v9  ;;  %v1984_v39 = vsel %vm1983_vm0, 0.0, %v5019_v35  ;;  %v1991_v40 = vsel %vm1990_vm10, 0.0, %v5021_v37  ;;  %v5023_v29 = vld [vmem:[%s7406_s28 + $0x30] sm:$0xff]  ;;  %v5025_v41 = vld [vmem:[%s7406_s28 + $0x38] sm:$0xff]  ;;  %vm2052_vm0 = vcmp.eq.s32.totalorder %v7442_v26, %v7398_v15 }
 0x39b   : >> { %5016 = vst [vmem:[%s7406_s28 + $0x10] sm:$0xff] %v1970_v34  ;;  %v1883_v43 = vld [vmem:[%s7427_s29] sm:$0xff]  ;;  %5018 = vst [vmem:[%s7406_s28 + $0x18] sm:$0xff] %v1977_v38  ;;  %v1998_v44 = vsel %vm1997_vm14, 0.0, %v5023_v29  ;;  %v2005_v45 = vsel %vm2004_vm9, 0.0, %v5025_v41  ;;  %v4999_v53 = vld [vmem:[%s7427_s29 + $0x8] sm:$0xff]  ;;  %vm2059_vm1 = vcmp.eq.s32.totalorder %v7454_v30, %v7398_v15  ;;  %vm2129_vm9 = vcmp.eq.s32.totalorder %v7390_v19, %v7298_v15 }
 0x39c   : >> { %5020 = vst [vmem:[%s7406_s28 + $0x20] sm:$0xff] %v1984_v39  ;;  %5022 = vst [vmem:[%s7406_s28 + $0x28] sm:$0xff] %v1991_v40  ;;  %v1887_v52 = vsel %vm1886_vm3, %v7429_v25, %v1883_v43  ;;  %v5001_v51 = vld [vmem:[%s7427_s29 + $0x10] sm:$0xff]  ;;  %v5003_v47 = vld [vmem:[%s7427_s29 + $0x18] sm:$0xff]  ;;  %v1895_v57 = vsel %vm1894_vm4, %v7429_v25, %v4999_v53  ;;  %vm8448_vm3 = vcmp.eq.s32.totalorder %v7317_v50, %v7295_v15 }
 0x39d   : >> { %5024 = vst [vmem:[%s7406_s28 + $0x30] sm:$0xff] %v1998_v44  ;;  %5026 = vst [vmem:[%s7406_s28 + $0x38] sm:$0xff] %v2005_v45  ;;  %v1903_v58 = vsel %vm1902_vm5, %v7429_v25, %v5001_v51  ;;  %v1911_v54 = vsel %vm1910_vm6, %v7429_v25, %v5003_v47  ;;  %v5005_v55 = vld [vmem:[%s7427_s29 + $0x20] sm:$0xff]  ;;  %v5007_v60 = vld [vmem:[%s7427_s29 + $0x28] sm:$0xff]  ;;  %vm8449_vm4 = vcmp.eq.s32.totalorder %v7320_v42, %v7295_v15  ;;  %s7741_s28 = smov [#allocation15] }
 0x39e   : >> { %1888 = vst [vmem:[%s7427_s29] sm:$0xff] %v1887_v52  ;;  %v5009_v62 = vld [vmem:[%s7427_s29 + $0x30] sm:$0xff]  ;;  %5000 = vst [vmem:[%s7427_s29 + $0x8] sm:$0xff] %v1895_v57  ;;  %v1919_v36 = vsel %vm1918_vm7, %v7429_v25, %v5005_v55  ;;  %v1927_v46 = vsel %vm8448_vm3, %v7429_v25, %v5007_v60  ;;  %v5011_v63 = vld [vmem:[%s7427_s29 + $0x38] sm:$0xff]  ;;  %vm2066_vm5 = vcmp.eq.s32.totalorder %v7457_v31, %v7398_v15  ;;  %vm8461_vm3 = vcmp.lt.s32.totalorder %v6347_v15, 64 }
 0x39f   : >> { %5002 = vst [vmem:[%s7427_s29 + $0x10] sm:$0xff] %v1903_v58  ;;  %5004 = vst [vmem:[%s7427_s29 + $0x18] sm:$0xff] %v1911_v54  ;;  %v1935_v48 = vsel %vm8449_vm4, %v7429_v25, %v5009_v62  ;;  %v2014_v2 = vld [vmem:[%s7447_s1] sm:$0xff]  ;;  %v5027_v4 = vld [vmem:[%s7447_s1 + $0x8] sm:$0xff]  ;;  %vm2121_vm6 = vcmp.eq.s32.totalorder %v7387_v18, %v7298_v15  ;;  %vm8450_vm7 = vcmp.eq.s32.totalorder %v7341_v0, %v7295_v15 }
 0x3a0   : >> { %5006 = vst [vmem:[%s7427_s29 + $0x20] sm:$0xff] %v1919_v36  ;;  %5008 = vst [vmem:[%s7427_s29 + $0x28] sm:$0xff] %v1927_v46  ;;  %v1943_v49 = vsel %vm8450_vm7, %v7429_v25, %v5011_v63  ;;  %v2018_v50 = vsel %vm2017_vm8, 0.0, %v2014_v2  ;;  %v2025_v42 = vsel %vm2024_vm2, 0.0, %v5027_v4  ;;  %v5029_v14 = vld [vmem:[%s7447_s1 + $0x10] sm:$0xff]  ;;  %v5031_v17 = vld [vmem:[%s7447_s1 + $0x18] sm:$0xff]  ;;  %vm8451_vm8 = vcmp.eq.s32.totalorder %v7404_v23, %v7398_v15 }
 0x3a1   : >> { %5010 = vst [vmem:[%s7427_s29 + $0x30] sm:$0xff] %v1935_v48  ;;  %v5033_v1 = vld [vmem:[%s7447_s1 + $0x20] sm:$0xff]  ;;  %5012 = vst [vmem:[%s7427_s29 + $0x38] sm:$0xff] %v1943_v49  ;;  %v2032_v0 = vsel %vm8451_vm8, 0.0, %v5029_v14  ;;  %v2039_v12 = vsel %vm2038_vm15, 0.0, %v5031_v17  ;;  %v5035_v10 = vld [vmem:[%s7447_s1 + $0x28] sm:$0xff]  ;;  %vm2137_vm2 = vcmp.eq.s32.totalorder %v7395_v21, %v7298_v15  ;;  %vm8452_vm10 = vcmp.eq.s32.totalorder %v7323_v16, %v7298_v15 }
 0x3a2   : >> { %2019 = vst [vmem:[%s7447_s1] sm:$0xff] %v2018_v50  ;;  %5028 = vst [vmem:[%s7447_s1 + $0x8] sm:$0xff] %v2025_v42  ;;  %v2046_v61 = vsel %vm2045_vm11, 0.0, %v5033_v1  ;;  %v5037_v13 = vld [vmem:[%s7447_s1 + $0x30] sm:$0xff]  ;;  %v5039_v20 = vld [vmem:[%s7447_s1 + $0x38] sm:$0xff]  ;;  %v2053_v3 = vsel %vm2052_vm0, 0.0, %v5035_v10  ;;  %vm8453_vm12 = vcmp.eq.s32.totalorder %v7344_v59, %v7298_v15  ;;  %vm8454_vm13 = vcmp.eq.s32.totalorder %v7349_v5, %v7298_v15  ;;  %s7747_s29 = smov [#allocation14] }
 0x3a3   : >> { %5030 = vst [vmem:[%s7447_s1 + $0x10] sm:$0xff] %v2032_v0  ;;  %5032 = vst [vmem:[%s7447_s1 + $0x18] sm:$0xff] %v2039_v12  ;;  %v2060_v22 = vsel %vm2059_vm1, 0.0, %v5037_v13  ;;  %v2067_v23 = vsel %vm2066_vm5, 0.0, %v5039_v20  ;;  %v2078_v24 = vld [vmem:[%s7524_s12] sm:$0xff]  ;;  %v5041_v6 = vld [vmem:[%s7524_s12 + $0x8] sm:$0xff]  ;;  %vm8455_vm14 = vcmp.eq.s32.totalorder %v7352_v8, %v7298_v15  ;;  %vm8456_vm15 = vcmp.eq.s32.totalorder %v7361_v11, %v7298_v15 }
 0x3a4   : >> { %5034 = vst [vmem:[%s7447_s1 + $0x20] sm:$0xff] %v2046_v61  ;;  %v5043_v25 = vld [vmem:[%s7524_s12 + $0x10] sm:$0xff]  ;;  %5036 = vst [vmem:[%s7447_s1 + $0x28] sm:$0xff] %v2053_v3  ;;  %v5045_v26 = vld [vmem:[%s7524_s12 + $0x18] sm:$0xff]  ;;  %v2082_v7 = vsel %vm8452_vm10, %v7502_v56, %v2078_v24  ;;  %v2090_v30 = vsel %vm8453_vm12, %v7502_v56, %v5041_v6  ;;  %vm2151_vm11 = vcmp.eq.s32.totalorder %v6347_v15, 0  ;;  %vm2155_vm0 = vcmp.eq.s32.totalorder %v6347_v15, 1 }
 0x3a5   : >> { %5038 = vst [vmem:[%s7447_s1 + $0x30] sm:$0xff] %v2060_v22  ;;  %5040 = vst [vmem:[%s7447_s1 + $0x38] sm:$0xff] %v2067_v23  ;;  %v5047_v27 = vld [vmem:[%s7524_s12 + $0x20] sm:$0xff]  ;;  %v5049_v28 = vld [vmem:[%s7524_s12 + $0x28] sm:$0xff]  ;;  %v2098_v31 = vsel %vm8454_vm13, %v7502_v56, %v5043_v25  ;;  %v2106_v34 = vsel %vm8455_vm14, %v7502_v56, %v5045_v26  ;;  %s7757_s1 = smov [#allocation13]  ;;  %vm2168_vm1 = vcmp.eq.s32.totalorder %v6347_v15, 63 }
 0x3a6   : >> { %v5051_v32 = vld [vmem:[%s7524_s12 + $0x30] sm:$0xff]  ;;  %v5053_v33 = vld [vmem:[%s7524_s12 + $0x38] sm:$0xff]  ;;  %v2114_v59 = vsel %vm8456_vm15, %v7502_v56, %v5047_v27  ;;  %v2122_v5 = vsel %vm2121_vm6, %v7502_v56, %v5049_v28  ;;  %2083 = vst [vmem:[%s7524_s12] sm:$0xff] %v2082_v7  ;;  %5042 = vst [vmem:[%s7524_s12 + $0x8] sm:$0xff] %v2090_v30 }
 0x3a7   : >> { %5044 = vst [vmem:[%s7524_s12 + $0x10] sm:$0xff] %v2098_v31  ;;  %v2142_v9 = vld [vmem:[%s7548_s13] sm:$0xff]  ;;  %v2130_v8 = vsel %vm2129_vm9, %v7502_v56, %v5051_v32  ;;  %v2138_v11 = vsel %vm2137_vm2, %v7502_v56, %v5053_v33  ;;  %5046 = vst [vmem:[%s7524_s12 + $0x18] sm:$0xff] %v2106_v34  ;;  %v5059_v21 = vld [vmem:[%s7664_s17 + $0x10] sm:$0xff] }
 0x3a8   : >> { %5048 = vst [vmem:[%s7524_s12 + $0x20] sm:$0xff] %v2114_v59  ;;  %5050 = vst [vmem:[%s7524_s12 + $0x28] sm:$0xff] %v2122_v5  ;;  %2143 = vrot.lane.b32.xlu0 %v2142_v9, %s6249_s15  ;;  %v7655_v18 = vld [vmem:[%s7636_s14] sm:$0xff] }
 0x3a9   : >> { %5052 = vst [vmem:[%s7524_s12 + $0x30] sm:$0xff] %v2130_v8  ;;  %5054 = vst [vmem:[%s7524_s12 + $0x38] sm:$0xff] %v2138_v11  ;;  %2147 = vrot.lane.b32.xlu1 %v7655_v18, %s6249_s15  ;;  %v7660_v19 = vld [vmem:[%s7650_s16 + $0x8] sm:$0xff]  ;;  %s7765_s12 = smov [#allocation15] }
 0x3aa   : >> { %v5055_v35 = vld [vmem:[%s7668_s18 + $0x8] sm:$0xff]  ;;  %v7687_v38 = vld [vmem:[%s7680_s20 + $0x10] sm:$0xff]  ;;  %v5063_v40 = vld [vmem:[%s7694_s3 + $0x18] sm:$0xff] }
 0x3ab   : >> { %v7717_v43 = vld [vmem:[%s7710_s23 + $0x18] sm:$0xff]  ;;  %v7736_v52 = vld [vmem:[%s7729_s26 + $0x20] sm:$0xff]  ;;  %v7760_v56 = vld [vmem:[%s7753_s30 + $0x28] sm:$0xff] }
 0x3ac   : >> { %2179 = vrot.lane.b32.xlu0 %v7660_v19, %s6249_s15  ;;  %v7678_v37 = vld [vmem:[%s7674_s19] sm:$0xff]  ;;  %v7692_v39 = vld [vmem:[%s7684_s21 + $0x8] sm:$0xff]  ;;  %v7708_v41 = vld [vmem:[%s7704_s0 + $0x10] sm:$0xff] }
 0x3ad   : >> { %2164 = vrot.lane.b32.xlu1 %v2142_v9, %s8435_s2  ;;  %v7727_v45 = vld [vmem:[%s7723_s25 + $0x18] sm:$0xff]  ;;  %v5067_v53 = vld [vmem:[%s7733_s27 + $0x20] sm:$0xff]  ;;  %v5071_v57 = vld [vmem:[%s7757_s1 + $0x28] sm:$0xff] }
 0x3ae   : >> { %v7751_v47 = vld [vmem:[%s7747_s29 + $0x20] sm:$0xff]  ;;  %v7775_v54 = vld [vmem:[%s7771_s9 + $0x28] sm:$0xff]  ;;  %v7784_v55 = vld [vmem:[%s7777_s8 + $0x30] sm:$0xff] }
 0x3af   : >> { %v5075_v60 = vld [vmem:[%s7781_s7 + $0x30] sm:$0xff]  ;;  %v7808_v46 = vld [vmem:[%s7801_s4 + $0x38] sm:$0xff]  ;;  %s8460_s7 = smov 127   ;;  %vm8462_vm4 = vmmov %vm8461_vm3 }
 0x3b0   : >> { %2207 = vrot.lane.b32.xlu0 %v5059_v21, %s6249_s15  ;;  %v2433_v29 = vld [vmem:[%s7698_s22] sm:$0xff]  ;;  %v5100_v44 = vld [vmem:[%s7714_s24 + $0x8] sm:$0xff]  ;;  %v5101_v51 = vld [vmem:[%s7741_s28 + $0x10] sm:$0xff] }
 0x3b1   : >> { %2175 = vrot.lane.b32.xlu1 %v5055_v35, %s6249_s15  ;;  %v5105_v58 = vld [vmem:[%s7765_s12 + $0x18] sm:$0xff]  ;;  %v5109_v62 = vld [vmem:[%s7789_s6 + $0x20] sm:$0xff]  ;;  %v7799_v36 = vld [vmem:[%s7795_s5 + $0x30] sm:$0xff]  ;;  %s7824_s5 = smov [#allocation15] }
 0x3b2   : >> { %v5079_v48 = vld [vmem:[%s7805_s10 + $0x38] sm:$0xff]  ;;  %v5113_v63 = vld [vmem:[%s7813_s11 + $0x28] sm:$0xff]  ;;  %s7828_s10 = smov [#allocation14]  ;;  %vm8463_vm5 = vmmov %vm8461_vm3 }
 0x3b3   : >> { %v5121_v4 = vld [vmem:[%s7824_s5 + $0x38] sm:$0xff]  ;;  %vm8464_vm6 = vmmov %vm8461_vm3 }
 0x3b4   : >> { %2228 = vrot.lane.b32.xlu0 %v5059_v21, %s8435_s2  ;;  %v7832_v49 = vld [vmem:[%s7828_s10 + $0x38] sm:$0xff]  ;;  %vm8465_vm7 = vmmov %vm8461_vm3 }
 0x3b5   : >> { %2196 = vrot.lane.b32.xlu1 %v5055_v35, %s8435_s2  ;;  %vm8466_vm9 = vmmov %vm8461_vm3 }
 0x3b6   : >> { %vm8467_vm8 = vmmov %vm8461_vm3 }
 0x3b7   : >> { %vm8468_vm2 = vmmov %vm8461_vm3 }
 0x3b8   : >> { %2417 = vrot.lane.b32.xlu0 %v7678_v37, %s6249_s15  ;;  %vm8469_vm10 = vmmov %vm8468_vm2 }
 0x3b9   : >> { %2211 = vrot.lane.b32.xlu1 %v7687_v38, %s6249_s15  ;;  %vm8470_vm12 = vmmov %vm8468_vm2 }
 0x3ba   : >> { %vm8471_vm13 = vmmov %vm8468_vm2 }
 0x3bb   : >> { %vm8472_vm14 = vmmov %vm8468_vm2 }
 0x3bc   : >> { %2449 = vrot.lane.b32.xlu0 %v7692_v39, %s6249_s15  ;;  %vm8474_vm15 = vmmov %vm8468_vm2 }
 0x3bd   : >> { %2239 = vrot.lane.b32.xlu1 %v5063_v40, %s6249_s15 }
 0x3c0   : >> { %2434 = vrot.lane.b32.xlu0 %v2433_v29, %s8435_s2 }
 0x3c1   : >> { %2413 = vrot.lane.b32.xlu1 %v2433_v29, %s6249_s15 }
 0x3c4   : >> { %2481 = vrot.lane.b32.xlu0 %v7708_v41, %s6249_s15 }
 0x3c5   : >> { %2243 = vrot.lane.b32.xlu1 %v7717_v43, %s6249_s15 }
 0x3c8   : >> { %2466 = vrot.lane.b32.xlu0 %v5100_v44, %s8435_s2 }
 0x3c9   : >> { %2445 = vrot.lane.b32.xlu1 %v5100_v44, %s6249_s15 }
 0x3cc   : >> { %2513 = vrot.lane.b32.xlu0 %v7727_v45, %s6249_s15 }
 0x3cd   : >> { %2275 = vrot.lane.b32.xlu1 %v7736_v52, %s6249_s15 }
 0x3d0   : >> { %2271 = vrot.lane.b32.xlu0 %v5067_v53, %s6249_s15 }
 0x3d1   : >> { %2477 = vrot.lane.b32.xlu1 %v5101_v51, %s6249_s15 }
 0x3d4   : >> { %2498 = vrot.lane.b32.xlu0 %v5101_v51, %s8435_s2 }
 0x3d5   : >> { %2260 = vrot.lane.b32.xlu1 %v5063_v40, %s8435_s2 }
 0x3d8   : >> { %2545 = vrot.lane.b32.xlu0 %v7751_v47, %s6249_s15 }
 0x3d9   : >> { %2307 = vrot.lane.b32.xlu1 %v7760_v56, %s6249_s15 }
 0x3dc   : >> { %2303 = vrot.lane.b32.xlu0 %v5071_v57, %s6249_s15 }
 0x3dd   : >> { %2509 = vrot.lane.b32.xlu1 %v5105_v58, %s6249_s15 }
 0x3e0   : >> { %2530 = vrot.lane.b32.xlu0 %v5105_v58, %s8435_s2 }
 0x3e1   : >> { %2292 = vrot.lane.b32.xlu1 %v5067_v53, %s8435_s2 }
 0x3e4   : >> { %2577 = vrot.lane.b32.xlu0 %v7775_v54, %s6249_s15 }
 0x3e5   : >> { %2339 = vrot.lane.b32.xlu1 %v7784_v55, %s6249_s15 }
 0x3e8   : >> { %2335 = vrot.lane.b32.xlu0 %v5075_v60, %s6249_s15 }
 0x3e9   : >> { %2541 = vrot.lane.b32.xlu1 %v5109_v62, %s6249_s15 }
 0x3ec   : >> { %2562 = vrot.lane.b32.xlu0 %v5109_v62, %s8435_s2 }
 0x3ed   : >> { %2324 = vrot.lane.b32.xlu1 %v5071_v57, %s8435_s2  ;;  %s7816_s2 = smov [#allocation15] }
 0x3ee   : >> { %v5117_v2 = vld [vmem:[%s7816_s2 + $0x30] sm:$0xff] }
 0x3f0   : >> { %2609 = vrot.lane.b32.xlu0 %v7799_v36, %s6249_s15 }
 0x3f1   : >> { %2371 = vrot.lane.b32.xlu1 %v7808_v46, %s6249_s15 }
 0x3f4   : >> { %2367 = vrot.lane.b32.xlu0 %v5079_v48, %s6249_s15 }
 0x3f5   : >> { %2573 = vrot.lane.b32.xlu1 %v5113_v63, %s6249_s15 }
 0x3f8   : >> { %2605 = vrot.lane.b32.xlu0 %v5117_v2, %s6249_s15 }
 0x3f9   : >> { %2356 = vrot.lane.b32.xlu1 %v5075_v60, %s8460_s7 }
 0x3fc   : >> { %2388 = vrot.lane.b32.xlu0 %v5079_v48, %s8460_s7 }
 0x3fd   : >> { %2594 = vrot.lane.b32.xlu1 %v5113_v63, %s8460_s7 }
 0x400   : >> { %2637 = vrot.lane.b32.xlu0 %v5121_v4, %s6249_s15 }
 0x401   : >> { %2641 = vrot.lane.b32.xlu1 %v7832_v49, %s6249_s15 }
 0x405   : >> { %2626 = vrot.lane.b32.xlu1 %v5117_v2, %s8460_s7 }
 0x409   : >> { %2658 = vrot.lane.b32.xlu1 %v5121_v4, %s8460_s7  ;;  %s8473_s7 = sld [smem:[#allocation28_spill]] }
 0x41a   : >> { %v2144_v50 = vpop.permute.xlu0 %2143 }
 0x41b   : >> { %v2148_v42 = vpop.permute.xlu1 %2147 }
 0x41c   : >> { %v2152_v14 = vsel %vm2151_vm11, %v7655_v18, %v2148_v42 }
 0x41d   : >> { %v2156_v1 = vsel %vm2155_vm0, %v2144_v50, %v2152_v14 }
 0x41e   : >> { %v2180_v17 = vpop.permute.xlu0 %2179  ;;  %v2162_v0 = vsel %vm8461_vm3, %v2156_v1, 0.0  ;;  %vm8476_vm3 = vmmov %vm8468_vm2 }
 0x41f   : >> { %v2165_v12 = vpop.permute.xlu1 %2164  ;;  %2394 = vst [vmem:[%s7636_s14] sm:$0xff] %v2162_v0  ;;  %v2184_v13 = vsel %vm2151_vm11, %v7660_v19, %v2180_v17 }
 0x420   : >> { %v2169_v61 = vsel %vm2168_vm1, %v7655_v18, %v2165_v12 }
 0x421   : >> { %2395 = vst [vmem:[%s7548_s13] sm:$0xff] %v2169_v61 }
 0x422   : >> { %v2208_v10 = vpop.permute.xlu0 %2207 }
 0x423   : >> { %v2176_v20 = vpop.permute.xlu1 %2175 }
 0x424   : >> { %v2188_v3 = vsel %vm2155_vm0, %v2176_v20, %v2184_v13 }
 0x425   : >> { %v2194_v23 = vsel %vm8462_vm4, %v2188_v3, 0.0  ;;  %vm8478_vm4 = vmmov %vm8468_vm2 }
 0x426   : >> { %v2229_v22 = vpop.permute.xlu0 %2228  ;;  %5083 = vst [vmem:[%s7650_s16 + $0x8] sm:$0xff] %v2194_v23 }
 0x427   : >> { %v2233_v24 = vsel %vm2168_vm1, %v7687_v38, %v2229_v22  ;;  %v2197_v6 = vpop.permute.xlu1 %2196 }
 0x428   : >> { %v2201_v25 = vsel %vm2168_vm1, %v7660_v19, %v2197_v6 }
 0x429   : >> { %5084 = vst [vmem:[%s7668_s18 + $0x8] sm:$0xff] %v2201_v25 }
 0x42a   : >> { %v2418_v26 = vpop.permute.xlu0 %2417  ;;  %5086 = vst [vmem:[%s7664_s17 + $0x10] sm:$0xff] %v2233_v24 }
 0x42b   : >> { %v2212_v27 = vpop.permute.xlu1 %2211  ;;  %v2422_v59 = vsel %vm2151_vm11, %v7678_v37, %v2418_v26 }
 0x42c   : >> { %v2216_v28 = vsel %vm2151_vm11, %v7687_v38, %v2212_v27 }
 0x42d   : >> { %v2220_v30 = vsel %vm2155_vm0, %v2208_v10, %v2216_v28 }
 0x42e   : >> { %v2450_v7 = vpop.permute.xlu0 %2449  ;;  %v2226_v31 = vsel %vm8463_vm5, %v2220_v30, 0.0  ;;  %vm8479_vm5 = vcmp.eq.s32.totalorder %v6349_v16, 0 }
 0x42f   : >> { %v2240_v32 = vpop.permute.xlu1 %2239  ;;  %5085 = vst [vmem:[%s7680_s20 + $0x10] sm:$0xff] %v2226_v31  ;;  %v2454_v40 = vsel %vm2151_vm11, %v7692_v39, %v2450_v7 }
 0x432   : >> { %v2435_v33 = vpop.permute.xlu0 %2434 }
 0x433   : >> { %v2439_v34 = vsel %vm2168_vm1, %v7678_v37, %v2435_v33  ;;  %v2414_v5 = vpop.permute.xlu1 %2413 }
 0x434   : >> { %2665 = vst [vmem:[%s7698_s22] sm:$0xff] %v2439_v34  ;;  %v2426_v9 = vsel %vm2155_vm0, %v2414_v5, %v2422_v59 }
 0x435   : >> { %v2432_v11 = vsel %vm8464_vm6, %v2426_v9, 0.0  ;;  %vm8480_vm6 = vmmov %vm8479_vm5 }
 0x436   : >> { %v2482_v8 = vpop.permute.xlu0 %2481  ;;  %2664 = vst [vmem:[%s7674_s19] sm:$0xff] %v2432_v11 }
 0x437   : >> { %v2244_v18 = vpop.permute.xlu1 %2243  ;;  %v2486_v48 = vsel %vm2151_vm11, %v7708_v41, %v2482_v8 }
 0x438   : >> { %v2248_v19 = vsel %vm2151_vm11, %v7717_v43, %v2244_v18 }
 0x439   : >> { %v2252_v35 = vsel %vm2155_vm0, %v2240_v32, %v2248_v19 }
 0x43a   : >> { %v2467_v21 = vpop.permute.xlu0 %2466  ;;  %v2258_v38 = vsel %vm8465_vm7, %v2252_v35, 0.0  ;;  %vm8481_vm7 = vmmov %vm8479_vm5 }
 0x43b   : >> { %v2471_v37 = vsel %vm2168_vm1, %v7692_v39, %v2467_v21  ;;  %v2446_v29 = vpop.permute.xlu1 %2445  ;;  %5087 = vst [vmem:[%s7710_s23 + $0x18] sm:$0xff] %v2258_v38 }
 0x43c   : >> { %5126 = vst [vmem:[%s7714_s24 + $0x8] sm:$0xff] %v2471_v37  ;;  %v2458_v44 = vsel %vm2155_vm0, %v2446_v29, %v2454_v40 }
 0x43d   : >> { %v2464_v51 = vsel %vm8466_vm9, %v2458_v44, 0.0  ;;  %vm8482_vm9 = vmmov %vm8479_vm5 }
 0x43e   : >> { %v2514_v53 = vpop.permute.xlu0 %2513  ;;  %5125 = vst [vmem:[%s7684_s21 + $0x8] sm:$0xff] %v2464_v51 }
 0x43f   : >> { %v2276_v57 = vpop.permute.xlu1 %2275 }
 0x440   : >> { %v2280_v58 = vsel %vm2151_vm11, %v7736_v52, %v2276_v57 }
 0x442   : >> { %v2272_v60 = vpop.permute.xlu0 %2271 }
 0x443   : >> { %v2284_v39 = vsel %vm2155_vm0, %v2272_v60, %v2280_v58  ;;  %v2478_v63 = vpop.permute.xlu1 %2477 }
 0x444   : >> { %v2290_v62 = vsel %vm8467_vm8, %v2284_v39, 0.0  ;;  %v2490_v2 = vsel %vm2155_vm0, %v2478_v63, %v2486_v48  ;;  %vm8483_vm8 = vmmov %vm8479_vm5 }
 0x445   : >> { %5089 = vst [vmem:[%s7729_s26 + $0x20] sm:$0xff] %v2290_v62  ;;  %v2496_v50 = vsel %vm8468_vm2, %v2490_v2, 0.0  ;;  %vm8484_vm2 = vmmov %vm8479_vm5 }
 0x446   : >> { %v2499_v4 = vpop.permute.xlu0 %2498  ;;  %5127 = vst [vmem:[%s7704_s0 + $0x10] sm:$0xff] %v2496_v50 }
 0x447   : >> { %v2503_v42 = vsel %vm2168_vm1, %v7708_v41, %v2499_v4  ;;  %v2261_v14 = vpop.permute.xlu1 %2260 }
 0x448   : >> { %5128 = vst [vmem:[%s7741_s28 + $0x10] sm:$0xff] %v2503_v42  ;;  %v2265_v17 = vsel %vm2168_vm1, %v7717_v43, %v2261_v14  ;;  %v2518_v43 = vsel %vm2151_vm11, %v7727_v45, %v2514_v53 }
 0x449   : >> { %5088 = vst [vmem:[%s7694_s3 + $0x18] sm:$0xff] %v2265_v17 }
 0x44a   : >> { %v2546_v1 = vpop.permute.xlu0 %2545 }
 0x44b   : >> { %v2308_v0 = vpop.permute.xlu1 %2307 }
 0x44c   : >> { %v2312_v12 = vsel %vm2151_vm11, %v7760_v56, %v2308_v0 }
 0x44e   : >> { %v2304_v61 = vpop.permute.xlu0 %2303 }
 0x44f   : >> { %v2316_v41 = vsel %vm2155_vm0, %v2304_v61, %v2312_v12  ;;  %v2510_v13 = vpop.permute.xlu1 %2509 }
 0x450   : >> { %v2322_v10 = vsel %vm8469_vm10, %v2316_v41, 0.0  ;;  %v2522_v20 = vsel %vm2155_vm0, %v2510_v13, %v2518_v43  ;;  %vm8485_vm10 = vmmov %vm8484_vm2 }
 0x451   : >> { %5091 = vst [vmem:[%s7753_s30 + $0x28] sm:$0xff] %v2322_v10  ;;  %v2528_v22 = vsel %vm8470_vm12, %v2522_v20, 0.0  ;;  %vm8486_vm12 = vmmov %vm8484_vm2 }
 0x452   : >> { %v2531_v3 = vpop.permute.xlu0 %2530  ;;  %5129 = vst [vmem:[%s7723_s25 + $0x18] sm:$0xff] %v2528_v22 }
 0x453   : >> { %v2535_v23 = vsel %vm2168_vm1, %v7727_v45, %v2531_v3  ;;  %v2293_v24 = vpop.permute.xlu1 %2292 }
 0x454   : >> { %5130 = vst [vmem:[%s7765_s12 + $0x18] sm:$0xff] %v2535_v23  ;;  %v2297_v6 = vsel %vm2168_vm1, %v7736_v52, %v2293_v24  ;;  %v2550_v52 = vsel %vm2151_vm11, %v7751_v47, %v2546_v1 }
 0x455   : >> { %5090 = vst [vmem:[%s7733_s27 + $0x20] sm:$0xff] %v2297_v6 }
 0x456   : >> { %v2578_v25 = vpop.permute.xlu0 %2577 }
 0x457   : >> { %v2340_v26 = vpop.permute.xlu1 %2339 }
 0x458   : >> { %v2344_v27 = vsel %vm2151_vm11, %v7784_v55, %v2340_v26 }
 0x45a   : >> { %v2336_v28 = vpop.permute.xlu0 %2335 }
 0x45b   : >> { %v2348_v45 = vsel %vm2155_vm0, %v2336_v28, %v2344_v27  ;;  %v2542_v30 = vpop.permute.xlu1 %2541 }
 0x45c   : >> { %v2354_v7 = vsel %vm8471_vm13, %v2348_v45, 0.0  ;;  %v2554_v31 = vsel %vm2155_vm0, %v2542_v30, %v2550_v52  ;;  %vm8487_vm13 = vmmov %vm8484_vm2 }
 0x45d   : >> { %5093 = vst [vmem:[%s7777_s8 + $0x30] sm:$0xff] %v2354_v7  ;;  %v2560_v33 = vsel %vm8472_vm14, %v2554_v31, 0.0  ;;  %s8477_s8 = sld [smem:[#allocation29_spill]]  ;;  %vm8488_vm14 = vmmov %vm8484_vm2 }
 0x45e   : >> { %v2563_v32 = vpop.permute.xlu0 %2562  ;;  %5131 = vst [vmem:[%s7747_s29 + $0x20] sm:$0xff] %v2560_v33 }
 0x45f   : >> { %v2567_v34 = vsel %vm2168_vm1, %v7751_v47, %v2563_v32  ;;  %v2325_v59 = vpop.permute.xlu1 %2324 }
 0x460   : >> { %5132 = vst [vmem:[%s7789_s6 + $0x20] sm:$0xff] %v2567_v34  ;;  %v2329_v5 = vsel %vm2168_vm1, %v7760_v56, %v2325_v59  ;;  %s8475_s6 = sld [smem:[#allocation27_spill]]  ;;  %v2582_v56 = vsel %vm2151_vm11, %v7775_v54, %v2578_v25 }
 0x461   : >> { %5092 = vst [vmem:[%s7757_s1 + $0x28] sm:$0xff] %v2329_v5 }
 0x462   : >> { %v2610_v9 = vpop.permute.xlu0 %2609 }
 0x463   : >> { %v2372_v8 = vpop.permute.xlu1 %2371  ;;  %v2614_v35 = vsel %vm2151_vm11, %v7799_v36, %v2610_v9 }
 0x464   : >> { %v2376_v11 = vsel %vm2151_vm11, %v7808_v46, %v2372_v8 }
 0x466   : >> { %v2368_v18 = vpop.permute.xlu0 %2367 }
 0x467   : >> { %v2380_v47 = vsel %vm2155_vm0, %v2368_v18, %v2376_v11  ;;  %v2574_v21 = vpop.permute.xlu1 %2573 }
 0x468   : >> { %v2386_v19 = vsel %vm8474_vm15, %v2380_v47, 0.0  ;;  %v2586_v37 = vsel %vm2155_vm0, %v2574_v21, %v2582_v56  ;;  %vm8490_vm15 = vmmov %vm8484_vm2 }
 0x469   : >> { %5095 = vst [vmem:[%s7801_s4 + $0x38] sm:$0xff] %v2386_v19  ;;  %v2592_v40 = vsel %vm8476_vm3, %v2586_v37, 0.0  ;;  %s8004_s4 = smov [#allocation12] }
 0x46a   : >> { %v2606_v38 = vpop.permute.xlu0 %2605  ;;  %5133 = vst [vmem:[%s7771_s9 + $0x28] sm:$0xff] %v2592_v40  ;;  %s8011_s9 = smov [#allocation13] }
 0x46b   : >> { %v2618_v29 = vsel %vm2155_vm0, %v2606_v38, %v2614_v35  ;;  %v2357_v53 = vpop.permute.xlu1 %2356 }
 0x46c   : >> { %v2624_v44 = vsel %vm8478_vm4, %v2618_v29, 0.0  ;;  %v2361_v51 = vsel %vm2168_vm1, %v7784_v55, %v2357_v53 }
 0x46d   : >> { %5135 = vst [vmem:[%s8473_s7 + $0x30] sm:$0xff] %v2624_v44  ;;  %5094 = vst [vmem:[%s8475_s6 + $0x30] sm:$0xff] %v2361_v51 }
 0x46e   : >> { %v2389_v57 = vpop.permute.xlu0 %2388 }
 0x46f   : >> { %v2393_v58 = vsel %vm2168_vm1, %v7808_v46, %v2389_v57  ;;  %v2595_v4 = vpop.permute.xlu1 %2594 }
 0x470   : >> { %v2682_v60 = vld [vmem:[%s8004_s4] ss:$0 sm:$0xff]  ;;  %v5140_v62 = vld [vmem:[%s8004_s4 + $0x7] ss:$0 sm:$0xff]  ;;  %5096 = vst [vmem:[%s8477_s8 + $0x38] sm:$0xff] %v2393_v58  ;;  %v2599_v1 = vsel %vm2168_vm1, %v7775_v54, %v2595_v4 }
 0x471   : >> { %v5139_v39 = vld [vmem:[%s8004_s4 - $0x1] sm:$0xfe]  ;;  %v5141_v48 = vld [vmem:[%s8004_s4 + $0x7] sm:$0xfe]  ;;  %v5142_v63 = vld [vmem:[%s8004_s4 + $0xf] ss:$0 sm:$0xff] }
 0x472   : >> { %v2689_v55 = vsel %vm8479_vm5, %v2682_v60, %v5139_v39  ;;  %v5144_v2 = vld [vmem:[%s8004_s4 + $0xf] sm:$0xfe]  ;;  %v2700_v46 = vsel %vm8480_vm6, %v5140_v62, %v5141_v48  ;;  %v5145_v42 = vld [vmem:[%s8004_s4 + $0x17] ss:$0 sm:$0xff]  ;;  %v5147_v14 = vld [vmem:[%s8004_s4 + $0x17] sm:$0xfe]  ;;  %v2638_v25 = vpop.permute.xlu0 %2637 }
 0x473   : >> { %v2711_v50 = vsel %vm8481_vm7, %v5142_v63, %v5144_v2  ;;  %v5148_v17 = vld [vmem:[%s8004_s4 + $0x1f] ss:$0 sm:$0xff]  ;;  %2692 = vst [vmem:[%s8004_s4] sm:$0xff] %v2689_v55  ;;  %v2722_v0 = vsel %vm8482_vm9, %v5145_v42, %v5147_v14  ;;  %v5150_v12 = vld [vmem:[%s8004_s4 + $0x1f] sm:$0xfe]  ;;  %v5151_v61 = vld [vmem:[%s8004_s4 + $0x27] ss:$0 sm:$0xff]  ;;  %v2642_v24 = vpop.permute.xlu1 %2641 }
 0x474   : >> { %v5153_v41 = vld [vmem:[%s8004_s4 + $0x27] sm:$0xfe]  ;;  %5143 = vst [vmem:[%s8004_s4 + $0x8] sm:$0xff] %v2700_v46  ;;  %5146 = vst [vmem:[%s8004_s4 + $0x10] sm:$0xff] %v2711_v50  ;;  %v2733_v10 = vsel %vm8483_vm8, %v5148_v17, %v5150_v12  ;;  %v5154_v43 = vld [vmem:[%s8004_s4 + $0x2f] ss:$0 sm:$0xff]  ;;  %v2646_v26 = vsel %vm2151_vm11, %v7832_v49, %v2642_v24 }
 0x475   : >> { %5134 = vst [vmem:[%s7813_s11 + $0x28] sm:$0xff] %v2599_v1  ;;  %v2744_v54 = vsel %vm8484_vm2, %v5151_v61, %v5153_v41  ;;  %v5156_v13 = vld [vmem:[%s8004_s4 + $0x2f] sm:$0xfe]  ;;  %v5157_v20 = vld [vmem:[%s8004_s4 + $0x37] ss:$0 sm:$0xff]  ;;  %5149 = vst [vmem:[%s8004_s4 + $0x18] sm:$0xff] %v2722_v0  ;;  %v2650_v9 = vsel %vm2155_vm0, %v2638_v25, %v2646_v26 }
 0x476   : >> { %v2755_v3 = vsel %vm8485_vm10, %v5154_v43, %v5156_v13  ;;  %v5159_v22 = vld [vmem:[%s8004_s4 + $0x37] sm:$0xfe]  ;;  %5152 = vst [vmem:[%s8004_s4 + $0x20] sm:$0xff] %v2733_v10  ;;  %5155 = vst [vmem:[%s8004_s4 + $0x28] sm:$0xff] %v2744_v54  ;;  %v5160_v23 = vld [vmem:[%s8004_s4 + $0x3f] ss:$0 sm:$0xff] }
 0x477   : >> { %v2766_v6 = vsel %vm8486_vm12, %v5157_v20, %v5159_v22  ;;  %5158 = vst [vmem:[%s8004_s4 + $0x30] sm:$0xff] %v2755_v3  ;;  %v2846_v27 = vld [vmem:[%s8011_s9] ss:$0 sm:$0xff]  ;;  %v5186_v45 = vld [vmem:[%s8011_s9 + $0x7] ss:$0 sm:$0xff]  ;;  %vm8489_vm11 = vmmov %vm8484_vm2  ;;  %v2627_v8 = vpop.permute.xlu1 %2626  ;;  %vm8494_vm5 = vcmp.lt.s32.totalorder %v6347_v15, 64 }
 0x478   : >> { %5161 = vst [vmem:[%s8004_s4 + $0x38] sm:$0xff] %v2766_v6  ;;  %v5185_v28 = vld [vmem:[%s8011_s9 - $0x1] sm:$0xfe]  ;;  %v5187_v52 = vld [vmem:[%s8011_s9 + $0x7] sm:$0xfe]  ;;  %v2631_v56 = vsel %vm2168_vm1, %v7799_v36, %v2627_v8  ;;  %vm8491_vm0 = vmmov %vm8484_vm2  ;;  %v2656_v53 = vsel %vm8494_vm5, %v2650_v9, 0.0 }
 0x479   : >> { %v2853_v7 = vsel %vm8487_vm13, %v2846_v27, %v5185_v28  ;;  %v5188_v30 = vld [vmem:[%s8011_s9 + $0xf] ss:$0 sm:$0xff]  ;;  %v5190_v31 = vld [vmem:[%s8011_s9 + $0xf] sm:$0xfe]  ;;  %v2864_v32 = vsel %vm8488_vm14, %v5186_v45, %v5187_v52  ;;  %v5191_v34 = vld [vmem:[%s8011_s9 + $0x17] ss:$0 sm:$0xff] }
 0x47a   : >> { %2856 = vst [vmem:[%s8011_s9] sm:$0xff] %v2853_v7  ;;  %v2875_v33 = vsel %vm8489_vm11, %v5188_v30, %v5190_v31  ;;  %v5193_v59 = vld [vmem:[%s8011_s9 + $0x17] sm:$0xfe]  ;;  %v5194_v5 = vld [vmem:[%s8011_s9 + $0x1f] ss:$0 sm:$0xff]  ;;  %5189 = vst [vmem:[%s8011_s9 + $0x8] sm:$0xff] %v2864_v32  ;;  %s8119_s11 = smov [#allocation14] }
 0x47b   : >> { %5192 = vst [vmem:[%s8011_s9 + $0x10] sm:$0xff] %v2875_v33  ;;  %v2886_v11 = vsel %vm8490_vm15, %v5191_v34, %v5193_v59  ;;  %v5196_v18 = vld [vmem:[%s8011_s9 + $0x1f] sm:$0xfe]  ;;  %v5197_v47 = vld [vmem:[%s8011_s9 + $0x27] ss:$0 sm:$0xff]  ;;  %vm8492_vm3 = vmmov %vm8491_vm0  ;;  %v2659_v57 = vpop.permute.xlu1 %2658 }
 0x47c   : >> { %v5199_v19 = vld [vmem:[%s8011_s9 + $0x27] sm:$0xfe]  ;;  %5195 = vst [vmem:[%s8011_s9 + $0x18] sm:$0xff] %v2886_v11  ;;  %v2897_v21 = vsel %vm8491_vm0, %v5194_v5, %v5196_v18  ;;  %v5200_v37 = vld [vmem:[%s8011_s9 + $0x2f] ss:$0 sm:$0xff]  ;;  %5136 = vst [vmem:[%s7816_s2 + $0x30] sm:$0xff] %v2631_v56  ;;  %v2663_v58 = vsel %vm2168_vm1, %v7832_v49, %v2659_v57 }
 0x47d   : >> { %v2908_v35 = vsel %vm8492_vm3, %v5197_v47, %v5199_v19  ;;  %v5202_v38 = vld [vmem:[%s8011_s9 + $0x2f] sm:$0xfe]  ;;  %v5203_v40 = vld [vmem:[%s8011_s9 + $0x37] ss:$0 sm:$0xff]  ;;  %5198 = vst [vmem:[%s8011_s9 + $0x20] sm:$0xff] %v2897_v21  ;;  %vm8493_vm4 = vmmov %vm8491_vm0  ;;  %vm8496_vm1 = vcmp.eq.s32.totalorder %v6349_v16, 7 }
 0x47e   : >> { %5201 = vst [vmem:[%s8011_s9 + $0x28] sm:$0xff] %v2908_v35  ;;  %v2919_v29 = vsel %vm8493_vm4, %v5200_v37, %v5202_v38  ;;  %v5205_v36 = vld [vmem:[%s8011_s9 + $0x37] sm:$0xfe]  ;;  %v5206_v44 = vld [vmem:[%s8011_s9 + $0x3f] ss:$0 sm:$0xff]  ;;  %vm8495_vm6 = vmmov %vm8491_vm0 }
 0x47f   : >> { %5204 = vst [vmem:[%s8011_s9 + $0x30] sm:$0xff] %v2919_v29  ;;  %v2930_v51 = vsel %vm8495_vm6, %v5203_v40, %v5205_v36  ;;  %5137 = vst [vmem:[%s7828_s10 + $0x38] sm:$0xff] %v2656_v53  ;;  %s8121_s10 = smov [#allocation15] }
 0x480   : >> { %5207 = vst [vmem:[%s8011_s9 + $0x38] sm:$0xff] %v2930_v51  ;;  %5138 = vst [vmem:[%s7824_s5 + $0x38] sm:$0xff] %v2663_v58  ;;  %s8512_s5 = sld [smem:[#allocation26_spill]] }
 0x481   : >> { %vm8497_vm7 = vmmov %vm8496_vm1 }
 0x482   : >> { %vm8498_vm9 = vmmov %vm8496_vm1 }
 0x483   : >> { %vm8499_vm8 = vmmov %vm8496_vm1 }
 0x484   : >> { %vm8500_vm2 = vmmov %vm8496_vm1 }
 0x485   : >> { %vm8501_vm10 = vmmov %vm8496_vm1 }
 0x486   : >> { %v2770_v60 = vld [vmem:[%s8119_s11] ss:$0 sm:$0xff]  ;;  %v5163_v39 = vld [vmem:[%s8119_s11 + $0x39] sm:$0x7f]  ;;  %v5164_v49 = vld [vmem:[%s8119_s11 + $0x38] ss:$0 sm:$0xff] }
 0x487   : >> { %v5166_v62 = vld [vmem:[%s8119_s11 + $0x31] sm:$0x7f]  ;;  %v5167_v55 = vld [vmem:[%s8119_s11 + $0x30] ss:$0 sm:$0xff]  ;;  %v5169_v48 = vld [vmem:[%s8119_s11 + $0x29] sm:$0x7f]  ;;  %v2779_v63 = vsel %vm8496_vm1, %v5160_v23, %v5163_v39 }
 0x488   : >> { %5162 = vst [vmem:[%s8004_s4 + $0x1] sm:$0x1] %v2770_v60  ;;  %v2788_v2 = vsel %vm8497_vm7, %v5164_v49, %v5166_v62  ;;  %v2797_v4 = vsel %vm8498_vm9, %v5167_v55, %v5169_v48  ;;  %v5170_v46 = vld [vmem:[%s8119_s11 + $0x28] ss:$0 sm:$0xff]  ;;  %v5172_v50 = vld [vmem:[%s8119_s11 + $0x21] sm:$0x7f]  ;;  %vm8502_vm12 = vmmov %vm8496_vm1 }
 0x489   : >> { %v5173_v42 = vld [vmem:[%s8119_s11 + $0x20] ss:$0 sm:$0xff]  ;;  %5165 = vst [vmem:[%s8119_s11 + $0x38] sm:$0xff] %v2779_v63  ;;  %v2806_v14 = vsel %vm8499_vm8, %v5170_v46, %v5172_v50  ;;  %v5175_v17 = vld [vmem:[%s8119_s11 + $0x19] sm:$0x7f]  ;;  %5168 = vst [vmem:[%s8119_s11 + $0x30] sm:$0xff] %v2788_v2 }
 0x48a   : >> { %v5176_v1 = vld [vmem:[%s8119_s11 + $0x18] ss:$0 sm:$0xff]  ;;  %v5178_v0 = vld [vmem:[%s8119_s11 + $0x11] sm:$0x7f]  ;;  %5171 = vst [vmem:[%s8119_s11 + $0x28] sm:$0xff] %v2797_v4  ;;  %v2815_v12 = vsel %vm8500_vm2, %v5173_v42, %v5175_v17  ;;  %5174 = vst [vmem:[%s8119_s11 + $0x20] sm:$0xff] %v2806_v14 }
 0x48b   : >> { %v2824_v61 = vsel %vm8501_vm10, %v5176_v1, %v5178_v0  ;;  %v5179_v41 = vld [vmem:[%s8119_s11 + $0x10] ss:$0 sm:$0xff]  ;;  %v5181_v10 = vld [vmem:[%s8119_s11 + $0x9] sm:$0x7f]  ;;  %v5182_v54 = vld [vmem:[%s8119_s11 + $0x8] ss:$0 sm:$0xff] }
 0x48c   : >> { %v2833_v43 = vsel %vm8502_vm12, %v5179_v41, %v5181_v10  ;;  %v5184_v13 = vld [vmem:[%s8119_s11 + $0x1] sm:$0x7f]  ;;  %5177 = vst [vmem:[%s8119_s11 + $0x18] sm:$0xff] %v2815_v12  ;;  %5180 = vst [vmem:[%s8119_s11 + $0x10] sm:$0xff] %v2824_v61  ;;  %v2934_v20 = vld [vmem:[%s8121_s10] ss:$0 sm:$0xff] }
 0x48d   : >> { %v5209_v3 = vld [vmem:[%s8121_s10 + $0x39] sm:$0x7f]  ;;  %vm8503_vm13 = vmmov %vm8496_vm1  ;;  %5183 = vst [vmem:[%s8119_s11 + $0x8] sm:$0xff] %v2833_v43  ;;  %v5210_v24 = vld [vmem:[%s8121_s10 + $0x38] ss:$0 sm:$0xff] }
 0x48e   : >> { %v2841_v22 = vsel %vm8503_vm13, %v5182_v54, %v5184_v13  ;;  %5208 = vst [vmem:[%s8011_s9 + $0x1] sm:$0x1] %v2934_v20  ;;  %vm8504_vm14 = vmmov %vm8496_vm1  ;;  %v5212_v6 = vld [vmem:[%s8121_s10 + $0x31] sm:$0x7f]  ;;  %v5213_v25 = vld [vmem:[%s8121_s10 + $0x30] ss:$0 sm:$0xff] }
 0x48f   : >> { %v2943_v23 = vsel %vm8504_vm14, %v5206_v44, %v5209_v3  ;;  %2843 = vst [vmem:[%s8119_s11] sm:$0xff] %v2841_v22  ;;  %vm8505_vm11 = vmmov %vm8496_vm1  ;;  %v5215_v27 = vld [vmem:[%s8121_s10 + $0x29] sm:$0x7f]  ;;  %v5216_v28 = vld [vmem:[%s8121_s10 + $0x28] ss:$0 sm:$0xff]  ;;  %s894_s11 = sadd.s32 1, %s8512_s5  }
 0x490   : >> { %5211 = vst [vmem:[%s8121_s10 + $0x38] sm:$0xff] %v2943_v23  ;;  %v2952_v26 = vsel %vm8505_vm11, %v5210_v24, %v5212_v6  ;;  %v5218_v45 = vld [vmem:[%s8121_s10 + $0x21] sm:$0x7f]  ;;  %vm8506_vm15 = vmmov %vm8496_vm1  ;;  %v5219_v30 = vld [vmem:[%s8121_s10 + $0x20] ss:$0 sm:$0xff]  ;;  %p891_p9 = scmp.ge.s32.totalorder %s894_s11, 127  }
 0x491   : >> { %5214 = vst [vmem:[%s8121_s10 + $0x30] sm:$0xff] %v2952_v26  ;;  %v2961_v7 = vsel %vm8506_vm15, %v5213_v25, %v5215_v27  ;;  %vm8507_vm0 = vmmov %vm8496_vm1  ;;  %v5221_v31 = vld [vmem:[%s8121_s10 + $0x19] sm:$0x7f]  ;;  %v5222_v32 = vld [vmem:[%s8121_s10 + $0x18] ss:$0 sm:$0xff]  ;;  %s575_s14 = smov (%p891_p9), [#allocation12]  ;;  %v660_v15 = vmov (%p891_p9), %v6347_v15  ;;  %v663_v16 = vmov (%p891_p9), %v6349_v16 }
 0x492   : >> { %v2970_v52 = vsel %vm8507_vm0, %v5216_v28, %v5218_v45  ;;  %5217 = vst [vmem:[%s8121_s10 + $0x28] sm:$0xff] %v2961_v7  ;;  %vm8508_vm3 = vmmov %vm8507_vm0  ;;  %v5224_v34 = vld [vmem:[%s8121_s10 + $0x11] sm:$0x7f]  ;;  %v5225_v59 = vld [vmem:[%s8121_s10 + $0x10] ss:$0 sm:$0xff]  ;;  %893 = sbr.rel (!%p891_p9) target bundleno = 406 (0x196), region = 918  ;;  %v574_v16 = vmov (%p891_p9), %v6349_v16 }
 0x493   : >> { %5220 = vst [vmem:[%s8121_s10 + $0x20] sm:$0xff] %v2970_v52  ;;  %v2979_v33 = vsel %vm8508_vm3, %v5219_v30, %v5221_v31  ;;  %v5227_v5 = vld [vmem:[%s8121_s10 + $0x9] sm:$0x7f]  ;;  %vm8509_vm4 = vmmov %vm8507_vm0  ;;  %v5228_v11 = vld [vmem:[%s8121_s10 + $0x8] ss:$0 sm:$0xff]  ;;  %vm8514_vm1 = vcmp.lt.s32.totalorder (%p891_p9), %v6347_v15, 64  ;;  %v8247_v15 = vmov (%p891_p9), %v6347_v15 }
 0x494   : >> { %5223 = vst [vmem:[%s8121_s10 + $0x18] sm:$0xff] %v2979_v33  ;;  %v2988_v9 = vsel %vm8509_vm4, %v5222_v32, %v5224_v34  ;;  %vm8510_vm5 = vmmov %vm8507_vm0  ;;  %v5230_v18 = vld [vmem:[%s8121_s10 + $0x1] sm:$0x7f]  ;;  %v5393_v56 = vld [vmem:[%s575_s14 + $0x8] sm:$0xff] (%p891_p9)  ;;  %s8223_s15 = smov (%p891_p9), [#allocation13]  ;;  %v593_v24 = vadd.s32 (%p891_p9), 8, %v574_v16  ;;  %vm586_vm4 = vcmp.eq.s32.totalorder (%p891_p9), %v574_v16, %v8247_v15 }
 0x495   : >> { %v2997_v8 = vsel %vm8510_vm5, %v5225_v59, %v5227_v5  ;;  %5226 = vst [vmem:[%s8121_s10 + $0x10] sm:$0xff] %v2988_v9  ;;  %vm8511_vm6 = vmmov %vm8507_vm0  ;;  %v581_v19 = vld [vmem:[%s575_s14] sm:$0xff] (%p891_p9)  ;;  %v5394_v21 = vld [vmem:[%s575_s14 + $0x10] sm:$0xff] (%p891_p9)  ;;  %v603_v31 = vadd.s32 (%p891_p9), 16, %v574_v16  ;;  %v613_v59 = vadd.s32 (%p891_p9), 24, %v574_v16  ;;  %v623_v5 = vadd.s32 (%p891_p9), 32, %v574_v16 }
 0x496   : >> { %5229 = vst [vmem:[%s8121_s10 + $0x8] sm:$0xff] %v2997_v8  ;;  %v3005_v47 = vsel %vm8511_vm6, %v5228_v11, %v5230_v18  ;;  %v582_v35 = vsel (%p891_p9), %vm8514_vm1, %v581_v19, 0.0  ;;  %vm8515_vm7 = vmmov (%p891_p9), %vm8514_vm1  ;;  %v5395_v40 = vld [vmem:[%s575_s14 + $0x18] sm:$0xff] (%p891_p9)  ;;  %v5396_v29 = vld [vmem:[%s575_s14 + $0x20] sm:$0xff] (%p891_p9)  ;;  %vm594_vm6 = vcmp.eq.s32.totalorder (%p891_p9), %v593_v24, %v8247_v15  ;;  %s8275_s16 = smov (%p891_p9), [#allocation14]  ;;  %v633_v8 = vadd.s32 (%p891_p9), 40, %v574_v16 }
 0x497   : >> { %3007 = vst [vmem:[%s8121_s10] sm:$0xff] %v3005_v47  ;;  %s8513_s10 = sld [smem:[#allocation25_spill]] (%p891_p9)  ;;  %v590_v37 = vsel (%p891_p9), %vm8515_vm7, %v5393_v56, 0.0  ;;  %vm8516_vm9 = vmmov (%p891_p9), %vm8514_vm1  ;;  %v583_v36 = vmul.f32 (%p891_p9), %v582_v35, %v582_v35  ;;  %v5397_v57 = vld [vmem:[%s575_s14 + $0x28] sm:$0xff] (%p891_p9)  ;;  %v5398_v49 = vld [vmem:[%s575_s14 + $0x30] sm:$0xff] (%p891_p9)  ;;  %v643_v11 = vadd.s32 (%p891_p9), 48, %v574_v16  ;;  %vm614_vm7 = vcmp.eq.s32.totalorder (%p891_p9), %v613_v59, %v8247_v15  ;;  %s8319_s17 = smov (%p891_p9), [#allocation15] }
 0x498   : > { %v600_v38 = vsel (%p891_p9), %vm8516_vm9, %v5394_v21, 0.0  ;;  %v591_v44 = vmul.f32 (%p891_p9), %v590_v37, %v590_v37  ;;  %vm8517_vm8 = vmmov (%p891_p9), %vm8514_vm1  ;;  %v5399_v63 = vld [vmem:[%s575_s14 + $0x38] sm:$0xff] (%p891_p9)  ;;  %v670_v50 = vld [vmem:[%s8223_s15] sm:$0xff] (%p891_p9)  ;;  %vm624_vm9 = vcmp.eq.s32.totalorder (%p891_p9), %v623_v5, %v8247_v15 }
 0x499   : > { %v601_v53 = vmul.f32 %v600_v38, %v600_v38  ;;  %v610_v51 = vsel %vm8517_vm8, %v5395_v40, 0.0  ;;  %vm8518_vm2 = vmmov %vm8514_vm1  ;;  %v5400_v1 = vld [vmem:[%s8223_s15 + $0x8] sm:$0xff]  ;;  %v5401_v41 = vld [vmem:[%s8223_s15 + $0x10] sm:$0xff]  ;;  %v587_v30 = vsel %vm586_vm4, 0.0, %v583_v36 }
 0x49a   : > { %v620_v58 = vsel %vm8518_vm2, %v5396_v29, 0.0  ;;  %v597_v60 = vadd.f32 %v591_v44, %v583_v36  ;;  %v611_v39 = vmul.f32 %v610_v51, %v610_v51  ;;  %vm8519_vm10 = vmmov %vm8514_vm1  ;;  %v5402_v10 = vld [vmem:[%s8223_s15 + $0x18] sm:$0xff]  ;;  %v5403_v43 = vld [vmem:[%s8223_s15 + $0x20] sm:$0xff]  ;;  %v595_v34 = vsel %vm594_vm6, 0.0, %v591_v44 }
 0x49b   : > { %v630_v62 = vsel %vm8519_vm10, %v5397_v57, 0.0  ;;  %v621_v48 = vmul.f32 %v620_v58, %v620_v58  ;;  %vm8520_vm12 = vmmov %vm8514_vm1  ;;  %v5404_v23 = vld [vmem:[%s8223_s15 + $0x28] sm:$0xff]  ;;  %v5405_v33 = vld [vmem:[%s8223_s15 + $0x30] sm:$0xff]  ;;  %v596_v9 = vadd.f32 %v595_v34, %v587_v30  ;;  %vm634_vm2 = vcmp.eq.s32.totalorder %v633_v8, %v8247_v15 }
 0x49c   : > { %v607_v55 = vadd.f32 %v601_v53, %v597_v60  ;;  %v640_v2 = vsel %vm8520_vm12, %v5398_v49, 0.0  ;;  %v8227_v46 = vmul.f32 %v630_v62, %v630_v62  ;;  %vm8521_vm13 = vmmov %vm8514_vm1  ;;  %v5406_v47 = vld [vmem:[%s8223_s15 + $0x38] sm:$0xff]  ;;  %v615_v35 = vsel %vm614_vm7, 0.0, %v611_v39  ;;  %v729_v40 = vld [vmem:[%s8275_s16] sm:$0xff] }
 0x49d   : > { %s3602_s13 = sadd.s32 1, %s8513_s10   ;;  %v650_v42 = vsel %vm8521_vm13, %v5399_v63, 0.0  ;;  %v8232_v17 = vmul.f32 %v640_v2, %v640_v2  ;;  %vm8522_vm14 = vmmov %vm8514_vm1  ;;  %v625_v29 = vsel %vm624_vm9, 0.0, %v621_v48  ;;  %v653_v36 = vadd.s32 56, %v574_v16  ;;  %v5407_v58 = vld [vmem:[%s8275_s16 + $0x8] sm:$0xff] }
 0x49e   : > { %v617_v4 = vadd.f32 %v611_v39, %v607_v55  ;;  %v671_v0 = vsel %vm8522_vm14, %v670_v50, 0.0  ;;  %v8238_v61 = vmul.f32 %v650_v42, %v650_v42  ;;  %vm8523_vm11 = vmmov %vm8514_vm1  ;;  %vm644_vm12 = vcmp.eq.s32.totalorder %v643_v11, %v8247_v15  ;;  %v5409_v42 = vld [vmem:[%s8275_s16 + $0x18] sm:$0xff]  ;;  %v788_v59 = vld [vmem:[%s8319_s17] sm:$0xff]  ;;  %p887_p10 = scmp.ge.s32.totalorder %s3602_s13, 15  ;;  %s8545_s10 = smov %s3602_s13 }
 0x49f   : > { %v677_v54 = vsel %vm8523_vm11, %v5400_v1, 0.0  ;;  %v8250_v20 = vmul.f32 %v671_v0, %v671_v0  ;;  %vm8524_vm15 = vmmov %vm8514_vm1  ;;  %v635_v60 = vsel %vm634_vm2, 0.0, %v8227_v46  ;;  %vm654_vm14 = vcmp.eq.s32.totalorder %v653_v36, %v8247_v15  ;;  %v5414_v11 = vld [vmem:[%s8319_s17 + $0x8] sm:$0xff] }
 0x4a0   : > { %v627_v14 = vadd.f32 %v621_v48, %v617_v4  ;;  %v683_v3 = vsel %vm8524_vm15, %v5401_v41, 0.0  ;;  %vm8525_vm0 = vmmov %vm8514_vm1  ;;  %v8258_v25 = vmul.f32 %v677_v54, %v677_v54  ;;  %vm604_vm1 = vcmp.eq.s32.totalorder %v603_v31, %v8247_v15  ;;  %v5408_v48 = vld [vmem:[%s8275_s16 + $0x10] sm:$0xff]  ;;  %v5410_v41 = vld [vmem:[%s8275_s16 + $0x20] sm:$0xff] }
 0x4a1   : > { %v689_v22 = vsel %vm8525_vm0, %v5402_v10, 0.0  ;;  %vm8526_vm3 = vmmov %vm8525_vm0  ;;  %v8264_v28 = vmul.f32 %v683_v3, %v683_v3  ;;  %v605_v19 = vsel %vm604_vm1, 0.0, %v601_v53  ;;  %v645_v63 = vsel %vm644_vm12, 0.0, %v8232_v17  ;;  %v5413_v31 = vld [vmem:[%s8275_s16 + $0x38] sm:$0xff] }
 0x4a2   : > { %v637_v12 = vadd.f32 %v8227_v46, %v627_v14  ;;  %v695_v26 = vsel %vm8526_vm3, %v5403_v43, 0.0  ;;  %v8266_v45 = vmul.f32 %v689_v22, %v689_v22  ;;  %vm8527_vm5 = vmmov %vm8525_vm0  ;;  %v606_v21 = vadd.f32 %v605_v19, %v596_v9 }
 0x4a3   : > { %v701_v7 = vsel %vm8527_vm5, %v5404_v23, 0.0  ;;  %v8270_v52 = vmul.f32 %v695_v26, %v695_v26  ;;  %vm8528_vm8 = vmmov %vm8525_vm0  ;;  %v655_v14 = vsel %vm654_vm14, 0.0, %v8238_v61  ;;  %v719_v15 = vmov %v6347_v15 }
 0x4a4   : > { %v647_v13 = vadd.f32 %v8232_v17, %v637_v12  ;;  %v707_v56 = vsel %vm8528_vm8, %v5405_v33, 0.0  ;;  %v8286_v38 = vmul.f32 %v701_v7, %v701_v7  ;;  %vm8529_vm10 = vmmov %vm8525_vm0  ;;  %v616_v53 = vadd.f32 %v615_v35, %v606_v21 }
 0x4a5   : > { %v713_v44 = vsel %vm8529_vm10, %v5406_v47, 0.0  ;;  %v708_v57 = vmul.f32 %v707_v56, %v707_v56  ;;  %vm8530_vm13 = vmmov %vm8525_vm0  ;;  %v722_v16 = vmov %v6349_v16  ;;  %v748_v10 = vsel %vm8525_vm0, %v5409_v42, 0.0  ;;  %v5415_v56 = vld [vmem:[%s8319_s17 + $0x10] sm:$0xff] }
 0x4a6   : > { %v657_v6 = vadd.f32 %v8238_v61, %v647_v13  ;;  %v730_v39 = vsel %vm8530_vm13, %v729_v40, 0.0  ;;  %v626_v49 = vadd.f32 %v625_v29, %v616_v53  ;;  %v714_v55 = vmul.f32 %v713_v44, %v713_v44  ;;  %vm8531_vm11 = vmmov %vm8525_vm0  ;;  %v5411_v61 = vld [vmem:[%s8275_s16 + $0x28] sm:$0xff]  ;;  %v5416_v40 = vld [vmem:[%s8319_s17 + $0x18] sm:$0xff] }
 0x4a7   : > { %v736_v2 = vsel %vm8531_vm11, %v5407_v58, 0.0  ;;  %v731_v46 = vmul.f32 %v730_v39, %v730_v39  ;;  %vm8532_vm15 = vmmov %vm8525_vm0  ;;  %v749_v24 = vmul.f32 %v748_v10, %v748_v10  ;;  %v781_v16 = vmov %v6349_v16 }
 0x4a8   : > { %v674_v27 = vadd.f32 %v8250_v20, %v657_v6  ;;  %v636_v4 = vadd.f32 %v635_v60, %v626_v49  ;;  %v742_v1 = vsel %vm8532_vm15, %v5408_v48, 0.0  ;;  %v737_v12 = vmul.f32 %v736_v2, %v736_v2  ;;  %vm8533_vm3 = vmmov %vm8525_vm0  ;;  %v5412_v6 = vld [vmem:[%s8275_s16 + $0x30] sm:$0xff]  ;;  %v5418_v49 = vld [vmem:[%s8319_s17 + $0x28] sm:$0xff] }
 0x4a9   : > { %v743_v13 = vmul.f32 %v742_v1, %v742_v1  ;;  %v754_v3 = vsel %vm8533_vm3, %v5410_v41, 0.0  ;;  %vm8534_vm4 = vmmov %vm8525_vm0  ;;  %v5419_v2 = vld [vmem:[%s8319_s17 + $0x30] sm:$0xff]  ;;  %v778_v15 = vmov %v6347_v15 }
 0x4aa   : > { %v680_v32 = vadd.f32 %v8258_v25, %v674_v27  ;;  %v646_v0 = vadd.f32 %v645_v63, %v636_v4  ;;  %v760_v26 = vsel %vm8534_vm4, %v5411_v61, 0.0  ;;  %v755_v30 = vmul.f32 %v754_v3, %v754_v3  ;;  %vm8535_vm5 = vmmov %vm8525_vm0 }
 0x4ab   : > { %v761_v34 = vmul.f32 %v760_v26, %v760_v26  ;;  %vm8536_vm6 = vmmov %vm8525_vm0  ;;  %vm793_vm14 = vcmp.eq.s32.totalorder %v781_v16, %v778_v15  ;;  %v822_v26 = vadd.s32 24, %v781_v16 }
 0x4ac   : > { %v686_v18 = vadd.f32 %v8264_v28, %v680_v32  ;;  %v656_v54 = vadd.f32 %v655_v14, %v646_v0  ;;  %v766_v32 = vsel %vm8535_vm5, %v5412_v6, 0.0  ;;  %v772_v5 = vsel %vm8536_vm6, %v5413_v31, 0.0  ;;  %vm8537_vm1 = vmmov %vm8525_vm0  ;;  %v5420_v14 = vld [vmem:[%s8319_s17 + $0x38] sm:$0xff] }
 0x4ad   : > { %vm8538_vm7 = vmmov %vm8525_vm0 }
 0x4ae   : > { %v692_v37 = vadd.f32 %v8266_v45, %v686_v18  ;;  %v673_v22 = vadd.f32 %v8250_v20, %v656_v54  ;;  %v789_v18 = vsel %vm8537_vm1, %v788_v59, 0.0  ;;  %v799_v21 = vsel %vm8538_vm7, %v5414_v11, 0.0  ;;  %vm8539_vm9 = vmmov %vm8525_vm0 }
 0x4af   : > { %v809_v29 = vsel %vm8539_vm9, %v5415_v56, 0.0  ;;  %v800_v53 = vmul.f32 %v799_v21, %v799_v21  ;;  %vm8540_vm8 = vmmov %vm8525_vm0 }
 0x4b0   : > { %v698_v51 = vadd.f32 %v8270_v52, %v692_v37  ;;  %v679_v27 = vadd.f32 %v8258_v25, %v673_v22  ;;  %v767_v25 = vmul.f32 %v766_v32, %v766_v32  ;;  %v810_v39 = vmul.f32 %v809_v29, %v809_v29  ;;  %vm8541_vm2 = vmmov %vm8525_vm0 }
 0x4b1   : > { %vm8542_vm10 = vmmov %vm8525_vm0 }
 0x4b2   : > { %v704_v62 = vadd.f32 %v8286_v38, %v698_v51  ;;  %v685_v20 = vadd.f32 %v8264_v28, %v679_v27  ;;  %v773_v28 = vmul.f32 %v772_v5, %v772_v5  ;;  %v819_v51 = vsel %vm8540_vm8, %v5416_v40, 0.0  ;;  %vm8543_vm12 = vmmov %vm8525_vm0 }
 0x4b3   : > { %v820_v63 = vmul.f32 %v819_v51, %v819_v51  ;;  %vm8544_vm13 = vmmov %vm8525_vm0  ;;  %vm823_vm0 = vcmp.eq.s32.totalorder %v822_v26, %v778_v15 }
 0x4b4   : > { %v710_v50 = vadd.f32 %v708_v57, %v704_v62  ;;  %v691_v9 = vadd.f32 %v8266_v45, %v685_v20  ;;  %v790_v45 = vmul.f32 %v789_v18, %v789_v18 }
 0x4b5   : > { %v824_v5 = vsel %vm823_vm0, 0.0, %v820_v63 }
 0x4b6   : > { %v716_v17 = vadd.f32 %v714_v55, %v710_v50  ;;  %v697_v47 = vadd.f32 %v8270_v52, %v691_v9  ;;  %v5417_v52 = vld [vmem:[%s8319_s17 + $0x20] sm:$0xff] }
 0x4b8   : > { %v733_v43 = vadd.f32 %v731_v46, %v716_v17  ;;  %v703_v35 = vadd.f32 %v8286_v38, %v697_v47  ;;  %v829_v38 = vsel %vm8541_vm2, %v5417_v52, 0.0 }
 0x4b9   : > { %v830_v42 = vmul.f32 %v829_v38, %v829_v38 }
 0x4ba   : > { %v739_v23 = vadd.f32 %v737_v12, %v733_v43  ;;  %v709_v36 = vadd.f32 %v708_v57, %v703_v35  ;;  %v839_v57 = vsel %vm8542_vm10, %v5418_v49, 0.0  ;;  %v802_v43 = vadd.s32 8, %v781_v16 }
 0x4bb   : > { %v840_v17 = vmul.f32 %v839_v57, %v839_v57 }
 0x4bc   : > { %v745_v7 = vadd.f32 %v743_v13, %v739_v23  ;;  %v715_v58 = vadd.f32 %v714_v55, %v709_v36  ;;  %v849_v55 = vsel %vm8543_vm12, %v5419_v2, 0.0  ;;  %v812_v23 = vadd.s32 16, %v781_v16 }
 0x4bd   : > { %v850_v54 = vmul.f32 %v849_v55, %v849_v55  ;;  %vm803_vm11 = vcmp.eq.s32.totalorder %v802_v43, %v778_v15 }
 0x4be   : > { %v751_v33 = vadd.f32 %v749_v24, %v745_v7  ;;  %v732_v62 = vadd.f32 %v731_v46, %v715_v58  ;;  %v859_v46 = vsel %vm8544_vm13, %v5420_v14, 0.0  ;;  %v794_v7 = vsel %vm793_vm14, 0.0, %v790_v45 }
 0x4bf   : > { %v860_v3 = vmul.f32 %v859_v46, %v859_v46  ;;  %vm813_vm15 = vcmp.eq.s32.totalorder %v812_v23, %v778_v15  ;;  %v804_v32 = vsel %vm803_vm11, 0.0, %v800_v53 }
 0x4c0   : > { %v757_v8 = vadd.f32 %v755_v30, %v751_v33  ;;  %v738_v4 = vadd.f32 %v737_v12, %v732_v62  ;;  %v814_v33 = vsel %vm813_vm15, 0.0, %v810_v39 }
 0x4c2   : > { %v763_v19 = vadd.f32 %v761_v34, %v757_v8  ;;  %v744_v1 = vadd.f32 %v743_v13, %v738_v4  ;;  %v862_v8 = vadd.s32 56, %v781_v16 }
 0x4c4   : > { %v769_v37 = vadd.f32 %v767_v25, %v763_v19  ;;  %v750_v41 = vadd.f32 %v749_v24, %v744_v1  ;;  %v832_v24 = vadd.s32 32, %v781_v16  ;;  %vm863_vm6 = vcmp.eq.s32.totalorder %v862_v8, %v778_v15 }
 0x4c5   : > { %v864_v56 = vsel %vm863_vm6, 0.0, %v860_v3 }
 0x4c6   : > { %v775_v44 = vadd.f32 %v773_v28, %v769_v37  ;;  %v756_v12 = vadd.f32 %v755_v30, %v750_v41  ;;  %v842_v30 = vadd.s32 40, %v781_v16  ;;  %vm833_vm3 = vcmp.eq.s32.totalorder %v832_v24, %v778_v15 }
 0x4c8   : > { %v796_v60 = vadd.f32 %v790_v45, %v775_v44  ;;  %v762_v22 = vadd.f32 %v761_v34, %v756_v12  ;;  %v852_v34 = vadd.s32 48, %v781_v16  ;;  %vm843_vm4 = vcmp.eq.s32.totalorder %v842_v30, %v778_v15 }
 0x4c9   : > { %v844_v18 = vsel %vm843_vm4, 0.0, %v840_v17 }
 0x4ca   : > { %v806_v48 = vadd.f32 %v800_v53, %v796_v60  ;;  %v768_v6 = vadd.f32 %v767_v25, %v762_v22  ;;  %v834_v25 = vsel %vm833_vm3, 0.0, %v830_v42  ;;  %vm853_vm5 = vcmp.eq.s32.totalorder %v852_v34, %v778_v15 }
 0x4cb   : > { %v854_v19 = vsel %vm853_vm5, 0.0, %v850_v54 }
 0x4cc   : > { %v816_v50 = vadd.f32 %v810_v39, %v806_v48  ;;  %v774_v31 = vadd.f32 %v773_v28, %v768_v6 }
 0x4ce   : > { %v826_v0 = vadd.f32 %v820_v63, %v816_v50  ;;  %v795_v20 = vadd.f32 %v794_v7, %v774_v31 }
 0x4d0   : > { %v836_v10 = vadd.f32 %v830_v42, %v826_v0  ;;  %v805_v59 = vadd.f32 %v804_v32, %v795_v20 }
 0x4d2   : > { %v846_v61 = vadd.f32 %v840_v17, %v836_v10  ;;  %v815_v9 = vadd.f32 %v814_v33, %v805_v59 }
 0x4d4   : > { %v856_v13 = vadd.f32 %v850_v54, %v846_v61  ;;  %v825_v11 = vadd.f32 %v824_v5, %v815_v9 }
 0x4d6   : > { %v866_v27 = vadd.f32 %v860_v3, %v856_v13  ;;  %v835_v47 = vadd.f32 %v834_v25, %v825_v11 }
 0x4d8   : > { %867 = vadd.xlane.f32.xlu0 %v866_v27  ;;  %v845_v28 = vadd.f32 %v844_v18, %v835_v47 }
 0x4da   : > { %v855_v21 = vadd.f32 %v854_v19, %v845_v28 }
 0x4dc   : > { %v865_v35 = vadd.f32 %v864_v56, %v855_v21 }
 0x4de   : > { %875 = vadd.xlane.f32.xlu0 %v865_v35 }
 0x565   : > { %v868_v37 = vpop.xlane.xlu0 %867 }
 0x566   : > { %v869_v45 = vrot.slane %v868_v37, 4 }
 0x568   : > { %v870_v40 = vadd.f32 %v869_v45, %v868_v37 }
 0x56a   : > { %v871_v29 = vrot.slane %v870_v40, 2 }
 0x56b   : > { %v876_v36 = vpop.xlane.xlu0 %875 }
 0x56c   : > { %v877_v44 = vrot.slane %v876_v36, 4  ;;  %v872_v52 = vadd.f32 %v871_v29, %v870_v40 }
 0x56e   : > { %v878_v53 = vadd.f32 %v877_v44, %v876_v36  ;;  %v873_v60 = vrot.slane %v872_v52, 1 }
 0x570   : > { %v879_v51 = vrot.slane %v878_v53, 2  ;;  %v874_v38 = vadd.f32 %v873_v60, %v872_v52 }
 0x572   : > { %v880_v58 = vadd.f32 %v879_v51, %v878_v53 }
 0x574   : > { %v881_v39 = vrot.slane %v880_v58, 1 }
 0x576   : > { %v882_v49 = vadd.f32 %v881_v39, %v880_v58 }
 0x578   : > { %5461 = vpush %v882_v49 }
 0x579   : > { %5463 = vpush %v874_v38 }
 0x5a9   : > { %s5462_s2 = spop %5461 }
 0x5aa   : > { %s5464_s18 = spop %5463 }
 0x5ab   : > { %s885_s19 = smul.f32 1e-10, %s5464_s18 }
 0x5ad   : > { %p886_p11 = scmp.le.f32.partialorder %s5462_s2, %s885_s19 }
 0x5af   : > { %p888_p12 = por %p887_p10, %p886_p11 }
 0x5b1   :  { %3604 = sbr.rel (!%p888_p12) target bundleno = 405 (0x195), region = 929 }
 0x5b8 PF:  { %s8363_s20 = smov [#allocation12]  ;;  %v3609_v15 = vmov %v6347_v15  ;;  %v3612_v16 = vmov %v6349_v16  ;;  %s8376_s21 = smov [#allocation15] }
 0x5b9   :  { %v8368_v15 = vmov %v6347_v15  ;;  %v3674_v16 = vmov %v6349_v16  ;;  %v3613_v62 = vld [vmem:[%s8363_s20] sm:$0xff]  ;;  %vm3616_vm1 = vcmp.eq.s32.totalorder %v3612_v16, %v3609_v15  ;;  %v5421_v48 = vld [vmem:[%s8363_s20 + $0x8] sm:$0xff]  ;;  %v3621_v63 = vadd.s32 8, %v3612_v16  ;;  %v5422_v50 = vld [vmem:[%s8363_s20 + $0x10] sm:$0xff]  ;;  %s3606_s3 = smov [#allocation4]  ;;  %s3668_s22 = smov [#allocation6] }
 0x5ba   :  { %v3627_v2 = vadd.s32 16, %v3612_v16  ;;  %v3633_v57 = vadd.s32 24, %v3612_v16  ;;  %v3617_v4 = vsel %vm3616_vm1, %v3613_v62, 0.0  ;;  %v3639_v42 = vadd.s32 32, %v3612_v16  ;;  %v5423_v55 = vld [vmem:[%s8363_s20 + $0x18] sm:$0xff]  ;;  %v5424_v17 = vld [vmem:[%s8363_s20 + $0x20] sm:$0xff] }
 0x5bb   :  { %v3645_v14 = vadd.s32 40, %v3612_v16  ;;  %vm3678_vm7 = vcmp.eq.s32.totalorder %v3674_v16, %v8368_v15  ;;  %vm3622_vm9 = vcmp.eq.s32.totalorder %v3621_v63, %v3609_v15  ;;  %v3651_v1 = vadd.s32 48, %v3612_v16  ;;  %v3675_v41 = vld [vmem:[%s8376_s21] sm:$0xff]  ;;  %v5425_v54 = vld [vmem:[%s8363_s20 + $0x28] sm:$0xff]  ;;  %v5426_v22 = vld [vmem:[%s8363_s20 + $0x30] sm:$0xff]  ;;  %s8546_s24 = sld [smem:[#allocation30_spill]] }
 0x5bc   :  { %vm3628_vm8 = vcmp.eq.s32.totalorder %v3627_v2, %v3609_v15  ;;  %vm3634_vm2 = vcmp.eq.s32.totalorder %v3633_v57, %v3609_v15  ;;  %v3623_v0 = vsel %vm3622_vm9, %v5421_v48, %v3617_v4  ;;  %vm3640_vm10 = vcmp.eq.s32.totalorder %v3639_v42, %v3609_v15  ;;  %v5428_v43 = vld [vmem:[%s8376_s21 + $0x8] sm:$0xff]  ;;  %v5429_v23 = vld [vmem:[%s8376_s21 + $0x10] sm:$0xff]  ;;  %v5427_v27 = vld [vmem:[%s8363_s20 + $0x38] sm:$0xff]  ;;  %s8547_s27 = sld [smem:[#allocation31_spill]]  ;;  %s8548_s30 = sld [smem:[#allocation32_spill]] }
 0x5bd   :  { %vm3646_vm12 = vcmp.eq.s32.totalorder %v3645_v14, %v3609_v15  ;;  %v3657_v46 = vadd.s32 56, %v3612_v16  ;;  %v3629_v10 = vsel %vm3628_vm8, %v5422_v50, %v3623_v0  ;;  %vm3652_vm13 = vcmp.eq.s32.totalorder %v3651_v1, %v3609_v15  ;;  %v5430_v7 = vld [vmem:[%s8376_s21 + $0x18] sm:$0xff]  ;;  %v5431_v30 = vld [vmem:[%s8376_s21 + $0x20] sm:$0xff]  ;;  %v5432_v34 = vld [vmem:[%s8376_s21 + $0x28] sm:$0xff]  ;;  %s6220_s12 = smov [#allocation8]  }
 0x5be   :  { %v3679_v12 = vsel %vm3678_vm7, %v3675_v41, 0.0  ;;  %v3683_v61 = vadd.s32 8, %v3674_v16  ;;  %v3635_v3 = vsel %vm3634_vm2, %v5423_v55, %v3629_v10  ;;  %v3689_v13 = vadd.s32 16, %v3674_v16  ;;  %v5433_v8 = vld [vmem:[%s8376_s21 + $0x30] sm:$0xff]  ;;  %v5434_v19 = vld [vmem:[%s8376_s21 + $0x38] sm:$0xff] }
 0x5bf   :  { %vm3658_vm14 = vcmp.eq.s32.totalorder %v3657_v46, %v3609_v15  ;;  %v3695_v6 = vadd.s32 24, %v3674_v16  ;;  %v3641_v26 = vsel %vm3640_vm10, %v5424_v17, %v3635_v3  ;;  %v3701_v31 = vadd.s32 32, %v3674_v16 }
 0x5c0   :  { %vm3684_vm11 = vcmp.eq.s32.totalorder %v3683_v61, %v8368_v15  ;;  %v3707_v24 = vadd.s32 40, %v3674_v16  ;;  %v3647_v32 = vsel %vm3646_vm12, %v5425_v54, %v3641_v26  ;;  %vm3690_vm15 = vcmp.eq.s32.totalorder %v3689_v13, %v8368_v15 }
 0x5c1   :  { %v3685_v20 = vsel %vm3684_vm11, %v5428_v43, %v3679_v12  ;;  %vm3696_vm0 = vcmp.eq.s32.totalorder %v3695_v6, %v8368_v15  ;;  %v3653_v33 = vsel %vm3652_vm13, %v5426_v22, %v3647_v32  ;;  %vm3702_vm3 = vcmp.eq.s32.totalorder %v3701_v31, %v8368_v15 }
 0x5c2   :  { %v3691_v59 = vsel %vm3690_vm15, %v5429_v23, %v3685_v20  ;;  %vm3708_vm4 = vcmp.eq.s32.totalorder %v3707_v24, %v8368_v15  ;;  %v3659_v5 = vsel %vm3658_vm14, %v5427_v27, %v3653_v33  ;;  %v3713_v25 = vadd.s32 48, %v3674_v16  ;;  %s6216_s1 = smov %s8548_s30  }
 0x5c3   :  { %v3697_v9 = vsel %vm3696_vm0, %v5430_v7, %v3691_v59  ;;  %v3719_v11 = vadd.s32 56, %v3674_v16  ;;  %v3660_v18 = vrot.slane %v3659_v5, 4 }
 0x5c4   :  { %v3703_v47 = vsel %vm3702_vm3, %v5431_v30, %v3697_v9  ;;  %vm3714_vm5 = vcmp.eq.s32.totalorder %v3713_v25, %v8368_v15 }
 0x5c5   :  { %v3709_v28 = vsel %vm3708_vm4, %v5432_v34, %v3703_v47  ;;  %vm3720_vm6 = vcmp.eq.s32.totalorder %v3719_v11, %v8368_v15  ;;  %v3661_v56 = vadd.f32 %v3660_v18, %v3659_v5 }
 0x5c6   :  { %v3715_v21 = vsel %vm3714_vm5, %v5433_v8, %v3709_v28 }
 0x5c7   :  { %v3721_v35 = vsel %vm3720_vm6, %v5434_v19, %v3715_v21  ;;  %v3662_v37 = vrot.slane %v3661_v56, 2 }
 0x5c8   :  { %v3722_v45 = vrot.slane %v3721_v35, 4 }
 0x5c9   :  { %v3663_v40 = vadd.f32 %v3662_v37, %v3661_v56 }
 0x5ca   :  { %v3723_v29 = vadd.f32 %v3722_v45, %v3721_v35 }
 0x5cb   :  { %v3664_v36 = vrot.slane %v3663_v40, 1 }
 0x5cc   :  { %v3724_v44 = vrot.slane %v3723_v29, 2 }
 0x5cd   :  { %v3665_v53 = vadd.f32 %v3664_v36, %v3663_v40 }
 0x5ce   :  { %v3725_v16 = vadd.f32 %v3724_v44, %v3723_v29 }
 0x5cf   :  { %3666 = vst [vmem:[%s3606_s3] sm:$0x1] %v3665_v53 }
 0x5d0   :  { %v3726_v52 = vrot.slane %v3725_v16, 1 }
 0x5d2   :  { %v3727_v51 = vadd.f32 %v3726_v52, %v3725_v16 }
 0x5d4   :  { %3728 = vst [vmem:[%s3668_s22] sm:$0x1] %v3727_v51 }
 0x5d6   :  { %v3732_v58 = vld [vmem:[#allocation4] sm:$0x1] }
 0x5d7   :  { %3734 = vst [vmem:[#allocation5] sm:$0x1] %v3732_v58 }
 0x5db   :  { %v3738_v15 = vld [vmem:[#allocation6] sm:$0x1] }
 0x5dc   :  { %3740 = vst [vmem:[#allocation7] sm:$0x1] %v3738_v15 }
 0x5de   :  { %v3803_v60 = vld [vmem:[#allocation5] sm:$0x1] }
 0x5df   :  { %3804 = vst [vmem:[%s8546_s24] sm:$0x1] %v3803_v60 }
 0x5e3   :  { %v3867_v39 = vld [vmem:[#allocation7] sm:$0x1] }
 0x5e4   :  { %3868 = vst [vmem:[%s8547_s27] sm:$0x1] %v3867_v39 }
 0x5e5 LB: > { %v3916_v49 = vld [vmem:[%s6222_s12] sm:$0xff]  ;;  %s3918_s12 = scalar_lea.vmem %s6222_s12, 8   ;;  %s6222_s12 = sphi %s6220_s12, %s3918_s12   ;;  %s6218_s1 = sphi %s6216_s1, %s3919_s1  }
 0x5e6   : > { %3917 = vst [vmem:[%s6218_s1] sm:$0xff] %v3916_v49  ;;  %s3919_s1 = scalar_lea.vmem %s6218_s1, 8   ;;  %p3913_p13 = scmp.gt.s32.totalorder %s3918_s12, [#allocation8 + $0x38] }
 0x5e7   :  { %s8549_s8 = sld [smem:[#allocation33_spill]] (%p3913_p13)  ;;  %s6228_s9 = smov (%p3913_p13), [#allocation9]  }
 0x5e8   :  { %3915 = sbr.rel (!%p3913_p13) target bundleno = 1509 (0x5e5), region = 995 }
 0x5ed   :  { %s6224_s4 = smov (%p3913_p13), %s8549_s8  }
 0x5ef LB: > { %v3978_v38 = vld [vmem:[%s6230_s9] sm:$0xff]  ;;  %s3980_s9 = scalar_lea.vmem %s6230_s9, 8   ;;  %s6230_s9 = sphi %s6228_s9, %s3980_s9   ;;  %s6226_s4 = sphi %s6224_s4, %s3981_s4  }
 0x5f0   : > { %3979 = vst [vmem:[%s6226_s4] sm:$0xff] %v3978_v38  ;;  %s3981_s4 = scalar_lea.vmem %s6226_s4, 8   ;;  %p3975_p0 = scmp.gt.s32.totalorder %s3980_s9, [#allocation9 + $0x38] }
 0x5f1   :  { %s8550_s5 = sld [smem:[#allocation34_spill]] (%p3975_p0)  ;;  %s6236_s14 = smov (%p3975_p0), [#allocation10]  }
 0x5f2   :  { %3977 = sbr.rel (!%p3975_p0) target bundleno = 1519 (0x5ef), region = 1017 }
 0x5f7   :  { %s6232_s13 = smov (%p3975_p0), %s8550_s5  }
 0x5f9 LB: > { %v4040_v62 = vld [vmem:[%s6238_s14] sm:$0xff]  ;;  %s4042_s14 = scalar_lea.vmem %s6238_s14, 8   ;;  %s6238_s14 = sphi %s6236_s14, %s4042_s14   ;;  %s6234_s13 = sphi %s6232_s13, %s4043_s13  }
 0x5fa   : > { %4041 = vst [vmem:[%s6234_s13] sm:$0xff] %v4040_v62  ;;  %s4043_s13 = scalar_lea.vmem %s6234_s13, 8   ;;  %p4037_p1 = scmp.gt.s32.totalorder %s4042_s14, [#allocation10 + $0x38] }
 0x5fb   :  { %s8551_s17 = sld [smem:[#allocation35_spill]] (%p4037_p1)  ;;  %s6244_s18 = smov (%p4037_p1), [#allocation11]  }
 0x5fc   :  { %4039 = sbr.rel (!%p4037_p1) target bundleno = 1529 (0x5f9), region = 1039 }
 0x601   :  { %s6240_s2 = smov (%p4037_p1), %s8551_s17  }
 0x603 LB: > { %v4102_v48 = vld [vmem:[%s6246_s18] sm:$0xff]  ;;  %s4104_s18 = scalar_lea.vmem %s6246_s18, 8   ;;  %s6246_s18 = sphi %s6244_s18, %s4104_s18   ;;  %s6242_s2 = sphi %s6240_s2, %s4105_s2  }
 0x604   : > { %4103 = vst [vmem:[%s6242_s2] sm:$0xff] %v4102_v48  ;;  %s4105_s2 = scalar_lea.vmem %s6242_s2, 8   ;;  %p4099_p2 = scmp.gt.s32.totalorder %s4104_s18, [#allocation11 + $0x38] }
 0x606   :  { %4101 = sbr.rel (!%p4099_p2) target bundleno = 1539 (0x603), region = 1061 }

// kernel: projected_gradient_descent.2
= control target key start
LH: loop header
LB: loop body
LE: loop exit
PB: predicated region body
PF: predicated region fallthrough
CT: control target
= control target key end

     0   :  { %7 = vsyncpa [#allocation3], 0  ;;  %s564_s0 = inlined_call_operand.hbm [shape: f32[128,128], index: 0, kind: input, shape index: {}, may-alias: {0,1}]   ;;  %s565_s1 = inlined_call_operand.hbm [shape: f32[128,128], index: 1, kind: input, shape index: {}, may-alias: {0,1}]   ;;  %s566_s2 = inlined_call_operand.vmem [shape: f32[128,128], index: 2, kind: output, shape index: {}]  }
   0x1   :  { %8 = vsyncpa [#allocation5], 0  ;;  %s325_s9 = smov [#allocation2]   ;;  %s277_s13 = scalar_lea.hbm %s564_s0, 2048 }
   0x2   :  { %s14_s10 = sshll.u32 %s325_s9, 4  ;;  %p278_p0 = scmp.ne.s32.totalorder %s564_s0, %s277_s13  ;;  %s15_s10 = int_to_ptr.vmem [resolvable:$true] %s14_s10 }
   0x3   :  { %p281_p1 = scmp.lt.u32.totalorder %s277_s13, %s564_s0 }
   0x5   :  { %p283_p2 = pnand %p281_p1, %p278_p0 }
   0x7   :  { %286 = shalt.err (!%p283_p2)
}
   0x8   :  { %s287_s18 = scalar_lea.vmem %s15_s10, 2048  ;;  %p292_p4 = scmp.lt.s32.totalorder %s15_s10, %s15_s10 }
   0x9   :  { %p288_p3 = scmp.ne.s32.totalorder %s15_s10, %s287_s18  ;;  %p293_p5 = scmp.lt.s32.totalorder %s287_s18, %s287_s18 }
   0xb   :  { %p294_p6 = por %p293_p5, %p292_p4 }
   0xd   :  { %p295_p7 = pnand %p294_p6, %p288_p3 }
   0xf   :  { %298 = shalt.err (!%p295_p7)
}
  0x10   :  { %s326_s19 = smov 128   ;;  %s327_s20 = smov 8  }
  0x11   :  { %20 = dma.hbm_to_vmem [thread:$0]  %s564_s0, 2048, %s15_s10, [#allocation3], %s326_s19, %s326_s19, %s327_s20  }
  0x12   :  { %s328_s23 = smov [#allocation4]   ;;  %s299_s27 = scalar_lea.hbm %s565_s1, 2048 }
  0x13   :  { %s26_s24 = sshll.u32 %s328_s23, 4  ;;  %p300_p8 = scmp.ne.s32.totalorder %s565_s1, %s299_s27  ;;  %s27_s24 = int_to_ptr.vmem [resolvable:$true] %s26_s24 }
  0x14   :  { %p303_p9 = scmp.lt.u32.totalorder %s299_s27, %s565_s1 }
  0x16   :  { %p305_p10 = pnand %p303_p9, %p300_p8 }
  0x18   :  { %308 = shalt.err (!%p305_p10)
}
  0x19   :  { %s309_s4 = scalar_lea.vmem %s27_s24, 2048  ;;  %p314_p12 = scmp.lt.s32.totalorder %s27_s24, %s27_s24 }
  0x1a   :  { %p310_p11 = scmp.ne.s32.totalorder %s27_s24, %s309_s4  ;;  %p315_p13 = scmp.lt.s32.totalorder %s309_s4, %s309_s4 }
  0x1c   :  { %p316_p0 = por %p315_p13, %p314_p12 }
  0x1e   :  { %p317_p1 = pnand %p316_p0, %p310_p11 }
  0x20   :  { %320 = shalt.err (!%p317_p1)
}
  0x21   :  { %32 = dma.hbm_to_vmem [thread:$0]  %s565_s1, 2048, %s27_s24, [#allocation5], %s326_s19, %s326_s19, %s327_s20  }
  0x22   :  { %321 = dma.done.wait [#allocation3], 2048  }
  0x23   :  { %322 = vsyncadd [#allocation3], 4294965248 }
  0x24   :  { %323 = dma.done.wait [#allocation5], 2048  }
  0x25   :  { %324 = vsyncadd [#allocation5], 4294965248  ;;  %v368_v0 = vld [vmem:[#allocation2] sm:$0xff]  ;;  %v370_v1 = vld [vmem:[#allocation2 + $0x8] sm:$0xff] }
  0x26   :  { %v372_v2 = vld [vmem:[#allocation2 + $0x10] sm:$0xff]  ;;  %v55_v3 = vld [vmem:[#allocation4] sm:$0xff]  ;;  %v56_v4 = vld [vmem:[#allocation4 + $0x8] sm:$0xff] }
  0x27   :  { %v57_v5 = vld [vmem:[#allocation4 + $0x10] sm:$0xff]  ;;  %v375_v6 = vsub.f32 %v368_v0, %v55_v3  ;;  %v378_v7 = vsub.f32 %v370_v1, %v56_v4  ;;  %v380_v8 = vld [vmem:[#allocation2 + $0x18] sm:$0xff]  ;;  %v385_v11 = vld [vmem:[#allocation2 + $0x20] sm:$0xff] }
  0x28   :  { %v58_v9 = vld [vmem:[#allocation4 + $0x18] sm:$0xff]  ;;  %v383_v10 = vsub.f32 %v372_v2, %v57_v5  ;;  %v59_v12 = vld [vmem:[#allocation4 + $0x20] sm:$0xff]  ;;  %v394_v16 = vld [vmem:[#allocation2 + $0x28] sm:$0xff] }
  0x29   :  { %v388_v13 = vsub.f32 %v380_v8, %v58_v9  ;;  %v87_v14 = vmul.f32 %v375_v6, %v375_v6  ;;  %v88_v15 = vmul.f32 %v378_v7, %v378_v7  ;;  %v60_v17 = vld [vmem:[#allocation4 + $0x28] sm:$0xff]  ;;  %v397_v18 = vsub.f32 %v385_v11, %v59_v12  ;;  %v401_v20 = vld [vmem:[#allocation2 + $0x30] sm:$0xff]  ;;  %v408_v25 = vld [vmem:[#allocation2 + $0x38] sm:$0xff] }
  0x2a   :  { %v89_v19 = vmul.f32 %v383_v10, %v383_v10  ;;  %v61_v21 = vld [vmem:[#allocation4 + $0x30] sm:$0xff]  ;;  %v404_v22 = vsub.f32 %v394_v16, %v60_v17  ;;  %v62_v26 = vld [vmem:[#allocation4 + $0x38] sm:$0xff]  ;;  %v415_v30 = vld [vmem:[#allocation2 + $0x40] sm:$0xff] }
  0x2b   :  { %v90_v23 = vmul.f32 %v388_v13, %v388_v13  ;;  %v103_v24 = vadd.f32 %v88_v15, %v87_v14  ;;  %v411_v27 = vsub.f32 %v401_v20, %v61_v21  ;;  %v91_v28 = vmul.f32 %v397_v18, %v397_v18  ;;  %v63_v31 = vld [vmem:[#allocation4 + $0x40] sm:$0xff]  ;;  %v422_v35 = vld [vmem:[#allocation2 + $0x48] sm:$0xff]  ;;  %v429_v40 = vld [vmem:[#allocation2 + $0x50] sm:$0xff] }
  0x2c   :  { %v418_v32 = vsub.f32 %v408_v25, %v62_v26  ;;  %v92_v33 = vmul.f32 %v404_v22, %v404_v22  ;;  %v64_v36 = vld [vmem:[#allocation4 + $0x48] sm:$0xff]  ;;  %v425_v37 = vsub.f32 %v415_v30, %v63_v31  ;;  %v65_v41 = vld [vmem:[#allocation4 + $0x50] sm:$0xff]  ;;  %v436_v45 = vld [vmem:[#allocation2 + $0x58] sm:$0xff] }
  0x2d   :  { %v104_v29 = vadd.f32 %v103_v24, %v89_v19  ;;  %v93_v38 = vmul.f32 %v411_v27, %v411_v27  ;;  %v432_v42 = vsub.f32 %v422_v35, %v64_v36  ;;  %v66_v46 = vld [vmem:[#allocation4 + $0x58] sm:$0xff]  ;;  %v439_v47 = vsub.f32 %v429_v40, %v65_v41  ;;  %v443_v50 = vld [vmem:[#allocation2 + $0x60] sm:$0xff]  ;;  %v450_v55 = vld [vmem:[#allocation2 + $0x68] sm:$0xff] }
  0x2e   :  { %v94_v43 = vmul.f32 %v418_v32, %v418_v32  ;;  %v95_v48 = vmul.f32 %v425_v37, %v425_v37  ;;  %v67_v51 = vld [vmem:[#allocation4 + $0x60] sm:$0xff]  ;;  %v446_v52 = vsub.f32 %v436_v45, %v66_v46  ;;  %v68_v56 = vld [vmem:[#allocation4 + $0x68] sm:$0xff]  ;;  %v457_v60 = vld [vmem:[#allocation2 + $0x70] sm:$0xff] }
  0x2f   :  { %v105_v34 = vadd.f32 %v104_v29, %v90_v23  ;;  %v96_v53 = vmul.f32 %v432_v42, %v432_v42  ;;  %v453_v57 = vsub.f32 %v443_v50, %v67_v51  ;;  %v97_v58 = vmul.f32 %v439_v47, %v439_v47  ;;  %v69_v61 = vld [vmem:[#allocation4 + $0x70] sm:$0xff]  ;;  %v464_v4 = vld [vmem:[#allocation2 + $0x78] sm:$0xff] }
  0x30   :  { %v460_v62 = vsub.f32 %v450_v55, %v68_v56  ;;  %v98_v63 = vmul.f32 %v446_v52, %v446_v52  ;;  %v70_v5 = vld [vmem:[#allocation4 + $0x78] sm:$0xff]  ;;  %v467_v9 = vsub.f32 %v457_v60, %v69_v61 }
  0x31   :  { %v106_v39 = vadd.f32 %v105_v34, %v91_v28  ;;  %v99_v12 = vmul.f32 %v453_v57, %v453_v57  ;;  %v472_v15 = vsub.f32 %v464_v4, %v70_v5 }
  0x32   :  { %v100_v17 = vmul.f32 %v460_v62, %v460_v62  ;;  %v101_v21 = vmul.f32 %v467_v9, %v467_v9 }
  0x33   :  { %v107_v44 = vadd.f32 %v106_v39, %v92_v33  ;;  %v102_v24 = vmul.f32 %v472_v15, %v472_v15 }
  0x35   :  { %v108_v49 = vadd.f32 %v107_v44, %v93_v38 }
  0x37   :  { %v109_v54 = vadd.f32 %v108_v49, %v94_v43 }
  0x39   :  { %v110_v59 = vadd.f32 %v109_v54, %v95_v48 }
  0x3b   :  { %v111_v3 = vadd.f32 %v110_v59, %v96_v53 }
  0x3d   :  { %v112_v14 = vadd.f32 %v111_v3, %v97_v58 }
  0x3f   :  { %v113_v19 = vadd.f32 %v112_v14, %v98_v63 }
  0x41   :  { %v114_v23 = vadd.f32 %v113_v19, %v99_v12 }
  0x43   :  { %v115_v26 = vadd.f32 %v114_v23, %v100_v17 }
  0x45   :  { %v116_v28 = vadd.f32 %v115_v26, %v101_v21 }
  0x47   :  { %v117_v29 = vadd.f32 %v116_v28, %v102_v24 }
  0x49   :  { %118 = vadd.xlane.f32.xlu0 %v117_v29 }
  0xd6   :  { %v119_v31 = vpop.xlane.xlu0 %118 }
  0xd7   :  { %v120_v33 = vrot.slane %v119_v31, 4 }
  0xd9   :  { %v121_v34 = vadd.f32 %v120_v33, %v119_v31 }
  0xdb   :  { %v122_v36 = vrot.slane %v121_v34, 2 }
  0xdd   :  { %v123_v38 = vadd.f32 %v122_v36, %v121_v34 }
  0xdf   :  { %v124_v39 = vrot.slane %v123_v38, 1 }
  0xe1   :  { %v125_v41 = vadd.f32 %v124_v39, %v123_v38 }
  0xe3   :  { %267 = vpush %v125_v41 }
 0x114   :  { %s268_s1 = spop %267 }
 0x115   :  { %v128_v43 = vstv %s268_s1  ;;  %p127_p2 = scmp.gt.f32.partialorder %s268_s1, 0.0 }
 0x116   :  { %275 = vrsqrt.f32 %v128_v43 }
 0x120   :  { %v276_v44 = vpop.eup %275 }
 0x121   :  { %269 = vpush %v276_v44 }
 0x152   :  { %s270_s6 = spop %269 }
 0x153   :  { %s568_s6 = smov (!%p127_p2, %s270_s6), 0.0 }
 0x154   :  { %v132_v46 = vstv %s568_s6 }
 0x155   :  { %v133_v48 = vmul.f32 %v132_v46, %v375_v6  ;;  %v134_v49 = vmul.f32 %v132_v46, %v378_v7  ;;  %v135_v56 = vmul.f32 %v132_v46, %v383_v10  ;;  %v136_v61 = vmul.f32 %v132_v46, %v388_v13 }
 0x156   :  { %v137_v6 = vmul.f32 %v132_v46, %v397_v18 }
 0x157   :  { %v149_v51 = vmul.f32 0.1, %v133_v48  ;;  %v150_v54 = vmul.f32 0.1, %v134_v49  ;;  %v151_v59 = vmul.f32 0.1, %v135_v56 }
 0x158   :  { %v152_v3 = vmul.f32 0.1, %v136_v61  ;;  %v153_v5 = vmul.f32 0.1, %v137_v6 }
 0x159   :  { %v165_v53 = vsub.f32 %v368_v0, %v149_v51  ;;  %v166_v58 = vsub.f32 %v370_v1, %v150_v54  ;;  %v167_v63 = vsub.f32 %v372_v2, %v151_v59  ;;  %v138_v0 = vmul.f32 %v132_v46, %v404_v22 }
 0x15a   :  { %v168_v7 = vsub.f32 %v380_v8, %v152_v3  ;;  %v169_v10 = vsub.f32 %v385_v11, %v153_v5  ;;  %v139_v1 = vmul.f32 %v132_v46, %v411_v27  ;;  %v140_v2 = vmul.f32 %v132_v46, %v418_v32 }
 0x15b   :  { %181 = vxpose.xlu0.b32.start [1/16] %v165_v53, 128  ;;  %v154_v12 = vmul.f32 0.1, %v138_v0  ;;  %v141_v8 = vmul.f32 %v132_v46, %v425_v37  ;;  %v142_v11 = vmul.f32 %v132_v46, %v432_v42 }
 0x15c   :  { %v155_v14 = vmul.f32 0.1, %v139_v1  ;;  %v156_v17 = vmul.f32 0.1, %v140_v2 }
 0x15d   :  { %v170_v13 = vsub.f32 %v394_v16, %v154_v12  ;;  %v157_v19 = vmul.f32 0.1, %v141_v8  ;;  %v158_v21 = vmul.f32 0.1, %v142_v11  ;;  %v143_v16 = vmul.f32 %v132_v46, %v439_v47 }
 0x15e   :  { %v171_v18 = vsub.f32 %v401_v20, %v155_v14  ;;  %v172_v22 = vsub.f32 %v408_v25, %v156_v17  ;;  %v144_v20 = vmul.f32 %v132_v46, %v446_v52  ;;  %v145_v25 = vmul.f32 %v132_v46, %v453_v57 }
 0x15f   :  { %182 = vxpose.xlu0.b32.cont [2/16] %v166_v58, 128  ;;  %v173_v27 = vsub.f32 %v415_v30, %v157_v19  ;;  %v174_v32 = vsub.f32 %v422_v35, %v158_v21  ;;  %v159_v23 = vmul.f32 0.1, %v143_v16  ;;  %v146_v30 = vmul.f32 %v132_v46, %v460_v62 }
 0x160   :  { %v160_v24 = vmul.f32 0.1, %v144_v20  ;;  %v161_v26 = vmul.f32 0.1, %v145_v25  ;;  %v147_v35 = vmul.f32 %v132_v46, %v467_v9 }
 0x161   :  { %v175_v37 = vsub.f32 %v429_v40, %v159_v23  ;;  %v162_v28 = vmul.f32 0.1, %v146_v30  ;;  %v148_v40 = vmul.f32 %v132_v46, %v472_v15 }
 0x162   :  { %v176_v42 = vsub.f32 %v436_v45, %v160_v24  ;;  %v177_v47 = vsub.f32 %v443_v50, %v161_v26  ;;  %v163_v29 = vmul.f32 0.1, %v147_v35 }
 0x163   :  { %183 = vxpose.xlu0.b32.cont [3/16] %v167_v63, 128  ;;  %v178_v52 = vsub.f32 %v450_v55, %v162_v28  ;;  %v164_v31 = vmul.f32 0.1, %v148_v40 }
 0x164   :  { %v179_v57 = vsub.f32 %v457_v60, %v163_v29 }
 0x165   :  { %v512_v45 = vsub.f32 %v464_v4, %v164_v31 }
 0x167   :  { %184 = vxpose.xlu0.b32.cont [4/16] %v168_v7, 128 }
 0x16b   :  { %185 = vxpose.xlu0.b32.cont [5/16] %v169_v10, 128 }
 0x16f   :  { %186 = vxpose.xlu0.b32.cont [6/16] %v170_v13, 128 }
 0x173   :  { %187 = vxpose.xlu0.b32.cont [7/16] %v171_v18, 128 }
 0x177   :  { %188 = vxpose.xlu0.b32.cont [8/16] %v172_v22, 128 }
 0x17b   :  { %189 = vxpose.xlu0.b32.cont [9/16] %v173_v27, 128 }
 0x17f   :  { %190 = vxpose.xlu0.b32.cont [10/16] %v174_v32, 128 }
 0x183   :  { %191 = vxpose.xlu0.b32.cont [11/16] %v175_v37, 128 }
 0x187   :  { %192 = vxpose.xlu0.b32.cont [12/16] %v176_v42, 128 }
 0x18b   :  { %193 = vxpose.xlu0.b32.cont [13/16] %v177_v47, 128 }
 0x18f   :  { %194 = vxpose.xlu0.b32.cont [14/16] %v178_v52, 128 }
 0x193   :  { %195 = vxpose.xlu0.b32.cont [15/16] %v179_v57, 128 }
 0x197   :  { %196 = vxpose.xlu0.b32.end [16/16] %v512_v45, 128 }
 0x1db   :  { %v197_v50 = vpop.trf.xlu0 }
 0x1dc   :  { %v213_v62 = vadd.f32 %v197_v50, %v165_v53 }
 0x1de   :  { %v229_v33 = vmul.f32 0.5, %v213_v62 }
 0x1df   :  { %v198_v9 = vpop.trf.xlu0 }
 0x1e0   :  { %245 = vst [vmem:[%s566_s2] sm:$0xff] %v229_v33  ;;  %v214_v55 = vadd.f32 %v198_v9, %v166_v58 }
 0x1e2   :  { %v230_v15 = vmul.f32 0.5, %v214_v55 }
 0x1e3   :  { %v199_v34 = vpop.trf.xlu0 }
 0x1e4   :  { %246 = vst [vmem:[%s566_s2 + $0x8] sm:$0xff] %v230_v15  ;;  %v215_v60 = vadd.f32 %v199_v34, %v167_v63 }
 0x1e6   :  { %v231_v4 = vmul.f32 0.5, %v215_v60 }
 0x1e7   :  { %v200_v36 = vpop.trf.xlu0 }
 0x1e8   :  { %247 = vst [vmem:[%s566_s2 + $0x10] sm:$0xff] %v231_v4  ;;  %v216_v38 = vadd.f32 %v200_v36, %v168_v7 }
 0x1ea   :  { %v232_v39 = vmul.f32 0.5, %v216_v38 }
 0x1eb   :  { %v201_v41 = vpop.trf.xlu0 }
 0x1ec   :  { %248 = vst [vmem:[%s566_s2 + $0x18] sm:$0xff] %v232_v39  ;;  %v217_v43 = vadd.f32 %v201_v41, %v169_v10 }
 0x1ee   :  { %v233_v44 = vmul.f32 0.5, %v217_v43 }
 0x1ef   :  { %v202_v46 = vpop.trf.xlu0 }
 0x1f0   :  { %249 = vst [vmem:[%s566_s2 + $0x20] sm:$0xff] %v233_v44  ;;  %v218_v48 = vadd.f32 %v202_v46, %v170_v13 }
 0x1f2   :  { %v234_v49 = vmul.f32 0.5, %v218_v48 }
 0x1f3   :  { %v203_v51 = vpop.trf.xlu0 }
 0x1f4   :  { %250 = vst [vmem:[%s566_s2 + $0x28] sm:$0xff] %v234_v49  ;;  %v219_v53 = vadd.f32 %v203_v51, %v171_v18 }
 0x1f6   :  { %v235_v54 = vmul.f32 0.5, %v219_v53 }
 0x1f7   :  { %v204_v56 = vpop.trf.xlu0 }
 0x1f8   :  { %251 = vst [vmem:[%s566_s2 + $0x30] sm:$0xff] %v235_v54  ;;  %v220_v58 = vadd.f32 %v204_v56, %v172_v22 }
 0x1fa   :  { %v236_v59 = vmul.f32 0.5, %v220_v58 }
 0x1fb   :  { %v205_v61 = vpop.trf.xlu0 }
 0x1fc   :  { %252 = vst [vmem:[%s566_s2 + $0x38] sm:$0xff] %v236_v59  ;;  %v221_v63 = vadd.f32 %v205_v61, %v173_v27 }
 0x1fe   :  { %v237_v3 = vmul.f32 0.5, %v221_v63 }
 0x1ff   :  { %v206_v6 = vpop.trf.xlu0 }
 0x200   :  { %253 = vst [vmem:[%s566_s2 + $0x40] sm:$0xff] %v237_v3  ;;  %v222_v7 = vadd.f32 %v206_v6, %v174_v32 }
 0x202   :  { %v238_v5 = vmul.f32 0.5, %v222_v7 }
 0x203   :  { %v207_v0 = vpop.trf.xlu0 }
 0x204   :  { %254 = vst [vmem:[%s566_s2 + $0x48] sm:$0xff] %v238_v5  ;;  %v223_v10 = vadd.f32 %v207_v0, %v175_v37 }
 0x206   :  { %v239_v12 = vmul.f32 0.5, %v223_v10 }
 0x207   :  { %v208_v1 = vpop.trf.xlu0 }
 0x208   :  { %255 = vst [vmem:[%s566_s2 + $0x50] sm:$0xff] %v239_v12  ;;  %v224_v13 = vadd.f32 %v208_v1, %v176_v42 }
 0x20a   :  { %v240_v14 = vmul.f32 0.5, %v224_v13 }
 0x20b   :  { %v209_v2 = vpop.trf.xlu0 }
 0x20c   :  { %256 = vst [vmem:[%s566_s2 + $0x58] sm:$0xff] %v240_v14  ;;  %v225_v18 = vadd.f32 %v209_v2, %v177_v47 }
 0x20e   :  { %v241_v17 = vmul.f32 0.5, %v225_v18 }
 0x20f   :  { %v210_v8 = vpop.trf.xlu0 }
 0x210   :  { %257 = vst [vmem:[%s566_s2 + $0x60] sm:$0xff] %v241_v17  ;;  %v226_v22 = vadd.f32 %v210_v8, %v178_v52 }
 0x212   :  { %v242_v19 = vmul.f32 0.5, %v226_v22 }
 0x213   :  { %v211_v11 = vpop.trf.xlu0 }
 0x214   :  { %258 = vst [vmem:[%s566_s2 + $0x68] sm:$0xff] %v242_v19  ;;  %v227_v27 = vadd.f32 %v211_v11, %v179_v57 }
 0x216   :  { %v243_v21 = vmul.f32 0.5, %v227_v27 }
 0x217   :  { %v212_v16 = vpop.trf.xlu0 }
 0x218   :  { %259 = vst [vmem:[%s566_s2 + $0x70] sm:$0xff] %v243_v21  ;;  %v228_v32 = vadd.f32 %v212_v16, %v512_v45 }
 0x21a   :  { %v244_v23 = vmul.f32 0.5, %v228_v32 }
 0x21c   :  { %260 = vst [vmem:[%s566_s2 + $0x78] sm:$0xff] %v244_v23 }
 0x21d   :  { %265 = vsyncpa [#allocation3], 1 }
 0x21e   :  { %266 = vsyncpa [#allocation5], 1 }

// kernel: closed_call.4
= control target key start
LH: loop header
LB: loop body
LE: loop exit
PB: predicated region body
PF: predicated region fallthrough
CT: control target
= control target key end

     0   :  { %v33_v0 = vlaneseq  ;;  %vm199_vm0 = vcmask 1040384   ;;  %s1008_s0 = inlined_call_operand.vmem [shape: f32[128,128], index: 0, kind: input, shape index: {}, may-alias: {0,3}]   ;;  %s1009_s1 = inlined_call_operand.vmem [shape: f32[1,128], index: 1, kind: input, shape index: {}]   ;;  %s1010_s2 = inlined_call_operand.vmem [shape: f32[128,128], index: 2, kind: input, shape index: {}]   ;;  %s1011_s3 = inlined_call_operand.vmem [shape: f32[128,128], index: 3, kind: output, shape index: {}, may-alias: {0,3}]  }
   0x1   :  { %v14_v1 = vld [vmem:[%s1008_s0] sm:$0xff]  ;;  %v604_v2 = vld [vmem:[%s1008_s0 + $0x8] sm:$0xff]  ;;  %v609_v3 = vld [vmem:[%s1008_s0 + $0x10] sm:$0xff] }
   0x2   :  { %v522_v4 = vpack.c.bf16 %v604_v2, %v14_v1  ;;  %v615_v5 = vld [vmem:[%s1008_s0 + $0x18] sm:$0xff]  ;;  %v617_v6 = vshrl.u32 %v33_v0, 7  ;;  %v30_v9 = vld [vmem:[%s1009_s1] sm:$0x1]  ;;  %v631_v11 = vld [vmem:[%s1008_s0 + $0x28] sm:$0xff] }
   0x3   :  { %v526_v7 = vpack.c.bf16 %v615_v5, %v609_v3  ;;  %v18_v10 = vld [vmem:[%s1008_s0 + $0x20] sm:$0xff]  ;;  %v31_v12 = vmax.f32 %v30_v9, 0.0  ;;  %v20_v19 = vld [vmem:[%s1008_s0 + $0x30] sm:$0xff]  ;;  %v21_v20 = vld [vmem:[%s1008_s0 + $0x38] sm:$0xff] }
   0x4   :  { %523 = vmatprep.subr.bf16.mxu0 %v522_v4  ;;  %554 = vmatprep.subr.bf16.mxu1 %v522_v4  ;;  %v35_v8 = vsub.s32 0, %v617_v6  ;;  %v530_v15 = vpack.c.bf16 %v631_v11, %v18_v10  ;;  %v22_v16 = vld [vmem:[%s1008_s0 + $0x40] sm:$0xff]  ;;  %v534_v21 = vpack.c.bf16 %v21_v20, %v20_v19  ;;  %v23_v22 = vld [vmem:[%s1008_s0 + $0x48] sm:$0xff]  ;;  %v24_v24 = vld [vmem:[%s1008_s0 + $0x50] sm:$0xff] }
   0x5   :  { %525 = vmatpush3.bf16.xpose.msra.mxu0 %v522_v4  ;;  %562 = vmatpush3.bf16.xpose.msra.mxu1 %v522_v4  ;;  %v200_v14 = vsel %vm199_vm0, %v31_v12, 0.0  ;;  %v538_v23 = vpack.c.bf16 %v23_v22, %v22_v16  ;;  %v25_v25 = vld [vmem:[%s1008_s0 + $0x58] sm:$0xff]  ;;  %v26_v27 = vld [vmem:[%s1008_s0 + $0x60] sm:$0xff]  ;;  %v27_v28 = vld [vmem:[%s1008_s0 + $0x68] sm:$0xff] }
   0x6   :  { %527 = vmatprep.subr.bf16.mxu0 %v526_v7  ;;  %555 = vmatprep.subr.bf16.mxu1 %v526_v7  ;;  %v635_v13 = vrot.slane %v31_v12, %v35_v8  ;;  %v542_v26 = vpack.c.bf16 %v25_v25, %v24_v24  ;;  %v546_v29 = vpack.c.bf16 %v27_v28, %v26_v27  ;;  %v28_v30 = vld [vmem:[%s1008_s0 + $0x70] sm:$0xff]  ;;  %v29_v31 = vld [vmem:[%s1008_s0 + $0x78] sm:$0xff]  ;;  %v225_v51 = vld [vmem:[%s1010_s2 + $0x8] sm:$0xff] }
   0x7   :  { %201 = vadd.xlane.f32.xlu0 %v200_v14  ;;  %v550_v32 = vpack.c.bf16 %v29_v31, %v28_v30  ;;  %v224_v55 = vld [vmem:[%s1010_s2] sm:$0xff]  ;;  %v227_v63 = vld [vmem:[%s1010_s2 + $0x18] sm:$0xff] }
   0x8   :  { %v38_v17 = vmul.f32 %v635_v13, %v14_v1  ;;  %v46_v18 = vmul.f32 %v635_v13, %v22_v16  ;;  %v39_v33 = vmul.f32 %v635_v13, %v604_v2  ;;  %v47_v34 = vmul.f32 %v635_v13, %v23_v22  ;;  %v226_v1 = vld [vmem:[%s1010_s2 + $0x10] sm:$0xff] }
   0x9   :  { %v40_v35 = vmul.f32 %v635_v13, %v609_v3  ;;  %v48_v36 = vmul.f32 %v635_v13, %v24_v24  ;;  %v41_v37 = vmul.f32 %v635_v13, %v615_v5  ;;  %v49_v38 = vmul.f32 %v635_v13, %v25_v25  ;;  %v231_v25 = vld [vmem:[%s1010_s2 + $0x38] sm:$0xff] }
   0xa   :  { %498 = vmatprep.mubr.f32.mxu0 %v38_v17  ;;  %510 = vmatprep.mubr.f32.mxu1 %v46_v18  ;;  %v42_v39 = vmul.f32 %v635_v13, %v18_v10  ;;  %v50_v40 = vmul.f32 %v635_v13, %v26_v27  ;;  %v43_v41 = vmul.f32 %v635_v13, %v631_v11  ;;  %v229_v11 = vld [vmem:[%s1010_s2 + $0x28] sm:$0xff]  ;;  %v230_v27 = vld [vmem:[%s1010_s2 + $0x30] sm:$0xff] }
   0xb   :  { %v51_v42 = vmul.f32 %v635_v13, %v27_v28  ;;  %v44_v43 = vmul.f32 %v635_v13, %v20_v19  ;;  %v52_v44 = vmul.f32 %v635_v13, %v28_v30  ;;  %v45_v45 = vmul.f32 %v635_v13, %v21_v20 }
   0xc   :  { %v53_v46 = vmul.f32 %v635_v13, %v29_v31  ;;  %v228_v13 = vld [vmem:[%s1010_s2 + $0x20] sm:$0xff] }
   0xd   :  { %529 = vmatpush3.bf16.xpose.msra.mxu0 %v526_v7  ;;  %563 = vmatpush3.bf16.xpose.msra.mxu1 %v526_v7 }
   0xe   :  { %531 = vmatprep.subr.bf16.mxu0 %v530_v15  ;;  %556 = vmatprep.subr.bf16.mxu1 %v530_v15 }
  0x15   :  { %533 = vmatpush3.bf16.xpose.msra.mxu0 %v530_v15  ;;  %564 = vmatpush3.bf16.xpose.msra.mxu1 %v530_v15 }
  0x16   :  { %535 = vmatprep.subr.bf16.mxu0 %v534_v21  ;;  %557 = vmatprep.subr.bf16.mxu1 %v534_v21 }
  0x1d   :  { %537 = vmatpush3.bf16.xpose.msra.mxu0 %v534_v21  ;;  %565 = vmatpush3.bf16.xpose.msra.mxu1 %v534_v21 }
  0x1e   :  { %539 = vmatprep.subr.bf16.mxu0 %v538_v23  ;;  %558 = vmatprep.subr.bf16.mxu1 %v538_v23 }
  0x25   :  { %541 = vmatpush3.bf16.xpose.msra.mxu0 %v538_v23  ;;  %566 = vmatpush3.bf16.xpose.msra.mxu1 %v538_v23 }
  0x26   :  { %543 = vmatprep.subr.bf16.mxu0 %v542_v26  ;;  %559 = vmatprep.subr.bf16.mxu1 %v542_v26 }
  0x2d   :  { %545 = vmatpush3.bf16.xpose.msra.mxu0 %v542_v26  ;;  %567 = vmatpush3.bf16.xpose.msra.mxu1 %v542_v26 }
  0x2e   :  { %547 = vmatprep.subr.bf16.mxu0 %v546_v29  ;;  %560 = vmatprep.subr.bf16.mxu1 %v546_v29 }
  0x35   :  { %549 = vmatpush3.bf16.xpose.msra.mxu0 %v546_v29  ;;  %568 = vmatpush3.bf16.xpose.msra.mxu1 %v546_v29 }
  0x36   :  { %551 = vmatprep.subr.bf16.mxu0 %v550_v32  ;;  %561 = vmatprep.subr.bf16.mxu1 %v550_v32 }
  0x3d   :  { %553 = vmatpush3.bf16.xpose.msra.mxu0 %v550_v32  ;;  %569 = vmatpush3.bf16.xpose.msra.mxu1 %v550_v32 }
  0x44   :  { %499 = vmatmul.mubr.f32.vlgmr.msra.gmra.mrb[0].mxu0 %v39_v33  ;;  %511 = vmatmul.mubr.f32.vlgmr.msra.gmra.mrb[0].mxu1 %v47_v34  ;;  %v232_v34 = vld [vmem:[%s1010_s2 + $0x40] sm:$0xff] }
  0x45   :  { %501 = vmatprep.mubr.f32.mxu0 %v40_v35  ;;  %513 = vmatprep.mubr.f32.mxu1 %v48_v36 }
  0x48   :  { %502 = vmatmul.mubr.f32.gmra.mrb[2].mxu0 %v41_v37  ;;  %514 = vmatmul.mubr.f32.gmra.mrb[2].mxu1 %v49_v38 }
  0x49   :  { %504 = vmatprep.mubr.f32.mxu0 %v42_v39  ;;  %516 = vmatprep.mubr.f32.mxu1 %v50_v40  ;;  %v233_v39 = vld [vmem:[%s1010_s2 + $0x48] sm:$0xff] }
  0x4c   :  { %505 = vmatmul.mubr.f32.gmra.mrb[4].mxu0 %v43_v41  ;;  %517 = vmatmul.mubr.f32.gmra.mrb[4].mxu1 %v51_v42 }
  0x4d   :  { %507 = vmatprep.mubr.f32.mxu0 %v44_v43  ;;  %519 = vmatprep.mubr.f32.mxu1 %v52_v44  ;;  %v234_v44 = vld [vmem:[%s1010_s2 + $0x50] sm:$0xff] }
  0x50   :  { %508 = vmatmul.mubr.f32.gmra.mrb[6].mxu0 %v45_v45  ;;  %520 = vmatmul.mubr.f32.gmra.mrb[6].mxu1 %v53_v46 }
  0x94   :  { %v202_v47 = vpop.xlane.xlu0 %201 }
  0x95   :  { %574 = vrcp.f32 %v202_v47 }
  0x9f   :  { %v575_v48 = vpop.eup %574 }
  0xa0   :  { %v690_v49 = vrot.slane %v575_v48, %v35_v8 }
 0x117   :  { %v500_v50 = vpop.f32.mrb[0].mxu0  ;;  %v512_v52 = vpop.f32.mrb[0].mxu1 }
 0x118   :  { %v696_v53 = vmul.f32 %v500_v50, %v690_v49  ;;  %v120_v54 = vpop.f32.mrb[1].mxu0  ;;  %v160_v56 = vpop.f32.mrb[1].mxu1  ;;  %v772_v33 = vmul.f32 %v512_v52, %v690_v49  ;;  %v235_v50 = vld [vmem:[%s1010_s2 + $0x58] sm:$0xff] }
 0x119   :  { %v702_v57 = vmul.f32 %v690_v49, %v120_v54  ;;  %v764_v29 = vmul.f32 %v690_v49, %v160_v56  ;;  %v236_v56 = vld [vmem:[%s1010_s2 + $0x60] sm:$0xff] }
 0x11a   :  { %v705_v58 = vsub.f32 %v696_v53, %v225_v51  ;;  %v800_v45 = vsub.f32 %v772_v33, %v233_v39 }
 0x11b   :  { %v708_v59 = vsub.f32 %v702_v57, %v224_v55  ;;  %v503_v60 = vpop.f32.mrb[2].mxu0  ;;  %v515_v61 = vpop.f32.mrb[2].mxu1  ;;  %v789_v40 = vsub.f32 %v764_v29, %v232_v34 }
 0x11c   :  { %v711_v62 = vmul.f32 %v503_v60, %v690_v49  ;;  %v130_v0 = vpop.f32.mrb[3].mxu0  ;;  %v170_v2 = vpop.f32.mrb[3].mxu1  ;;  %v257_v3 = vmul.f32 %v705_v58, %v705_v58  ;;  %v803_v46 = vmul.f32 %v515_v61, %v690_v49  ;;  %v265_v60 = vmul.f32 %v800_v45, %v800_v45 }
 0x11d   :  { %v256_v4 = vmul.f32 %v708_v59, %v708_v59  ;;  %v724_v5 = vmul.f32 %v690_v49, %v130_v0  ;;  %v792_v41 = vmul.f32 %v690_v49, %v170_v2  ;;  %v264_v51 = vmul.f32 %v789_v40, %v789_v40 }
 0x11e   :  { %v727_v6 = vsub.f32 %v711_v62, %v227_v63  ;;  %v824_v61 = vsub.f32 %v803_v46, %v235_v50 }
 0x11f   :  { %v730_v7 = vsub.f32 %v724_v5, %v226_v1  ;;  %v506_v8 = vpop.f32.mrb[4].mxu0  ;;  %v518_v9 = vpop.f32.mrb[4].mxu1  ;;  %v272_v15 = vadd.f32 %v257_v3, %v256_v4  ;;  %v813_v52 = vsub.f32 %v792_v41, %v234_v44  ;;  %v237_v1 = vld [vmem:[%s1010_s2 + $0x68] sm:$0xff] }
 0x120   :  { %v733_v10 = vmul.f32 %v506_v8, %v690_v49  ;;  %v140_v12 = vpop.f32.mrb[5].mxu0  ;;  %v180_v14 = vpop.f32.mrb[5].mxu1  ;;  %v259_v18 = vmul.f32 %v727_v6, %v727_v6  ;;  %v827_v63 = vmul.f32 %v518_v9, %v690_v49  ;;  %v238_v9 = vld [vmem:[%s1010_s2 + $0x70] sm:$0xff] }
 0x121   :  { %v258_v16 = vmul.f32 %v730_v7, %v730_v7  ;;  %v744_v17 = vmul.f32 %v690_v49, %v140_v12  ;;  %v816_v54 = vmul.f32 %v690_v49, %v180_v14  ;;  %v266_v2 = vmul.f32 %v813_v52, %v813_v52 }
 0x122   :  { %v749_v20 = vsub.f32 %v733_v10, %v229_v11  ;;  %v267_v11 = vmul.f32 %v824_v61, %v824_v61  ;;  %v846_v12 = vsub.f32 %v827_v63, %v237_v1 }
 0x123   :  { %v273_v19 = vadd.f32 %v272_v15, %v258_v16  ;;  %v752_v21 = vsub.f32 %v744_v17, %v228_v13  ;;  %v509_v22 = vpop.f32.mrb[6].mxu0  ;;  %v521_v23 = vpop.f32.mrb[6].mxu1  ;;  %v835_v3 = vsub.f32 %v816_v54, %v236_v56  ;;  %v239_v15 = vld [vmem:[%s1010_s2 + $0x78] sm:$0xff] }
 0x124   :  { %v755_v24 = vmul.f32 %v509_v22, %v690_v49  ;;  %v150_v26 = vpop.f32.mrb[7].mxu0  ;;  %v190_v28 = vpop.f32.mrb[7].mxu1  ;;  %v261_v35 = vmul.f32 %v749_v20, %v749_v20  ;;  %v849_v13 = vmul.f32 %v521_v23, %v690_v49  ;;  %v269_v22 = vmul.f32 %v846_v12, %v846_v12 }
 0x125   :  { %v260_v30 = vmul.f32 %v752_v21, %v752_v21  ;;  %v274_v31 = vadd.f32 %v273_v19, %v259_v18  ;;  %v769_v32 = vmul.f32 %v690_v49, %v150_v26  ;;  %v838_v8 = vmul.f32 %v690_v49, %v190_v28 }
 0x126   :  { %v780_v37 = vsub.f32 %v755_v24, %v231_v25  ;;  %v268_v16 = vmul.f32 %v835_v3, %v835_v3  ;;  %v862_v25 = vsub.f32 %v849_v13, %v239_v15 }
 0x127   :  { %v275_v36 = vadd.f32 %v274_v31, %v260_v30  ;;  %v783_v38 = vsub.f32 %v769_v32, %v230_v27  ;;  %v857_v18 = vsub.f32 %v838_v8, %v238_v9 }
 0x128   :  { %v263_v47 = vmul.f32 %v780_v37, %v780_v37  ;;  %v271_v27 = vmul.f32 %v862_v25, %v862_v25 }
 0x129   :  { %v262_v42 = vmul.f32 %v783_v38, %v783_v38  ;;  %v276_v43 = vadd.f32 %v275_v36, %v261_v35  ;;  %v270_v23 = vmul.f32 %v857_v18, %v857_v18 }
 0x12b   :  { %v277_v48 = vadd.f32 %v276_v43, %v262_v42 }
 0x12d   :  { %v278_v55 = vadd.f32 %v277_v48, %v263_v47 }
 0x12f   :  { %v279_v0 = vadd.f32 %v278_v55, %v264_v51 }
 0x131   :  { %v280_v4 = vadd.f32 %v279_v0, %v265_v60 }
 0x133   :  { %v281_v14 = vadd.f32 %v280_v4, %v266_v2 }
 0x135   :  { %v282_v19 = vadd.f32 %v281_v14, %v267_v11 }
 0x137   :  { %v283_v49 = vadd.f32 %v282_v19, %v268_v16 }
 0x139   :  { %v284_v26 = vadd.f32 %v283_v49, %v269_v22 }
 0x13b   :  { %v285_v28 = vadd.f32 %v284_v26, %v270_v23 }
 0x13d   :  { %v286_v30 = vadd.f32 %v285_v28, %v271_v27 }
 0x13f   :  { %287 = vadd.xlane.f32.xlu0 %v286_v30 }
 0x1cc   :  { %v288_v31 = vpop.xlane.xlu0 %287 }
 0x1cd   :  { %v289_v34 = vrot.slane %v288_v31, 4 }
 0x1cf   :  { %v290_v35 = vadd.f32 %v289_v34, %v288_v31 }
 0x1d1   :  { %v291_v36 = vrot.slane %v290_v35, 2 }
 0x1d3   :  { %v292_v39 = vadd.f32 %v291_v36, %v290_v35 }
 0x1d5   :  { %v293_v42 = vrot.slane %v292_v39, 1 }
 0x1d7   :  { %v294_v43 = vadd.f32 %v293_v42, %v292_v39 }
 0x1d9   :  { %570 = vpush %v294_v43 }
 0x20a   :  { %s571_s2 = spop %570 }
 0x20b   :  { %v297_v44 = vstv %s571_s2  ;;  %p296_p0 = scmp.gt.f32.partialorder %s571_s2, 0.0 }
 0x20c   :  { %576 = vrsqrt.f32 %v297_v44 }
 0x216   :  { %v577_v47 = vpop.eup %576 }
 0x217   :  { %572 = vpush %v577_v47 }
 0x248   :  { %s573_s20 = spop %572 }
 0x249   :  { %s1013_s20 = smov (!%p296_p0, %s573_s20), 0.0 }
 0x24a   :  { %v301_v48 = vstv %s1013_s20 }
 0x24b   :  { %v302_v50 = vmul.f32 %v301_v48, %v708_v59  ;;  %v303_v51 = vmul.f32 %v301_v48, %v705_v58  ;;  %v304_v0 = vmul.f32 %v301_v48, %v730_v7  ;;  %v305_v4 = vmul.f32 %v301_v48, %v727_v6 }
 0x24c   :  { %v306_v58 = vmul.f32 %v301_v48, %v752_v21 }
 0x24d   :  { %v318_v55 = vmul.f32 0.1, %v302_v50  ;;  %v319_v60 = vmul.f32 0.1, %v303_v51  ;;  %v320_v2 = vmul.f32 0.1, %v304_v0 }
 0x24e   :  { %v321_v59 = vmul.f32 0.1, %v305_v4  ;;  %v322_v7 = vmul.f32 0.1, %v306_v58 }
 0x24f   :  { %v334_v56 = vsub.f32 %v702_v57, %v318_v55  ;;  %v873_v1 = vsub.f32 %v696_v53, %v319_v60  ;;  %v878_v9 = vsub.f32 %v724_v5, %v320_v2  ;;  %v307_v53 = vmul.f32 %v301_v48, %v749_v20 }
 0x250   :  { %v883_v57 = vsub.f32 %v711_v62, %v321_v59  ;;  %v888_v6 = vsub.f32 %v744_v17, %v322_v7  ;;  %v308_v5 = vmul.f32 %v301_v48, %v783_v38  ;;  %v309_v62 = vmul.f32 %v301_v48, %v780_v37 }
 0x251   :  { %350 = vxpose.xlu1.b32.start [1/16] %v334_v56, 128  ;;  %v323_v11 = vmul.f32 0.1, %v307_v53  ;;  %v310_v17 = vmul.f32 %v301_v48, %v789_v40 }
 0x252   :  { %v324_v14 = vmul.f32 0.1, %v308_v5  ;;  %v325_v15 = vmul.f32 0.1, %v309_v62 }
 0x253   :  { %v893_v21 = vsub.f32 %v733_v10, %v323_v11  ;;  %v326_v16 = vmul.f32 0.1, %v310_v17  ;;  %v311_v10 = vmul.f32 %v301_v48, %v800_v45 }
 0x254   :  { %v898_v20 = vsub.f32 %v769_v32, %v324_v14  ;;  %v903_v38 = vsub.f32 %v755_v24, %v325_v15  ;;  %v312_v32 = vmul.f32 %v301_v48, %v813_v52  ;;  %v313_v24 = vmul.f32 %v301_v48, %v824_v61 }
 0x255   :  { %351 = vxpose.xlu1.b32.cont [2/16] %v873_v1, 128  ;;  %v908_v37 = vsub.f32 %v764_v29, %v326_v16  ;;  %v327_v19 = vmul.f32 0.1, %v311_v10  ;;  %v314_v29 = vmul.f32 %v301_v48, %v835_v3 }
 0x256   :  { %v328_v22 = vmul.f32 0.1, %v312_v32  ;;  %v329_v49 = vmul.f32 0.1, %v313_v24 }
 0x257   :  { %v913_v40 = vsub.f32 %v772_v33, %v327_v19  ;;  %v330_v23 = vmul.f32 0.1, %v314_v29  ;;  %v315_v33 = vmul.f32 %v301_v48, %v846_v12 }
 0x258   :  { %v918_v45 = vsub.f32 %v792_v41, %v328_v22  ;;  %v923_v52 = vsub.f32 %v803_v46, %v329_v49  ;;  %v316_v41 = vmul.f32 %v301_v48, %v857_v18  ;;  %v317_v46 = vmul.f32 %v301_v48, %v862_v25 }
 0x259   :  { %352 = vxpose.xlu1.b32.cont [3/16] %v878_v9, 128  ;;  %v928_v61 = vsub.f32 %v816_v54, %v330_v23  ;;  %v331_v26 = vmul.f32 0.1, %v315_v33 }
 0x25a   :  { %v332_v27 = vmul.f32 0.1, %v316_v41  ;;  %v333_v28 = vmul.f32 0.1, %v317_v46 }
 0x25b   :  { %v933_v3 = vsub.f32 %v827_v63, %v331_v26 }
 0x25c   :  { %v938_v12 = vsub.f32 %v838_v8, %v332_v27  ;;  %v942_v54 = vsub.f32 %v849_v13, %v333_v28 }
 0x25d   :  { %353 = vxpose.xlu1.b32.cont [4/16] %v883_v57, 128 }
 0x261   :  { %354 = vxpose.xlu1.b32.cont [5/16] %v888_v6, 128 }
 0x265   :  { %355 = vxpose.xlu1.b32.cont [6/16] %v893_v21, 128 }
 0x269   :  { %356 = vxpose.xlu1.b32.cont [7/16] %v898_v20, 128 }
 0x26d   :  { %357 = vxpose.xlu1.b32.cont [8/16] %v903_v38, 128 }
 0x271   :  { %358 = vxpose.xlu1.b32.cont [9/16] %v908_v37, 128 }
 0x275   :  { %359 = vxpose.xlu1.b32.cont [10/16] %v913_v40, 128 }
 0x279   :  { %360 = vxpose.xlu1.b32.cont [11/16] %v918_v45, 128 }
 0x27d   :  { %361 = vxpose.xlu1.b32.cont [12/16] %v923_v52, 128 }
 0x281   :  { %362 = vxpose.xlu1.b32.cont [13/16] %v928_v61, 128 }
 0x285   :  { %363 = vxpose.xlu1.b32.cont [14/16] %v933_v3, 128 }
 0x289   :  { %364 = vxpose.xlu1.b32.cont [15/16] %v938_v12, 128 }
 0x28d   :  { %365 = vxpose.xlu1.b32.end [16/16] %v942_v54, 128 }
 0x2d1   :  { %v366_v18 = vpop.trf.xlu1 }
 0x2d2   :  { %v382_v30 = vadd.f32 %v366_v18, %v334_v56 }
 0x2d4   :  { %v398_v63 = vmul.f32 0.5, %v382_v30 }
 0x2d5   :  { %v367_v31 = vpop.trf.xlu1 }
 0x2d6   :  { %414 = vst [vmem:[%s1011_s3] sm:$0xff] %v398_v63  ;;  %v383_v25 = vadd.f32 %v367_v31, %v873_v1 }
 0x2d8   :  { %v399_v8 = vmul.f32 0.5, %v383_v25 }
 0x2d9   :  { %v368_v34 = vpop.trf.xlu1 }
 0x2da   :  { %415 = vst [vmem:[%s1011_s3 + $0x8] sm:$0xff] %v399_v8  ;;  %v384_v13 = vadd.f32 %v368_v34, %v878_v9 }
 0x2dc   :  { %v400_v35 = vmul.f32 0.5, %v384_v13 }
 0x2dd   :  { %v369_v36 = vpop.trf.xlu1 }
 0x2de   :  { %416 = vst [vmem:[%s1011_s3 + $0x10] sm:$0xff] %v400_v35  ;;  %v385_v39 = vadd.f32 %v369_v36, %v883_v57 }
 0x2e0   :  { %v401_v42 = vmul.f32 0.5, %v385_v39 }
 0x2e1   :  { %v370_v43 = vpop.trf.xlu1 }
 0x2e2   :  { %417 = vst [vmem:[%s1011_s3 + $0x18] sm:$0xff] %v401_v42  ;;  %v386_v44 = vadd.f32 %v370_v43, %v888_v6 }
 0x2e4   :  { %v402_v47 = vmul.f32 0.5, %v386_v44 }
 0x2e5   :  { %v371_v48 = vpop.trf.xlu1 }
 0x2e6   :  { %418 = vst [vmem:[%s1011_s3 + $0x20] sm:$0xff] %v402_v47  ;;  %v387_v50 = vadd.f32 %v371_v48, %v893_v21 }
 0x2e8   :  { %v403_v51 = vmul.f32 0.5, %v387_v50 }
 0x2e9   :  { %v372_v55 = vpop.trf.xlu1 }
 0x2ea   :  { %419 = vst [vmem:[%s1011_s3 + $0x28] sm:$0xff] %v403_v51  ;;  %v388_v56 = vadd.f32 %v372_v55, %v898_v20 }
 0x2ec   :  { %v404_v60 = vmul.f32 0.5, %v388_v56 }
 0x2ed   :  { %v373_v0 = vpop.trf.xlu1 }
 0x2ee   :  { %420 = vst [vmem:[%s1011_s3 + $0x30] sm:$0xff] %v404_v60  ;;  %v389_v1 = vadd.f32 %v373_v0, %v903_v38 }
 0x2f0   :  { %v405_v2 = vmul.f32 0.5, %v389_v1 }
 0x2f1   :  { %v374_v4 = vpop.trf.xlu1 }
 0x2f2   :  { %421 = vst [vmem:[%s1011_s3 + $0x38] sm:$0xff] %v405_v2  ;;  %v390_v9 = vadd.f32 %v374_v4, %v908_v37 }
 0x2f4   :  { %v406_v59 = vmul.f32 0.5, %v390_v9 }
 0x2f5   :  { %v375_v58 = vpop.trf.xlu1 }
 0x2f6   :  { %422 = vst [vmem:[%s1011_s3 + $0x40] sm:$0xff] %v406_v59  ;;  %v391_v57 = vadd.f32 %v375_v58, %v913_v40 }
 0x2f8   :  { %v407_v7 = vmul.f32 0.5, %v391_v57 }
 0x2f9   :  { %v376_v53 = vpop.trf.xlu1 }
 0x2fa   :  { %423 = vst [vmem:[%s1011_s3 + $0x48] sm:$0xff] %v407_v7  ;;  %v392_v6 = vadd.f32 %v376_v53, %v918_v45 }
 0x2fc   :  { %v408_v11 = vmul.f32 0.5, %v392_v6 }
 0x2fd   :  { %v377_v5 = vpop.trf.xlu1 }
 0x2fe   :  { %424 = vst [vmem:[%s1011_s3 + $0x50] sm:$0xff] %v408_v11  ;;  %v393_v21 = vadd.f32 %v377_v5, %v923_v52 }
 0x300   :  { %v409_v14 = vmul.f32 0.5, %v393_v21 }
 0x301   :  { %v378_v62 = vpop.trf.xlu1 }
 0x302   :  { %425 = vst [vmem:[%s1011_s3 + $0x58] sm:$0xff] %v409_v14  ;;  %v394_v20 = vadd.f32 %v378_v62, %v928_v61 }
 0x304   :  { %v410_v15 = vmul.f32 0.5, %v394_v20 }
 0x305   :  { %v379_v17 = vpop.trf.xlu1 }
 0x306   :  { %426 = vst [vmem:[%s1011_s3 + $0x60] sm:$0xff] %v410_v15  ;;  %v395_v38 = vadd.f32 %v379_v17, %v933_v3 }
 0x308   :  { %v411_v16 = vmul.f32 0.5, %v395_v38 }
 0x309   :  { %v380_v10 = vpop.trf.xlu1 }
 0x30a   :  { %427 = vst [vmem:[%s1011_s3 + $0x68] sm:$0xff] %v411_v16  ;;  %v396_v37 = vadd.f32 %v380_v10, %v938_v12 }
 0x30c   :  { %v412_v19 = vmul.f32 0.5, %v396_v37 }
 0x30d   :  { %v381_v32 = vpop.trf.xlu1 }
 0x30e   :  { %428 = vst [vmem:[%s1011_s3 + $0x70] sm:$0xff] %v412_v19  ;;  %v397_v40 = vadd.f32 %v381_v32, %v942_v54 }
 0x310   :  { %v413_v22 = vmul.f32 0.5, %v397_v40 }
 0x312   :  { %429 = vst [vmem:[%s1011_s3 + $0x78] sm:$0xff] %v413_v22 }

// kernel: projected_gradient_descent.3
= control target key start
LH: loop header
LB: loop body
LE: loop exit
PB: predicated region body
PF: predicated region fallthrough
CT: control target
= control target key end

     0   :  { %7 = vsyncpa [#allocation3], 0  ;;  %s552_s0 = inlined_call_operand.hbm [shape: f32[128,128], index: 0, kind: input, shape index: {}, may-alias: {0,2}]   ;;  %s553_s1 = inlined_call_operand.vmem [shape: f32[1,128], index: 1, kind: input, shape index: {}]   ;;  %s554_s2 = inlined_call_operand.hbm [shape: f32[128,128], index: 2, kind: output, shape index: {}, may-alias: {0,2}]  }
   0x1   :  { %8 = vsyncpa [#allocation4], 0  ;;  %s459_s9 = smov [#allocation2]   ;;  %s411_s13 = scalar_lea.hbm %s552_s0, 2048 }
   0x2   :  { %s14_s10 = sshll.u32 %s459_s9, 4  ;;  %p412_p0 = scmp.ne.s32.totalorder %s552_s0, %s411_s13  ;;  %s15_s10 = int_to_ptr.vmem [resolvable:$true] %s14_s10 }
   0x3   :  { %p415_p1 = scmp.lt.u32.totalorder %s411_s13, %s552_s0 }
   0x5   :  { %p417_p2 = pnand %p415_p1, %p412_p0 }
   0x7   :  { %420 = shalt.err (!%p417_p2)
}
   0x8   :  { %s421_s18 = scalar_lea.vmem %s15_s10, 2048  ;;  %p426_p4 = scmp.lt.s32.totalorder %s15_s10, %s15_s10 }
   0x9   :  { %p422_p3 = scmp.ne.s32.totalorder %s15_s10, %s421_s18  ;;  %p427_p5 = scmp.lt.s32.totalorder %s421_s18, %s421_s18 }
   0xb   :  { %p428_p6 = por %p427_p5, %p426_p4 }
   0xd   :  { %p429_p7 = pnand %p428_p6, %p422_p3 }
   0xf   :  { %432 = shalt.err (!%p429_p7)
}
  0x10   :  { %s460_s19 = smov 128   ;;  %s461_s20 = smov 8  }
  0x11   :  { %20 = dma.hbm_to_vmem [thread:$0]  %s552_s0, 2048, %s15_s10, [#allocation3], %s460_s19, %s460_s19, %s461_s20  }
  0x12   :  { %455 = dma.done.wait [#allocation3], 2048  }
  0x13   :  { %456 = vsyncadd [#allocation3], 4294965248  ;;  %v45_v0 = vlaneseq  ;;  %v26_v1 = vld [vmem:[#allocation2] sm:$0xff]  ;;  %v493_v2 = vld [vmem:[#allocation2 + $0x8] sm:$0xff]  ;;  %vm211_vm0 = vcmask 1040384  }
  0x14   :  { %v495_v3 = vld [vmem:[#allocation2 + $0x10] sm:$0xff]  ;;  %v357_v5 = vpack.c.bf16 %v493_v2, %v26_v1  ;;  %v500_v6 = vld [vmem:[#allocation2 + $0x18] sm:$0xff]  ;;  %v42_v9 = vld [vmem:[%s553_s1] sm:$0x1]  ;;  %s462_s1 = smov [#allocation5]  }
  0x15   :  { %v497_v4 = vshrl.u32 %v45_v0, 7  ;;  %v361_v7 = vpack.c.bf16 %v500_v6, %v495_v3  ;;  %v30_v10 = vld [vmem:[#allocation2 + $0x20] sm:$0xff]  ;;  %v508_v11 = vld [vmem:[#allocation2 + $0x28] sm:$0xff]  ;;  %v43_v12 = vmax.f32 %v42_v9, 0.0  ;;  %v32_v19 = vld [vmem:[#allocation2 + $0x30] sm:$0xff]  ;;  %s257_s24 = sshll.u32 %s462_s1, 4  ;;  %s258_s24 = int_to_ptr.vmem [resolvable:$true] %s257_s24 }
  0x16   :  { %358 = vmatprep.subr.bf16.mxu0 %v357_v5  ;;  %389 = vmatprep.subr.bf16.mxu1 %v357_v5  ;;  %v365_v15 = vpack.c.bf16 %v508_v11, %v30_v10  ;;  %v34_v16 = vld [vmem:[#allocation2 + $0x40] sm:$0xff]  ;;  %v33_v20 = vld [vmem:[#allocation2 + $0x38] sm:$0xff]  ;;  %v35_v22 = vld [vmem:[#allocation2 + $0x48] sm:$0xff]  ;;  %s433_s25 = scalar_lea.vmem %s258_s24, 2048  ;;  %p438_p9 = scmp.lt.s32.totalorder %s258_s24, %s258_s24 }
  0x17   :  { %360 = vmatpush3.bf16.xpose.msra.mxu0 %v357_v5  ;;  %397 = vmatpush3.bf16.xpose.msra.mxu1 %v357_v5  ;;  %v47_v8 = vsub.s32 0, %v497_v4  ;;  %v212_v14 = vsel %vm211_vm0, %v43_v12, 0.0  ;;  %v369_v21 = vpack.c.bf16 %v33_v20, %v32_v19  ;;  %v373_v23 = vpack.c.bf16 %v35_v22, %v34_v16  ;;  %v36_v24 = vld [vmem:[#allocation2 + $0x50] sm:$0xff]  ;;  %v37_v25 = vld [vmem:[#allocation2 + $0x58] sm:$0xff]  ;;  %v38_v27 = vld [vmem:[#allocation2 + $0x60] sm:$0xff]  ;;  %p434_p8 = scmp.ne.s32.totalorder %s258_s24, %s433_s25  ;;  %p439_p10 = scmp.lt.s32.totalorder %s433_s25, %s433_s25 }
  0x18   :  { %362 = vmatprep.subr.bf16.mxu0 %v361_v7  ;;  %390 = vmatprep.subr.bf16.mxu1 %v361_v7  ;;  %v377_v26 = vpack.c.bf16 %v37_v25, %v36_v24  ;;  %v39_v28 = vld [vmem:[#allocation2 + $0x68] sm:$0xff]  ;;  %v40_v30 = vld [vmem:[#allocation2 + $0x70] sm:$0xff]  ;;  %v41_v31 = vld [vmem:[#allocation2 + $0x78] sm:$0xff] }
  0x19   :  { %v512_v13 = vrot.slane %v43_v12, %v47_v8  ;;  %213 = vadd.xlane.f32.xlu0 %v212_v14  ;;  %v381_v29 = vpack.c.bf16 %v39_v28, %v38_v27  ;;  %v385_v32 = vpack.c.bf16 %v41_v31, %v40_v30  ;;  %p440_p11 = por %p439_p10, %p438_p9 }
  0x1b   :  { %v50_v17 = vmul.f32 %v512_v13, %v26_v1  ;;  %v58_v18 = vmul.f32 %v512_v13, %v34_v16  ;;  %v51_v33 = vmul.f32 %v512_v13, %v493_v2  ;;  %v59_v34 = vmul.f32 %v512_v13, %v35_v22  ;;  %p441_p12 = pnand %p440_p11, %p434_p8 }
  0x1c   :  { %v52_v35 = vmul.f32 %v512_v13, %v495_v3  ;;  %v60_v36 = vmul.f32 %v512_v13, %v36_v24  ;;  %v53_v37 = vmul.f32 %v512_v13, %v500_v6  ;;  %v61_v38 = vmul.f32 %v512_v13, %v37_v25 }
  0x1d   :  { %333 = vmatprep.mubr.f32.mxu0 %v50_v17  ;;  %345 = vmatprep.mubr.f32.mxu1 %v58_v18  ;;  %v54_v39 = vmul.f32 %v512_v13, %v30_v10  ;;  %v62_v40 = vmul.f32 %v512_v13, %v38_v27  ;;  %v55_v41 = vmul.f32 %v512_v13, %v508_v11 }
  0x1e   :  { %v63_v42 = vmul.f32 %v512_v13, %v39_v28  ;;  %v56_v43 = vmul.f32 %v512_v13, %v32_v19  ;;  %v64_v44 = vmul.f32 %v512_v13, %v40_v30  ;;  %v57_v45 = vmul.f32 %v512_v13, %v33_v20 }
  0x1f   :  { %364 = vmatpush3.bf16.xpose.msra.mxu0 %v361_v7  ;;  %398 = vmatpush3.bf16.xpose.msra.mxu1 %v361_v7  ;;  %v65_v46 = vmul.f32 %v512_v13, %v41_v31 }
  0x20   :  { %366 = vmatprep.subr.bf16.mxu0 %v365_v15  ;;  %391 = vmatprep.subr.bf16.mxu1 %v365_v15 }
  0x27   :  { %368 = vmatpush3.bf16.xpose.msra.mxu0 %v365_v15  ;;  %399 = vmatpush3.bf16.xpose.msra.mxu1 %v365_v15 }
  0x28   :  { %370 = vmatprep.subr.bf16.mxu0 %v369_v21  ;;  %392 = vmatprep.subr.bf16.mxu1 %v369_v21 }
  0x2f   :  { %372 = vmatpush3.bf16.xpose.msra.mxu0 %v369_v21  ;;  %400 = vmatpush3.bf16.xpose.msra.mxu1 %v369_v21 }
  0x30   :  { %374 = vmatprep.subr.bf16.mxu0 %v373_v23  ;;  %393 = vmatprep.subr.bf16.mxu1 %v373_v23 }
  0x37   :  { %376 = vmatpush3.bf16.xpose.msra.mxu0 %v373_v23  ;;  %401 = vmatpush3.bf16.xpose.msra.mxu1 %v373_v23 }
  0x38   :  { %378 = vmatprep.subr.bf16.mxu0 %v377_v26  ;;  %394 = vmatprep.subr.bf16.mxu1 %v377_v26 }
  0x3f   :  { %380 = vmatpush3.bf16.xpose.msra.mxu0 %v377_v26  ;;  %402 = vmatpush3.bf16.xpose.msra.mxu1 %v377_v26 }
  0x40   :  { %382 = vmatprep.subr.bf16.mxu0 %v381_v29  ;;  %395 = vmatprep.subr.bf16.mxu1 %v381_v29 }
  0x47   :  { %384 = vmatpush3.bf16.xpose.msra.mxu0 %v381_v29  ;;  %403 = vmatpush3.bf16.xpose.msra.mxu1 %v381_v29 }
  0x48   :  { %386 = vmatprep.subr.bf16.mxu0 %v385_v32  ;;  %396 = vmatprep.subr.bf16.mxu1 %v385_v32 }
  0x4f   :  { %388 = vmatpush3.bf16.xpose.msra.mxu0 %v385_v32  ;;  %404 = vmatpush3.bf16.xpose.msra.mxu1 %v385_v32 }
  0x56   :  { %334 = vmatmul.mubr.f32.vlgmr.msra.gmra.mrb[0].mxu0 %v51_v33  ;;  %346 = vmatmul.mubr.f32.vlgmr.msra.gmra.mrb[0].mxu1 %v59_v34 }
  0x57   :  { %336 = vmatprep.mubr.f32.mxu0 %v52_v35  ;;  %348 = vmatprep.mubr.f32.mxu1 %v60_v36 }
  0x5a   :  { %337 = vmatmul.mubr.f32.gmra.mrb[2].mxu0 %v53_v37  ;;  %349 = vmatmul.mubr.f32.gmra.mrb[2].mxu1 %v61_v38 }
  0x5b   :  { %339 = vmatprep.mubr.f32.mxu0 %v54_v39  ;;  %351 = vmatprep.mubr.f32.mxu1 %v62_v40 }
  0x5e   :  { %340 = vmatmul.mubr.f32.gmra.mrb[4].mxu0 %v55_v41  ;;  %352 = vmatmul.mubr.f32.gmra.mrb[4].mxu1 %v63_v42 }
  0x5f   :  { %342 = vmatprep.mubr.f32.mxu0 %v56_v43  ;;  %354 = vmatprep.mubr.f32.mxu1 %v64_v44 }
  0x62   :  { %343 = vmatmul.mubr.f32.gmra.mrb[6].mxu0 %v57_v45  ;;  %355 = vmatmul.mubr.f32.gmra.mrb[6].mxu1 %v65_v46 }
  0xa6   :  { %v214_v47 = vpop.xlane.xlu0 %213 }
  0xa7   :  { %409 = vrcp.f32 %v214_v47 }
  0xb1   :  { %v410_v48 = vpop.eup %409 }
  0xb2   :  { %v219_v49 = vrot.slane %v410_v48, %v47_v8 }
 0x129   :  { %v335_v50 = vpop.f32.mrb[0].mxu0  ;;  %v347_v51 = vpop.f32.mrb[0].mxu1 }
 0x12a   :  { %v221_v52 = vmul.f32 %v335_v50, %v219_v49  ;;  %v229_v53 = vmul.f32 %v347_v51, %v219_v49  ;;  %v132_v54 = vpop.f32.mrb[1].mxu0  ;;  %v172_v55 = vpop.f32.mrb[1].mxu1 }
 0x12b   :  { %v220_v56 = vmul.f32 %v219_v49, %v132_v54  ;;  %v228_v57 = vmul.f32 %v219_v49, %v172_v55 }
 0x12c   :  { %237 = vst [vmem:[#allocation5 + $0x8] sm:$0xff] %v221_v52  ;;  %245 = vst [vmem:[#allocation5 + $0x48] sm:$0xff] %v229_v53 }
 0x12d   :  { %236 = vst [vmem:[#allocation5] sm:$0xff] %v220_v56  ;;  %244 = vst [vmem:[#allocation5 + $0x40] sm:$0xff] %v228_v57  ;;  %v338_v58 = vpop.f32.mrb[2].mxu0  ;;  %v350_v59 = vpop.f32.mrb[2].mxu1 }
 0x12e   :  { %v223_v60 = vmul.f32 %v338_v58, %v219_v49  ;;  %v231_v61 = vmul.f32 %v350_v59, %v219_v49  ;;  %v142_v62 = vpop.f32.mrb[3].mxu0  ;;  %v182_v63 = vpop.f32.mrb[3].mxu1 }
 0x12f   :  { %v222_v0 = vmul.f32 %v219_v49, %v142_v62  ;;  %v230_v1 = vmul.f32 %v219_v49, %v182_v63 }
 0x130   :  { %239 = vst [vmem:[#allocation5 + $0x18] sm:$0xff] %v223_v60  ;;  %247 = vst [vmem:[#allocation5 + $0x58] sm:$0xff] %v231_v61 }
 0x131   :  { %238 = vst [vmem:[#allocation5 + $0x10] sm:$0xff] %v222_v0  ;;  %246 = vst [vmem:[#allocation5 + $0x50] sm:$0xff] %v230_v1  ;;  %v341_v2 = vpop.f32.mrb[4].mxu0  ;;  %v353_v3 = vpop.f32.mrb[4].mxu1 }
 0x132   :  { %v225_v4 = vmul.f32 %v341_v2, %v219_v49  ;;  %v233_v5 = vmul.f32 %v353_v3, %v219_v49  ;;  %v152_v6 = vpop.f32.mrb[5].mxu0  ;;  %v192_v7 = vpop.f32.mrb[5].mxu1 }
 0x133   :  { %v224_v8 = vmul.f32 %v219_v49, %v152_v6  ;;  %v232_v9 = vmul.f32 %v219_v49, %v192_v7 }
 0x134   :  { %241 = vst [vmem:[#allocation5 + $0x28] sm:$0xff] %v225_v4  ;;  %249 = vst [vmem:[#allocation5 + $0x68] sm:$0xff] %v233_v5 }
 0x135   :  { %240 = vst [vmem:[#allocation5 + $0x20] sm:$0xff] %v224_v8  ;;  %248 = vst [vmem:[#allocation5 + $0x60] sm:$0xff] %v232_v9  ;;  %v344_v10 = vpop.f32.mrb[6].mxu0  ;;  %v356_v11 = vpop.f32.mrb[6].mxu1 }
 0x136   :  { %v227_v12 = vmul.f32 %v344_v10, %v219_v49  ;;  %v235_v13 = vmul.f32 %v356_v11, %v219_v49  ;;  %v162_v14 = vpop.f32.mrb[7].mxu0  ;;  %v202_v15 = vpop.f32.mrb[7].mxu1 }
 0x137   :  { %v226_v16 = vmul.f32 %v219_v49, %v162_v14  ;;  %v234_v17 = vmul.f32 %v219_v49, %v202_v15 }
 0x138   :  { %243 = vst [vmem:[#allocation5 + $0x38] sm:$0xff] %v227_v12  ;;  %251 = vst [vmem:[#allocation5 + $0x78] sm:$0xff] %v235_v13 }
 0x139   :  { %242 = vst [vmem:[#allocation5 + $0x30] sm:$0xff] %v226_v16  ;;  %250 = vst [vmem:[#allocation5 + $0x70] sm:$0xff] %v234_v17 }
 0x13a   :  { %444 = shalt.err (!%p441_p12)
}
 0x13b   :  { %s445_s28 = scalar_lea.hbm %s554_s2, 2048 }
 0x13c   :  { %p446_p13 = scmp.ne.s32.totalorder %s554_s2, %s445_s28  ;;  %p449_p0 = scmp.lt.u32.totalorder %s445_s28, %s554_s2 }
 0x13e   :  { %p451_p1 = pnand %p449_p0, %p446_p13 }
 0x140   :  { %454 = shalt.err (!%p451_p1)
}
 0x141   :  { %263 = dma.vmem_to_hbm [thread:$0]  %s258_s24, 2048, %s554_s2, [#allocation4], %s460_s19, %s460_s19, %s461_s20  }
 0x142   :  { %457 = dma.done.wait [#allocation4], 2048  }
 0x143   :  { %458 = vsyncadd [#allocation4], 4294965248 }
 0x144   :  { %267 = vsyncpa [#allocation3], 1 }
 0x145   :  { %268 = vsyncpa [#allocation4], 1 }

</bundles_post_ra>
